<compile_context>
chip_gen: v7x
topology: tpu7x:2x2x1
jax: 0.10.0
libtpu: 0.0.40
codegen_flags: <defaults>
</compile_context>

<pallas_src>
import functools

import jax
import jax.numpy as jnp
from jax import lax
from jax.experimental import pallas as pl
from jax.experimental.pallas import tpu as pltpu

# Make the pure-JAX reference use full-f32 matmuls so the tolerance check
# against the kernel (which accumulates in f32) is meaningful.
jax.config.update("jax_default_matmul_precision", "highest")

# ----- Config (stand-in for the PyTorch `Config`) ---------------------------
VOCAB_SIZE = 100
HIDDEN = 32          # config.hidden_size
N_LAYERS = 2         # config.layers
N_HEADS = 4
D_FF = HIDDEN * 4
MAX_POS = 64
N_SEGMENTS = 2
PAD_ID = 0
LN_EPS = 1e-5        # torch.nn.LayerNorm default
NEG_INF = -1e9


def _layer_norm(x, gamma, beta, eps=LN_EPS):
    mu = jnp.mean(x, axis=-1, keepdims=True)
    var = jnp.mean((x - mu) ** 2, axis=-1, keepdims=True)
    return (x - mu) * jax.lax.rsqrt(var + eps) * gamma + beta


# ----------------------------- Pallas kernel --------------------------------
def _bert_kernel(e_ref, kbias_ref, npm_ref, eg_ref, eb_ref,
                 wqkv_ref, bqkv_ref, wo_ref, bo_ref,
                 ln1g_ref, ln1b_ref, w1_ref, b1_ref, w2_ref, b2_ref,
                 ln2g_ref, ln2b_ref, o_ref, *, n_layers, n_heads):
    """One sequence per program: embedding LN + n_layers encoder layers."""
    x = _layer_norm(e_ref[0], eg_ref[...], eb_ref[...])      # (S, H)
    kbias = kbias_ref[0]                                      # (1, S) additive
    npm = npm_ref[0]                                          # (S, 1)

    S, H = x.shape
    hd = H // n_heads

    for l in range(n_layers):                                 # static unroll
        # ---- fused QKV projection: one (S,H)x(H,3H) matmul ----
        qkv = jnp.dot(x, wqkv_ref[l],
                      preferred_element_type=jnp.float32) + bqkv_ref[l]
        q = qkv[:, 0 * H:1 * H]          # scale already folded into Wq/bq
        k = qkv[:, 1 * H:2 * H]
        v = qkv[:, 2 * H:3 * H]

        # ---- per-head scaled-dot-product attention (2-D MXU ops) ----
        ctx_parts = []
        for head in range(n_heads):
            sl = slice(head * hd, (head + 1) * hd)
            s = lax.dot_general(q[:, sl], k[:, sl],
                                (((1,), (1,)), ((), ())),
                                preferred_element_type=jnp.float32)  # (S,S)
            s = s + kbias                                     # mask PAD keys
            s = s - jnp.max(s, axis=-1, keepdims=True)
            p = jnp.exp(s)
            # exact reciprocal for tight validation; flip approx=True later.
            p = p * pl.reciprocal(jnp.sum(p, axis=-1, keepdims=True),
                                  approx=False)
            ctx_parts.append(jnp.dot(p, v[:, sl],
                                     preferred_element_type=jnp.float32))
        ctx = jnp.concatenate(ctx_parts, axis=-1)             # (S, H)

        # ---- fused output projection (cross-head reduction stays in MXU) ----
        attn = jnp.dot(ctx, wo_ref[l],
                       preferred_element_type=jnp.float32) + bo_ref[l]
        x1 = _layer_norm(x + attn, ln1g_ref[l], ln1b_ref[l])

        # ---- position-wise feed-forward ----
        h1 = jnp.maximum(
            jnp.dot(x1, w1_ref[l], preferred_element_type=jnp.float32)
            + b1_ref[l], 0.0)
        ffn = jnp.dot(h1, w2_ref[l],
                      preferred_element_type=jnp.float32) + b2_ref[l]
        x = _layer_norm(x1 + ffn, ln2g_ref[l], ln2b_ref[l]) * npm

    o_ref[0] = x


# ------------------------------- Wrapper -------------------------------------
def _pack_layer_weights(layers):
    """Stack per-layer weights on a leading layer axis.

    Wqkv is packed [Wq|Wk|Wv] (q/k/v at lane offsets 0, H, 2H) and the
    1/sqrt(head_dim) attention scale is folded into Wq/bq at pack time.
    """
    hd = HIDDEN // N_HEADS
    scale = 1.0 / (hd ** 0.5)

    wqkv = jnp.stack([jnp.concatenate(
        [p["wq"] * scale, p["wk"], p["wv"]], axis=1) for p in layers])  # (L,H,3H)
    bqkv = jnp.stack([jnp.concatenate(
        [p["bq"] * scale, p["bk"], p["bv"]], axis=1) for p in layers])  # (L,1,3H)
    wo = jnp.stack([p["wo"] for p in layers])       # (L,H,H)
    bo = jnp.stack([p["bo"] for p in layers])       # (L,1,H)
    ln1g = jnp.stack([p["ln1_g"] for p in layers])
    ln1b = jnp.stack([p["ln1_b"] for p in layers])
    w1 = jnp.stack([p["w1"] for p in layers])
    b1 = jnp.stack([p["b1"] for p in layers])
    w2 = jnp.stack([p["w2"] for p in layers])
    b2 = jnp.stack([p["b2"] for p in layers])
    ln2g = jnp.stack([p["ln2_g"] for p in layers])
    ln2b = jnp.stack([p["ln2_b"] for p in layers])
    return (wqkv, bqkv, wo, bo, ln1g, ln1b, w1, b1, w2, b2, ln2g, ln2b)


def _full_spec(arr):
    """Whole-array block, same block for every program (DMA'd once)."""
    ndim = arr.ndim
    return pl.BlockSpec(arr.shape, lambda b: (0,) * ndim)


@jax.jit
def bert_forward(params, src_seq, segment):
    B, S = src_seq.shape
    ep = params["embedding"]

    # --- token/position/segment embedding sum (gathers stay in XLA glue) ---
    tok = ep["tok"][src_seq]                                   # (B,S,H)
    pos = ep["pos"][jnp.arange(S)][None]
    seg = ep["seg"][segment]
    e = (tok + pos + seg).astype(jnp.float32)                  # (B,S,H)

    # --- O(B*S) masks (per-sequence; no dense (M,M) bias) ---
    is_pad = (src_seq == PAD_ID)
    kbias = jnp.where(is_pad, NEG_INF, 0.0).astype(jnp.float32)[:, None, :]  # (B,1,S)
    npm = jnp.logical_not(is_pad).astype(jnp.float32)[:, :, None]            # (B,S,1)

    packed = _pack_layer_weights(params["layers"])
    weight_inputs = (ep["ln_g"], ep["ln_b"]) + packed

    kernel = functools.partial(_bert_kernel,
                               n_layers=len(params["layers"]),
                               n_heads=N_HEADS)

    in_specs = [
        pl.BlockSpec((1, S, HIDDEN), lambda b: (b, 0, 0)),   # embeddings
        pl.BlockSpec((1, 1, S), lambda b: (b, 0, 0)),        # key-pad bias
        pl.BlockSpec((1, S, 1), lambda b: (b, 0, 0)),        # no-pad mult
    ] + [_full_spec(w) for w in weight_inputs]

    out = pl.pallas_call(
        kernel,
        out_shape=jax.ShapeDtypeStruct((B, S, HIDDEN), jnp.float32),
        grid=(B,),
        in_specs=in_specs,
        out_specs=pl.BlockSpec((1, S, HIDDEN), lambda b: (b, 0, 0)),
        compiler_params=pltpu.CompilerParams(
            # sequences are independent -> shard across TensorCores (v7x)
            dimension_semantics=("parallel",),
            # explicit scoped-VMEM limit; re-derive against the 64 MiB v7x
            # floor if tiles grow (working set here is ~150 KB).
            vmem_limit_bytes=32 * 1024 * 1024,
        ),
    )(e, kbias, npm, *weight_inputs)
    return out


# --------------------------- Pure-JAX reference ------------------------------
def bert_reference(params, src_seq, segment):
    ep = params["embedding"]
    B, S = src_seq.shape
    nh, hd = N_HEADS, HIDDEN // N_HEADS
    x = _layer_norm(ep["tok"][src_seq] + ep["pos"][jnp.arange(S)][None]
                    + ep["seg"][segment], ep["ln_g"], ep["ln_b"])
    pad = (src_seq == PAD_ID)
    pm = jnp.broadcast_to(pad[:, None, :], (B, S, S))         # key is PAD
    npm = jnp.logical_not(pad).astype(jnp.float32)[:, :, None]
    for p in params["layers"]:
        q = x @ p["wq"] + p["bq"]
        k = x @ p["wk"] + p["bk"]
        v = x @ p["wv"] + p["bv"]
        split = lambda t: t.reshape(B, S, nh, hd).transpose(0, 2, 1, 3)
        qh, kh, vh = split(q), split(k), split(v)
        s = jnp.einsum('bhqd,bhkd->bhqk', qh, kh) / (hd ** 0.5)  # explicit scale
        s = jnp.where(pm[:, None], NEG_INF, s)                # masked_fill
        a = jax.nn.softmax(s, axis=-1)
        ctx = jnp.einsum('bhqk,bhkd->bhqd', a, vh)
        ctx = ctx.transpose(0, 2, 1, 3).reshape(B, S, HIDDEN)
        x1 = _layer_norm(x + ctx @ p["wo"] + p["bo"], p["ln1_g"], p["ln1_b"])
        ffn = jnp.maximum(x1 @ p["w1"] + p["b1"], 0.0) @ p["w2"] + p["b2"]
        x = _layer_norm(x1 + ffn, p["ln2_g"], p["ln2_b"]) * npm
    return x


# ------------------------------ Params / main --------------------------------
def init_params(key):
    k_emb, k_layers = jax.random.split(key)
    ke = jax.random.split(k_emb, 3)
    emb = {
        "tok": 0.02 * jax.random.normal(ke[0], (VOCAB_SIZE, HIDDEN), jnp.float32),
        "pos": 0.02 * jax.random.normal(ke[1], (MAX_POS, HIDDEN), jnp.float32),
        "seg": 0.02 * jax.random.normal(ke[2], (N_SEGMENTS, HIDDEN), jnp.float32),
        "ln_g": jnp.ones((1, HIDDEN), jnp.float32),
        "ln_b": jnp.zeros((1, HIDDEN), jnp.float32),
    }
    layers = []
    for lk in jax.random.split(k_layers, N_LAYERS):
        ks = jax.random.split(lk, 12)
        layers.append({
            "wq": 0.02 * jax.random.normal(ks[0], (HIDDEN, HIDDEN), jnp.float32),
            "bq": 0.02 * jax.random.normal(ks[1], (1, HIDDEN), jnp.float32),
            "wk": 0.02 * jax.random.normal(ks[2], (HIDDEN, HIDDEN), jnp.float32),
            "bk": 0.02 * jax.random.normal(ks[3], (1, HIDDEN), jnp.float32),
            "wv": 0.02 * jax.random.normal(ks[4], (HIDDEN, HIDDEN), jnp.float32),
            "bv": 0.02 * jax.random.normal(ks[5], (1, HIDDEN), jnp.float32),
            "wo": 0.02 * jax.random.normal(ks[6], (HIDDEN, HIDDEN), jnp.float32),
            "bo": 0.02 * jax.random.normal(ks[7], (1, HIDDEN), jnp.float32),
            "ln1_g": jnp.ones((1, HIDDEN), jnp.float32),
            "ln1_b": jnp.zeros((1, HIDDEN), jnp.float32),
            "w1": 0.02 * jax.random.normal(ks[8], (HIDDEN, D_FF), jnp.float32),
            "b1": 0.02 * jax.random.normal(ks[9], (1, D_FF), jnp.float32),
            "w2": 0.02 * jax.random.normal(ks[10], (D_FF, HIDDEN), jnp.float32),
            "b2": 0.02 * jax.random.normal(ks[11], (1, HIDDEN), jnp.float32),
            "ln2_g": jnp.ones((1, HIDDEN), jnp.float32),
            "ln2_b": jnp.zeros((1, HIDDEN), jnp.float32),
        })
    return {"embedding": emb, "layers": layers}


if __name__ == "__main__":
    B, S = 2, 8
    params = init_params(jax.random.PRNGKey(0))

    k1, _ = jax.random.split(jax.random.PRNGKey(0))
    src_seq = jax.random.randint(k1, (B, S), 1, VOCAB_SIZE, dtype=jnp.int32)
    src_seq = src_seq.at[1, 6:].set(PAD_ID)          # some PAD tokens
    segment = jnp.concatenate(
        [jnp.zeros((B, S // 2), jnp.int32), jnp.ones((B, S // 2), jnp.int32)],
        axis=1)

    out = jax.block_until_ready(bert_forward(params, src_seq, segment))
    ref = jax.block_until_ready(bert_reference(params, src_seq, segment))

    assert out.shape == (B, S, HIDDEN)
    assert bool(jnp.all(jnp.isfinite(out)))
    # padded positions must be zeroed by the no_pad_mask (applied every layer)
    assert bool(jnp.all(out[1, 6:] == 0.0))
    # exact softmax reciprocal -> tight tolerance vs pure-JAX reference
    max_err = float(jnp.max(jnp.abs(out - ref)))
    assert max_err < 1e-3, f"max |kernel - ref| = {max_err}"
    print("KERNEL_OK")
</pallas_src>

<mosaic_0001>
module attributes {stable_mosaic.version = 11 : i64} {
  func.func @_bert_kernel(%arg0: i32, %arg1: memref<1x8x32xf32, #tpu.memory_space<vmem>>, %arg2: memref<1x1x8xf32, #tpu.memory_space<vmem>>, %arg3: memref<1x8x1xf32, #tpu.memory_space<vmem>>, %arg4: memref<1x32xf32, #tpu.memory_space<vmem>>, %arg5: memref<1x32xf32, #tpu.memory_space<vmem>>, %arg6: memref<2x32x96xf32, #tpu.memory_space<vmem>>, %arg7: memref<2x1x96xf32, #tpu.memory_space<vmem>>, %arg8: memref<2x32x32xf32, #tpu.memory_space<vmem>>, %arg9: memref<2x1x32xf32, #tpu.memory_space<vmem>>, %arg10: memref<2x1x32xf32, #tpu.memory_space<vmem>>, %arg11: memref<2x1x32xf32, #tpu.memory_space<vmem>>, %arg12: memref<2x32x128xf32, #tpu.memory_space<vmem>>, %arg13: memref<2x1x128xf32, #tpu.memory_space<vmem>>, %arg14: memref<2x128x32xf32, #tpu.memory_space<vmem>>, %arg15: memref<2x1x32xf32, #tpu.memory_space<vmem>>, %arg16: memref<2x1x32xf32, #tpu.memory_space<vmem>>, %arg17: memref<2x1x32xf32, #tpu.memory_space<vmem>>, %arg18: memref<1x8x32xf32, #tpu.memory_space<vmem>>) attributes {dimension_semantics = [#tpu.dimension_semantics<parallel>], iteration_bounds = array<i64: 2>, scalar_prefetch = 0 : i64, scratch_operands = 0 : i64, tpu.core_type = #tpu.core_type<tc>, window_params = [{transform_indices = @transform_0, window_bounds = array<i64: 1, 8, 32>}, {transform_indices = @transform_1, window_bounds = array<i64: 1, 1, 8>}, {transform_indices = @transform_2, window_bounds = array<i64: 1, 8, 1>}, {pipeline_mode = #tpu.pipeline_mode<synchronous>, transform_indices = @transform_3, window_bounds = array<i64: 1, 32>}, {pipeline_mode = #tpu.pipeline_mode<synchronous>, transform_indices = @transform_4, window_bounds = array<i64: 1, 32>}, {pipeline_mode = #tpu.pipeline_mode<synchronous>, transform_indices = @transform_5, window_bounds = array<i64: 2, 32, 96>}, {pipeline_mode = #tpu.pipeline_mode<synchronous>, transform_indices = @transform_6, window_bounds = array<i64: 2, 1, 96>}, {pipeline_mode = #tpu.pipeline_mode<synchronous>, transform_indices = @transform_7, window_bounds = array<i64: 2, 32, 32>}, {pipeline_mode = #tpu.pipeline_mode<synchronous>, transform_indices = @transform_8, window_bounds = array<i64: 2, 1, 32>}, {pipeline_mode = #tpu.pipeline_mode<synchronous>, transform_indices = @transform_9, window_bounds = array<i64: 2, 1, 32>}, {pipeline_mode = #tpu.pipeline_mode<synchronous>, transform_indices = @transform_10, window_bounds = array<i64: 2, 1, 32>}, {pipeline_mode = #tpu.pipeline_mode<synchronous>, transform_indices = @transform_11, window_bounds = array<i64: 2, 32, 128>}, {pipeline_mode = #tpu.pipeline_mode<synchronous>, transform_indices = @transform_12, window_bounds = array<i64: 2, 1, 128>}, {pipeline_mode = #tpu.pipeline_mode<synchronous>, transform_indices = @transform_13, window_bounds = array<i64: 2, 128, 32>}, {pipeline_mode = #tpu.pipeline_mode<synchronous>, transform_indices = @transform_14, window_bounds = array<i64: 2, 1, 32>}, {pipeline_mode = #tpu.pipeline_mode<synchronous>, transform_indices = @transform_15, window_bounds = array<i64: 2, 1, 32>}, {pipeline_mode = #tpu.pipeline_mode<synchronous>, transform_indices = @transform_16, window_bounds = array<i64: 2, 1, 32>}, {transform_indices = @transform_17, window_bounds = array<i64: 1, 8, 32>}]} {
    %c0 = arith.constant 0 : index
    %c0_0 = arith.constant 0 : index
    %c0_1 = arith.constant 0 : index
    %0 = vector.load %arg1[%c0, %c0_0, %c0_1] : memref<1x8x32xf32, #tpu.memory_space<vmem>>, vector<1x8x32xf32>
    %1 = vector.shape_cast %0 : vector<1x8x32xf32> to vector<8x32xf32>
    %c0_2 = arith.constant 0 : index
    %c0_3 = arith.constant 0 : index
    %2 = vector.load %arg4[%c0_2, %c0_3] : memref<1x32xf32, #tpu.memory_space<vmem>>, vector<1x32xf32>
    %c0_4 = arith.constant 0 : index
    %c0_5 = arith.constant 0 : index
    %3 = vector.load %arg5[%c0_4, %c0_5] : memref<1x32xf32, #tpu.memory_space<vmem>>, vector<1x32xf32>
    %cst = arith.constant dense<0.000000e+00> : vector<8xf32>
    %4 = vector.multi_reduction <add>, %1, %cst [1] : vector<8x32xf32> to vector<8xf32>
    %5 = vector.shape_cast %4 : vector<8xf32> to vector<8x1xf32>
    %cst_6 = arith.constant 3.200000e+01 : f32
    %6 = vector.broadcast %cst_6 : f32 to vector<8x1xf32>
    %7 = arith.divf %5, %6 : vector<8x1xf32>
    %8 = vector.broadcast %7 : vector<8x1xf32> to vector<8x32xf32>
    %9 = arith.subf %1, %8 : vector<8x32xf32>
    %10 = arith.mulf %9, %9 : vector<8x32xf32>
    %cst_7 = arith.constant dense<0.000000e+00> : vector<8xf32>
    %11 = vector.multi_reduction <add>, %10, %cst_7 [1] : vector<8x32xf32> to vector<8xf32>
    %12 = vector.shape_cast %11 : vector<8xf32> to vector<8x1xf32>
    %cst_8 = arith.constant 3.200000e+01 : f32
    %13 = vector.broadcast %cst_8 : f32 to vector<8x1xf32>
    %14 = arith.divf %12, %13 : vector<8x1xf32>
    %15 = vector.broadcast %7 : vector<8x1xf32> to vector<8x32xf32>
    %16 = arith.subf %1, %15 : vector<8x32xf32>
    %cst_9 = arith.constant 9.99999974E-6 : f32
    %17 = vector.broadcast %cst_9 : f32 to vector<8x1xf32>
    %18 = arith.addf %14, %17 : vector<8x1xf32>
    %19 = math.rsqrt %18 : vector<8x1xf32>
    %20 = vector.broadcast %19 : vector<8x1xf32> to vector<8x32xf32>
    %21 = arith.mulf %16, %20 : vector<8x32xf32>
    %22 = vector.broadcast %2 : vector<1x32xf32> to vector<8x32xf32>
    %23 = arith.mulf %21, %22 : vector<8x32xf32>
    %24 = vector.broadcast %3 : vector<1x32xf32> to vector<8x32xf32>
    %25 = arith.addf %23, %24 : vector<8x32xf32>
    %c0_10 = arith.constant 0 : index
    %c0_11 = arith.constant 0 : index
    %c0_12 = arith.constant 0 : index
    %26 = vector.load %arg2[%c0_10, %c0_11, %c0_12] : memref<1x1x8xf32, #tpu.memory_space<vmem>>, vector<1x1x8xf32>
    %27 = vector.shape_cast %26 : vector<1x1x8xf32> to vector<1x8xf32>
    %c0_13 = arith.constant 0 : index
    %c0_14 = arith.constant 0 : index
    %c0_15 = arith.constant 0 : index
    %28 = vector.load %arg3[%c0_13, %c0_14, %c0_15] : memref<1x8x1xf32, #tpu.memory_space<vmem>>, vector<1x8x1xf32>
    %29 = vector.shape_cast %28 : vector<1x8x1xf32> to vector<8x1xf32>
    %c0_16 = arith.constant 0 : index
    %c0_17 = arith.constant 0 : index
    %c0_18 = arith.constant 0 : index
    %30 = vector.load %arg6[%c0_16, %c0_17, %c0_18] : memref<2x32x96xf32, #tpu.memory_space<vmem>>, vector<1x32x96xf32>
    %31 = vector.shape_cast %30 : vector<1x32x96xf32> to vector<32x96xf32>
    %cst_19 = arith.constant dense<0.000000e+00> : vector<8x96xf32>
    %32 = tpu.matmul %25, %31, %cst_19 {dimension_numbers = #tpu.dot_dimension_numbers<[1], [0], [0], [1], [0, 0, 1, 1], [], []>, precision = #tpu.contract_precision<fp32>} : vector<8x32xf32>, vector<32x96xf32>, vector<8x96xf32> -> vector<8x96xf32>
    %c0_20 = arith.constant 0 : index
    %c0_21 = arith.constant 0 : index
    %c0_22 = arith.constant 0 : index
    %33 = vector.load %arg7[%c0_20, %c0_21, %c0_22] : memref<2x1x96xf32, #tpu.memory_space<vmem>>, vector<1x1x96xf32>
    %34 = vector.shape_cast %33 : vector<1x1x96xf32> to vector<1x96xf32>
    %35 = vector.broadcast %34 : vector<1x96xf32> to vector<8x96xf32>
    %36 = arith.addf %32, %35 : vector<8x96xf32>
    %37 = vector.extract_strided_slice %36 {offsets = [0, 0], sizes = [8, 32], strides = [1, 1]} : vector<8x96xf32> to vector<8x32xf32>
    %38 = vector.extract_strided_slice %36 {offsets = [0, 32], sizes = [8, 32], strides = [1, 1]} : vector<8x96xf32> to vector<8x32xf32>
    %39 = vector.extract_strided_slice %36 {offsets = [0, 64], sizes = [8, 32], strides = [1, 1]} : vector<8x96xf32> to vector<8x32xf32>
    %40 = vector.extract_strided_slice %37 {offsets = [0, 0], sizes = [8, 8], strides = [1, 1]} : vector<8x32xf32> to vector<8x8xf32>
    %41 = vector.extract_strided_slice %38 {offsets = [0, 0], sizes = [8, 8], strides = [1, 1]} : vector<8x32xf32> to vector<8x8xf32>
    %cst_23 = arith.constant dense<0.000000e+00> : vector<8x8xf32>
    %42 = tpu.matmul %40, %41, %cst_23 {dimension_numbers = #tpu.dot_dimension_numbers<[1], [1], [0], [0], [0, 0, 1, 0], [], []>, precision = #tpu.contract_precision<fp32>} : vector<8x8xf32>, vector<8x8xf32>, vector<8x8xf32> -> vector<8x8xf32>
    %43 = vector.broadcast %27 : vector<1x8xf32> to vector<8x8xf32>
    %44 = arith.addf %42, %43 : vector<8x8xf32>
    %cst_24 = arith.constant dense<0xFF800000> : vector<8xf32>
    %45 = vector.multi_reduction <maximumf>, %44, %cst_24 [1] : vector<8x8xf32> to vector<8xf32>
    %46 = vector.shape_cast %45 : vector<8xf32> to vector<8x1xf32>
    %47 = vector.broadcast %46 : vector<8x1xf32> to vector<8x8xf32>
    %48 = arith.subf %44, %47 : vector<8x8xf32>
    %49 = math.exp %48 : vector<8x8xf32>
    %cst_25 = arith.constant dense<0.000000e+00> : vector<8xf32>
    %50 = vector.multi_reduction <add>, %49, %cst_25 [1] : vector<8x8xf32> to vector<8xf32>
    %51 = vector.shape_cast %50 : vector<8xf32> to vector<8x1xf32>
    %52 = tpu.reciprocal %51 : vector<8x1xf32> -> vector<8x1xf32>
    %53 = vector.broadcast %52 : vector<8x1xf32> to vector<8x8xf32>
    %54 = arith.mulf %49, %53 : vector<8x8xf32>
    %55 = vector.extract_strided_slice %39 {offsets = [0, 0], sizes = [8, 8], strides = [1, 1]} : vector<8x32xf32> to vector<8x8xf32>
    %cst_26 = arith.constant dense<0.000000e+00> : vector<8x8xf32>
    %56 = tpu.matmul %54, %55, %cst_26 {dimension_numbers = #tpu.dot_dimension_numbers<[1], [0], [0], [1], [0, 0, 1, 1], [], []>, precision = #tpu.contract_precision<fp32>} : vector<8x8xf32>, vector<8x8xf32>, vector<8x8xf32> -> vector<8x8xf32>
    %57 = vector.extract_strided_slice %37 {offsets = [0, 8], sizes = [8, 8], strides = [1, 1]} : vector<8x32xf32> to vector<8x8xf32>
    %58 = vector.extract_strided_slice %38 {offsets = [0, 8], sizes = [8, 8], strides = [1, 1]} : vector<8x32xf32> to vector<8x8xf32>
    %cst_27 = arith.constant dense<0.000000e+00> : vector<8x8xf32>
    %59 = tpu.matmul %57, %58, %cst_27 {dimension_numbers = #tpu.dot_dimension_numbers<[1], [1], [0], [0], [0, 0, 1, 0], [], []>, precision = #tpu.contract_precision<fp32>} : vector<8x8xf32>, vector<8x8xf32>, vector<8x8xf32> -> vector<8x8xf32>
    %60 = vector.broadcast %27 : vector<1x8xf32> to vector<8x8xf32>
    %61 = arith.addf %59, %60 : vector<8x8xf32>
    %cst_28 = arith.constant dense<0xFF800000> : vector<8xf32>
    %62 = vector.multi_reduction <maximumf>, %61, %cst_28 [1] : vector<8x8xf32> to vector<8xf32>
    %63 = vector.shape_cast %62 : vector<8xf32> to vector<8x1xf32>
    %64 = vector.broadcast %63 : vector<8x1xf32> to vector<8x8xf32>
    %65 = arith.subf %61, %64 : vector<8x8xf32>
    %66 = math.exp %65 : vector<8x8xf32>
    %cst_29 = arith.constant dense<0.000000e+00> : vector<8xf32>
    %67 = vector.multi_reduction <add>, %66, %cst_29 [1] : vector<8x8xf32> to vector<8xf32>
    %68 = vector.shape_cast %67 : vector<8xf32> to vector<8x1xf32>
    %69 = tpu.reciprocal %68 : vector<8x1xf32> -> vector<8x1xf32>
    %70 = vector.broadcast %69 : vector<8x1xf32> to vector<8x8xf32>
    %71 = arith.mulf %66, %70 : vector<8x8xf32>
    %72 = vector.extract_strided_slice %39 {offsets = [0, 8], sizes = [8, 8], strides = [1, 1]} : vector<8x32xf32> to vector<8x8xf32>
    %cst_30 = arith.constant dense<0.000000e+00> : vector<8x8xf32>
    %73 = tpu.matmul %71, %72, %cst_30 {dimension_numbers = #tpu.dot_dimension_numbers<[1], [0], [0], [1], [0, 0, 1, 1], [], []>, precision = #tpu.contract_precision<fp32>} : vector<8x8xf32>, vector<8x8xf32>, vector<8x8xf32> -> vector<8x8xf32>
    %74 = vector.extract_strided_slice %37 {offsets = [0, 16], sizes = [8, 8], strides = [1, 1]} : vector<8x32xf32> to vector<8x8xf32>
    %75 = vector.extract_strided_slice %38 {offsets = [0, 16], sizes = [8, 8], strides = [1, 1]} : vector<8x32xf32> to vector<8x8xf32>
    %cst_31 = arith.constant dense<0.000000e+00> : vector<8x8xf32>
    %76 = tpu.matmul %74, %75, %cst_31 {dimension_numbers = #tpu.dot_dimension_numbers<[1], [1], [0], [0], [0, 0, 1, 0], [], []>, precision = #tpu.contract_precision<fp32>} : vector<8x8xf32>, vector<8x8xf32>, vector<8x8xf32> -> vector<8x8xf32>
    %77 = vector.broadcast %27 : vector<1x8xf32> to vector<8x8xf32>
    %78 = arith.addf %76, %77 : vector<8x8xf32>
    %cst_32 = arith.constant dense<0xFF800000> : vector<8xf32>
    %79 = vector.multi_reduction <maximumf>, %78, %cst_32 [1] : vector<8x8xf32> to vector<8xf32>
    %80 = vector.shape_cast %79 : vector<8xf32> to vector<8x1xf32>
    %81 = vector.broadcast %80 : vector<8x1xf32> to vector<8x8xf32>
    %82 = arith.subf %78, %81 : vector<8x8xf32>
    %83 = math.exp %82 : vector<8x8xf32>
    %cst_33 = arith.constant dense<0.000000e+00> : vector<8xf32>
    %84 = vector.multi_reduction <add>, %83, %cst_33 [1] : vector<8x8xf32> to vector<8xf32>
    %85 = vector.shape_cast %84 : vector<8xf32> to vector<8x1xf32>
    %86 = tpu.reciprocal %85 : vector<8x1xf32> -> vector<8x1xf32>
    %87 = vector.broadcast %86 : vector<8x1xf32> to vector<8x8xf32>
    %88 = arith.mulf %83, %87 : vector<8x8xf32>
    %89 = vector.extract_strided_slice %39 {offsets = [0, 16], sizes = [8, 8], strides = [1, 1]} : vector<8x32xf32> to vector<8x8xf32>
    %cst_34 = arith.constant dense<0.000000e+00> : vector<8x8xf32>
    %90 = tpu.matmul %88, %89, %cst_34 {dimension_numbers = #tpu.dot_dimension_numbers<[1], [0], [0], [1], [0, 0, 1, 1], [], []>, precision = #tpu.contract_precision<fp32>} : vector<8x8xf32>, vector<8x8xf32>, vector<8x8xf32> -> vector<8x8xf32>
    %91 = vector.extract_strided_slice %37 {offsets = [0, 24], sizes = [8, 8], strides = [1, 1]} : vector<8x32xf32> to vector<8x8xf32>
    %92 = vector.extract_strided_slice %38 {offsets = [0, 24], sizes = [8, 8], strides = [1, 1]} : vector<8x32xf32> to vector<8x8xf32>
    %cst_35 = arith.constant dense<0.000000e+00> : vector<8x8xf32>
    %93 = tpu.matmul %91, %92, %cst_35 {dimension_numbers = #tpu.dot_dimension_numbers<[1], [1], [0], [0], [0, 0, 1, 0], [], []>, precision = #tpu.contract_precision<fp32>} : vector<8x8xf32>, vector<8x8xf32>, vector<8x8xf32> -> vector<8x8xf32>
    %94 = vector.broadcast %27 : vector<1x8xf32> to vector<8x8xf32>
    %95 = arith.addf %93, %94 : vector<8x8xf32>
    %cst_36 = arith.constant dense<0xFF800000> : vector<8xf32>
    %96 = vector.multi_reduction <maximumf>, %95, %cst_36 [1] : vector<8x8xf32> to vector<8xf32>
    %97 = vector.shape_cast %96 : vector<8xf32> to vector<8x1xf32>
    %98 = vector.broadcast %97 : vector<8x1xf32> to vector<8x8xf32>
    %99 = arith.subf %95, %98 : vector<8x8xf32>
    %100 = math.exp %99 : vector<8x8xf32>
    %cst_37 = arith.constant dense<0.000000e+00> : vector<8xf32>
    %101 = vector.multi_reduction <add>, %100, %cst_37 [1] : vector<8x8xf32> to vector<8xf32>
    %102 = vector.shape_cast %101 : vector<8xf32> to vector<8x1xf32>
    %103 = tpu.reciprocal %102 : vector<8x1xf32> -> vector<8x1xf32>
    %104 = vector.broadcast %103 : vector<8x1xf32> to vector<8x8xf32>
    %105 = arith.mulf %100, %104 : vector<8x8xf32>
    %106 = vector.extract_strided_slice %39 {offsets = [0, 24], sizes = [8, 8], strides = [1, 1]} : vector<8x32xf32> to vector<8x8xf32>
    %cst_38 = arith.constant dense<0.000000e+00> : vector<8x8xf32>
    %107 = tpu.matmul %105, %106, %cst_38 {dimension_numbers = #tpu.dot_dimension_numbers<[1], [0], [0], [1], [0, 0, 1, 1], [], []>, precision = #tpu.contract_precision<fp32>} : vector<8x8xf32>, vector<8x8xf32>, vector<8x8xf32> -> vector<8x8xf32>
    %108 = tpu.concatenate %56, %73, %90, %107 in 1 : vector<8x8xf32>, vector<8x8xf32>, vector<8x8xf32>, vector<8x8xf32> -> vector<8x32xf32>
    %c0_39 = arith.constant 0 : index
    %c0_40 = arith.constant 0 : index
    %c0_41 = arith.constant 0 : index
    %109 = vector.load %arg8[%c0_39, %c0_40, %c0_41] : memref<2x32x32xf32, #tpu.memory_space<vmem>>, vector<1x32x32xf32>
    %110 = vector.shape_cast %109 : vector<1x32x32xf32> to vector<32x32xf32>
    %cst_42 = arith.constant dense<0.000000e+00> : vector<8x32xf32>
    %111 = tpu.matmul %108, %110, %cst_42 {dimension_numbers = #tpu.dot_dimension_numbers<[1], [0], [0], [1], [0, 0, 1, 1], [], []>, precision = #tpu.contract_precision<fp32>} : vector<8x32xf32>, vector<32x32xf32>, vector<8x32xf32> -> vector<8x32xf32>
    %c0_43 = arith.constant 0 : index
    %c0_44 = arith.constant 0 : index
    %c0_45 = arith.constant 0 : index
    %112 = vector.load %arg9[%c0_43, %c0_44, %c0_45] : memref<2x1x32xf32, #tpu.memory_space<vmem>>, vector<1x1x32xf32>
    %113 = vector.shape_cast %112 : vector<1x1x32xf32> to vector<1x32xf32>
    %114 = vector.broadcast %113 : vector<1x32xf32> to vector<8x32xf32>
    %115 = arith.addf %111, %114 : vector<8x32xf32>
    %116 = arith.addf %25, %115 : vector<8x32xf32>
    %c0_46 = arith.constant 0 : index
    %c0_47 = arith.constant 0 : index
    %c0_48 = arith.constant 0 : index
    %117 = vector.load %arg10[%c0_46, %c0_47, %c0_48] : memref<2x1x32xf32, #tpu.memory_space<vmem>>, vector<1x1x32xf32>
    %118 = vector.shape_cast %117 : vector<1x1x32xf32> to vector<1x32xf32>
    %c0_49 = arith.constant 0 : index
    %c0_50 = arith.constant 0 : index
    %c0_51 = arith.constant 0 : index
    %119 = vector.load %arg11[%c0_49, %c0_50, %c0_51] : memref<2x1x32xf32, #tpu.memory_space<vmem>>, vector<1x1x32xf32>
    %120 = vector.shape_cast %119 : vector<1x1x32xf32> to vector<1x32xf32>
    %cst_52 = arith.constant dense<0.000000e+00> : vector<8xf32>
    %121 = vector.multi_reduction <add>, %116, %cst_52 [1] : vector<8x32xf32> to vector<8xf32>
    %122 = vector.shape_cast %121 : vector<8xf32> to vector<8x1xf32>
    %cst_53 = arith.constant 3.200000e+01 : f32
    %123 = vector.broadcast %cst_53 : f32 to vector<8x1xf32>
    %124 = arith.divf %122, %123 : vector<8x1xf32>
    %125 = vector.broadcast %124 : vector<8x1xf32> to vector<8x32xf32>
    %126 = arith.subf %116, %125 : vector<8x32xf32>
    %127 = arith.mulf %126, %126 : vector<8x32xf32>
    %cst_54 = arith.constant dense<0.000000e+00> : vector<8xf32>
    %128 = vector.multi_reduction <add>, %127, %cst_54 [1] : vector<8x32xf32> to vector<8xf32>
    %129 = vector.shape_cast %128 : vector<8xf32> to vector<8x1xf32>
    %cst_55 = arith.constant 3.200000e+01 : f32
    %130 = vector.broadcast %cst_55 : f32 to vector<8x1xf32>
    %131 = arith.divf %129, %130 : vector<8x1xf32>
    %132 = vector.broadcast %124 : vector<8x1xf32> to vector<8x32xf32>
    %133 = arith.subf %116, %132 : vector<8x32xf32>
    %cst_56 = arith.constant 9.99999974E-6 : f32
    %134 = vector.broadcast %cst_56 : f32 to vector<8x1xf32>
    %135 = arith.addf %131, %134 : vector<8x1xf32>
    %136 = math.rsqrt %135 : vector<8x1xf32>
    %137 = vector.broadcast %136 : vector<8x1xf32> to vector<8x32xf32>
    %138 = arith.mulf %133, %137 : vector<8x32xf32>
    %139 = vector.broadcast %118 : vector<1x32xf32> to vector<8x32xf32>
    %140 = arith.mulf %138, %139 : vector<8x32xf32>
    %141 = vector.broadcast %120 : vector<1x32xf32> to vector<8x32xf32>
    %142 = arith.addf %140, %141 : vector<8x32xf32>
    %c0_57 = arith.constant 0 : index
    %c0_58 = arith.constant 0 : index
    %c0_59 = arith.constant 0 : index
    %143 = vector.load %arg12[%c0_57, %c0_58, %c0_59] : memref<2x32x128xf32, #tpu.memory_space<vmem>>, vector<1x32x128xf32>
    %144 = vector.shape_cast %143 : vector<1x32x128xf32> to vector<32x128xf32>
    %cst_60 = arith.constant dense<0.000000e+00> : vector<8x128xf32>
    %145 = tpu.matmul %142, %144, %cst_60 {dimension_numbers = #tpu.dot_dimension_numbers<[1], [0], [0], [1], [0, 0, 1, 1], [], []>, precision = #tpu.contract_precision<fp32>} : vector<8x32xf32>, vector<32x128xf32>, vector<8x128xf32> -> vector<8x128xf32>
    %c0_61 = arith.constant 0 : index
    %c0_62 = arith.constant 0 : index
    %c0_63 = arith.constant 0 : index
    %146 = vector.load %arg13[%c0_61, %c0_62, %c0_63] : memref<2x1x128xf32, #tpu.memory_space<vmem>>, vector<1x1x128xf32>
    %147 = vector.shape_cast %146 : vector<1x1x128xf32> to vector<1x128xf32>
    %148 = vector.broadcast %147 : vector<1x128xf32> to vector<8x128xf32>
    %149 = arith.addf %145, %148 : vector<8x128xf32>
    %cst_64 = arith.constant 0.000000e+00 : f32
    %150 = vector.broadcast %cst_64 : f32 to vector<8x128xf32>
    %151 = arith.maximumf %149, %150 : vector<8x128xf32>
    %c0_65 = arith.constant 0 : index
    %c0_66 = arith.constant 0 : index
    %c0_67 = arith.constant 0 : index
    %152 = vector.load %arg14[%c0_65, %c0_66, %c0_67] : memref<2x128x32xf32, #tpu.memory_space<vmem>>, vector<1x128x32xf32>
    %153 = vector.shape_cast %152 : vector<1x128x32xf32> to vector<128x32xf32>
    %cst_68 = arith.constant dense<0.000000e+00> : vector<8x32xf32>
    %154 = tpu.matmul %151, %153, %cst_68 {dimension_numbers = #tpu.dot_dimension_numbers<[1], [0], [0], [1], [0, 0, 1, 1], [], []>, precision = #tpu.contract_precision<fp32>} : vector<8x128xf32>, vector<128x32xf32>, vector<8x32xf32> -> vector<8x32xf32>
    %c0_69 = arith.constant 0 : index
    %c0_70 = arith.constant 0 : index
    %c0_71 = arith.constant 0 : index
    %155 = vector.load %arg15[%c0_69, %c0_70, %c0_71] : memref<2x1x32xf32, #tpu.memory_space<vmem>>, vector<1x1x32xf32>
    %156 = vector.shape_cast %155 : vector<1x1x32xf32> to vector<1x32xf32>
    %157 = vector.broadcast %156 : vector<1x32xf32> to vector<8x32xf32>
    %158 = arith.addf %154, %157 : vector<8x32xf32>
    %159 = arith.addf %142, %158 : vector<8x32xf32>
    %c0_72 = arith.constant 0 : index
    %c0_73 = arith.constant 0 : index
    %c0_74 = arith.constant 0 : index
    %160 = vector.load %arg16[%c0_72, %c0_73, %c0_74] : memref<2x1x32xf32, #tpu.memory_space<vmem>>, vector<1x1x32xf32>
    %161 = vector.shape_cast %160 : vector<1x1x32xf32> to vector<1x32xf32>
    %c0_75 = arith.constant 0 : index
    %c0_76 = arith.constant 0 : index
    %c0_77 = arith.constant 0 : index
    %162 = vector.load %arg17[%c0_75, %c0_76, %c0_77] : memref<2x1x32xf32, #tpu.memory_space<vmem>>, vector<1x1x32xf32>
    %163 = vector.shape_cast %162 : vector<1x1x32xf32> to vector<1x32xf32>
    %cst_78 = arith.constant dense<0.000000e+00> : vector<8xf32>
    %164 = vector.multi_reduction <add>, %159, %cst_78 [1] : vector<8x32xf32> to vector<8xf32>
    %165 = vector.shape_cast %164 : vector<8xf32> to vector<8x1xf32>
    %cst_79 = arith.constant 3.200000e+01 : f32
    %166 = vector.broadcast %cst_79 : f32 to vector<8x1xf32>
    %167 = arith.divf %165, %166 : vector<8x1xf32>
    %168 = vector.broadcast %167 : vector<8x1xf32> to vector<8x32xf32>
    %169 = arith.subf %159, %168 : vector<8x32xf32>
    %170 = arith.mulf %169, %169 : vector<8x32xf32>
    %cst_80 = arith.constant dense<0.000000e+00> : vector<8xf32>
    %171 = vector.multi_reduction <add>, %170, %cst_80 [1] : vector<8x32xf32> to vector<8xf32>
    %172 = vector.shape_cast %171 : vector<8xf32> to vector<8x1xf32>
    %cst_81 = arith.constant 3.200000e+01 : f32
    %173 = vector.broadcast %cst_81 : f32 to vector<8x1xf32>
    %174 = arith.divf %172, %173 : vector<8x1xf32>
    %175 = vector.broadcast %167 : vector<8x1xf32> to vector<8x32xf32>
    %176 = arith.subf %159, %175 : vector<8x32xf32>
    %cst_82 = arith.constant 9.99999974E-6 : f32
    %177 = vector.broadcast %cst_82 : f32 to vector<8x1xf32>
    %178 = arith.addf %174, %177 : vector<8x1xf32>
    %179 = math.rsqrt %178 : vector<8x1xf32>
    %180 = vector.broadcast %179 : vector<8x1xf32> to vector<8x32xf32>
    %181 = arith.mulf %176, %180 : vector<8x32xf32>
    %182 = vector.broadcast %161 : vector<1x32xf32> to vector<8x32xf32>
    %183 = arith.mulf %181, %182 : vector<8x32xf32>
    %184 = vector.broadcast %163 : vector<1x32xf32> to vector<8x32xf32>
    %185 = arith.addf %183, %184 : vector<8x32xf32>
    %186 = vector.broadcast %29 : vector<8x1xf32> to vector<8x32xf32>
    %187 = arith.mulf %185, %186 : vector<8x32xf32>
    %c1 = arith.constant 1 : index
    %c0_83 = arith.constant 0 : index
    %c0_84 = arith.constant 0 : index
    %188 = vector.load %arg6[%c1, %c0_83, %c0_84] : memref<2x32x96xf32, #tpu.memory_space<vmem>>, vector<1x32x96xf32>
    %189 = vector.shape_cast %188 : vector<1x32x96xf32> to vector<32x96xf32>
    %cst_85 = arith.constant dense<0.000000e+00> : vector<8x96xf32>
    %190 = tpu.matmul %187, %189, %cst_85 {dimension_numbers = #tpu.dot_dimension_numbers<[1], [0], [0], [1], [0, 0, 1, 1], [], []>, precision = #tpu.contract_precision<fp32>} : vector<8x32xf32>, vector<32x96xf32>, vector<8x96xf32> -> vector<8x96xf32>
    %c1_86 = arith.constant 1 : index
    %c0_87 = arith.constant 0 : index
    %c0_88 = arith.constant 0 : index
    %191 = vector.load %arg7[%c1_86, %c0_87, %c0_88] : memref<2x1x96xf32, #tpu.memory_space<vmem>>, vector<1x1x96xf32>
    %192 = vector.shape_cast %191 : vector<1x1x96xf32> to vector<1x96xf32>
    %193 = vector.broadcast %192 : vector<1x96xf32> to vector<8x96xf32>
    %194 = arith.addf %190, %193 : vector<8x96xf32>
    %195 = vector.extract_strided_slice %194 {offsets = [0, 0], sizes = [8, 32], strides = [1, 1]} : vector<8x96xf32> to vector<8x32xf32>
    %196 = vector.extract_strided_slice %194 {offsets = [0, 32], sizes = [8, 32], strides = [1, 1]} : vector<8x96xf32> to vector<8x32xf32>
    %197 = vector.extract_strided_slice %194 {offsets = [0, 64], sizes = [8, 32], strides = [1, 1]} : vector<8x96xf32> to vector<8x32xf32>
    %198 = vector.extract_strided_slice %195 {offsets = [0, 0], sizes = [8, 8], strides = [1, 1]} : vector<8x32xf32> to vector<8x8xf32>
    %199 = vector.extract_strided_slice %196 {offsets = [0, 0], sizes = [8, 8], strides = [1, 1]} : vector<8x32xf32> to vector<8x8xf32>
    %cst_89 = arith.constant dense<0.000000e+00> : vector<8x8xf32>
    %200 = tpu.matmul %198, %199, %cst_89 {dimension_numbers = #tpu.dot_dimension_numbers<[1], [1], [0], [0], [0, 0, 1, 0], [], []>, precision = #tpu.contract_precision<fp32>} : vector<8x8xf32>, vector<8x8xf32>, vector<8x8xf32> -> vector<8x8xf32>
    %201 = vector.broadcast %27 : vector<1x8xf32> to vector<8x8xf32>
    %202 = arith.addf %200, %201 : vector<8x8xf32>
    %cst_90 = arith.constant dense<0xFF800000> : vector<8xf32>
    %203 = vector.multi_reduction <maximumf>, %202, %cst_90 [1] : vector<8x8xf32> to vector<8xf32>
    %204 = vector.shape_cast %203 : vector<8xf32> to vector<8x1xf32>
    %205 = vector.broadcast %204 : vector<8x1xf32> to vector<8x8xf32>
    %206 = arith.subf %202, %205 : vector<8x8xf32>
    %207 = math.exp %206 : vector<8x8xf32>
    %cst_91 = arith.constant dense<0.000000e+00> : vector<8xf32>
    %208 = vector.multi_reduction <add>, %207, %cst_91 [1] : vector<8x8xf32> to vector<8xf32>
    %209 = vector.shape_cast %208 : vector<8xf32> to vector<8x1xf32>
    %210 = tpu.reciprocal %209 : vector<8x1xf32> -> vector<8x1xf32>
    %211 = vector.broadcast %210 : vector<8x1xf32> to vector<8x8xf32>
    %212 = arith.mulf %207, %211 : vector<8x8xf32>
    %213 = vector.extract_strided_slice %197 {offsets = [0, 0], sizes = [8, 8], strides = [1, 1]} : vector<8x32xf32> to vector<8x8xf32>
    %cst_92 = arith.constant dense<0.000000e+00> : vector<8x8xf32>
    %214 = tpu.matmul %212, %213, %cst_92 {dimension_numbers = #tpu.dot_dimension_numbers<[1], [0], [0], [1], [0, 0, 1, 1], [], []>, precision = #tpu.contract_precision<fp32>} : vector<8x8xf32>, vector<8x8xf32>, vector<8x8xf32> -> vector<8x8xf32>
    %215 = vector.extract_strided_slice %195 {offsets = [0, 8], sizes = [8, 8], strides = [1, 1]} : vector<8x32xf32> to vector<8x8xf32>
    %216 = vector.extract_strided_slice %196 {offsets = [0, 8], sizes = [8, 8], strides = [1, 1]} : vector<8x32xf32> to vector<8x8xf32>
    %cst_93 = arith.constant dense<0.000000e+00> : vector<8x8xf32>
    %217 = tpu.matmul %215, %216, %cst_93 {dimension_numbers = #tpu.dot_dimension_numbers<[1], [1], [0], [0], [0, 0, 1, 0], [], []>, precision = #tpu.contract_precision<fp32>} : vector<8x8xf32>, vector<8x8xf32>, vector<8x8xf32> -> vector<8x8xf32>
    %218 = vector.broadcast %27 : vector<1x8xf32> to vector<8x8xf32>
    %219 = arith.addf %217, %218 : vector<8x8xf32>
    %cst_94 = arith.constant dense<0xFF800000> : vector<8xf32>
    %220 = vector.multi_reduction <maximumf>, %219, %cst_94 [1] : vector<8x8xf32> to vector<8xf32>
    %221 = vector.shape_cast %220 : vector<8xf32> to vector<8x1xf32>
    %222 = vector.broadcast %221 : vector<8x1xf32> to vector<8x8xf32>
    %223 = arith.subf %219, %222 : vector<8x8xf32>
    %224 = math.exp %223 : vector<8x8xf32>
    %cst_95 = arith.constant dense<0.000000e+00> : vector<8xf32>
    %225 = vector.multi_reduction <add>, %224, %cst_95 [1] : vector<8x8xf32> to vector<8xf32>
    %226 = vector.shape_cast %225 : vector<8xf32> to vector<8x1xf32>
    %227 = tpu.reciprocal %226 : vector<8x1xf32> -> vector<8x1xf32>
    %228 = vector.broadcast %227 : vector<8x1xf32> to vector<8x8xf32>
    %229 = arith.mulf %224, %228 : vector<8x8xf32>
    %230 = vector.extract_strided_slice %197 {offsets = [0, 8], sizes = [8, 8], strides = [1, 1]} : vector<8x32xf32> to vector<8x8xf32>
    %cst_96 = arith.constant dense<0.000000e+00> : vector<8x8xf32>
    %231 = tpu.matmul %229, %230, %cst_96 {dimension_numbers = #tpu.dot_dimension_numbers<[1], [0], [0], [1], [0, 0, 1, 1], [], []>, precision = #tpu.contract_precision<fp32>} : vector<8x8xf32>, vector<8x8xf32>, vector<8x8xf32> -> vector<8x8xf32>
    %232 = vector.extract_strided_slice %195 {offsets = [0, 16], sizes = [8, 8], strides = [1, 1]} : vector<8x32xf32> to vector<8x8xf32>
    %233 = vector.extract_strided_slice %196 {offsets = [0, 16], sizes = [8, 8], strides = [1, 1]} : vector<8x32xf32> to vector<8x8xf32>
    %cst_97 = arith.constant dense<0.000000e+00> : vector<8x8xf32>
    %234 = tpu.matmul %232, %233, %cst_97 {dimension_numbers = #tpu.dot_dimension_numbers<[1], [1], [0], [0], [0, 0, 1, 0], [], []>, precision = #tpu.contract_precision<fp32>} : vector<8x8xf32>, vector<8x8xf32>, vector<8x8xf32> -> vector<8x8xf32>
    %235 = vector.broadcast %27 : vector<1x8xf32> to vector<8x8xf32>
    %236 = arith.addf %234, %235 : vector<8x8xf32>
    %cst_98 = arith.constant dense<0xFF800000> : vector<8xf32>
    %237 = vector.multi_reduction <maximumf>, %236, %cst_98 [1] : vector<8x8xf32> to vector<8xf32>
    %238 = vector.shape_cast %237 : vector<8xf32> to vector<8x1xf32>
    %239 = vector.broadcast %238 : vector<8x1xf32> to vector<8x8xf32>
    %240 = arith.subf %236, %239 : vector<8x8xf32>
    %241 = math.exp %240 : vector<8x8xf32>
    %cst_99 = arith.constant dense<0.000000e+00> : vector<8xf32>
    %242 = vector.multi_reduction <add>, %241, %cst_99 [1] : vector<8x8xf32> to vector<8xf32>
    %243 = vector.shape_cast %242 : vector<8xf32> to vector<8x1xf32>
    %244 = tpu.reciprocal %243 : vector<8x1xf32> -> vector<8x1xf32>
    %245 = vector.broadcast %244 : vector<8x1xf32> to vector<8x8xf32>
    %246 = arith.mulf %241, %245 : vector<8x8xf32>
    %247 = vector.extract_strided_slice %197 {offsets = [0, 16], sizes = [8, 8], strides = [1, 1]} : vector<8x32xf32> to vector<8x8xf32>
    %cst_100 = arith.constant dense<0.000000e+00> : vector<8x8xf32>
    %248 = tpu.matmul %246, %247, %cst_100 {dimension_numbers = #tpu.dot_dimension_numbers<[1], [0], [0], [1], [0, 0, 1, 1], [], []>, precision = #tpu.contract_precision<fp32>} : vector<8x8xf32>, vector<8x8xf32>, vector<8x8xf32> -> vector<8x8xf32>
    %249 = vector.extract_strided_slice %195 {offsets = [0, 24], sizes = [8, 8], strides = [1, 1]} : vector<8x32xf32> to vector<8x8xf32>
    %250 = vector.extract_strided_slice %196 {offsets = [0, 24], sizes = [8, 8], strides = [1, 1]} : vector<8x32xf32> to vector<8x8xf32>
    %cst_101 = arith.constant dense<0.000000e+00> : vector<8x8xf32>
    %251 = tpu.matmul %249, %250, %cst_101 {dimension_numbers = #tpu.dot_dimension_numbers<[1], [1], [0], [0], [0, 0, 1, 0], [], []>, precision = #tpu.contract_precision<fp32>} : vector<8x8xf32>, vector<8x8xf32>, vector<8x8xf32> -> vector<8x8xf32>
    %252 = vector.broadcast %27 : vector<1x8xf32> to vector<8x8xf32>
    %253 = arith.addf %251, %252 : vector<8x8xf32>
    %cst_102 = arith.constant dense<0xFF800000> : vector<8xf32>
    %254 = vector.multi_reduction <maximumf>, %253, %cst_102 [1] : vector<8x8xf32> to vector<8xf32>
    %255 = vector.shape_cast %254 : vector<8xf32> to vector<8x1xf32>
    %256 = vector.broadcast %255 : vector<8x1xf32> to vector<8x8xf32>
    %257 = arith.subf %253, %256 : vector<8x8xf32>
    %258 = math.exp %257 : vector<8x8xf32>
    %cst_103 = arith.constant dense<0.000000e+00> : vector<8xf32>
    %259 = vector.multi_reduction <add>, %258, %cst_103 [1] : vector<8x8xf32> to vector<8xf32>
    %260 = vector.shape_cast %259 : vector<8xf32> to vector<8x1xf32>
    %261 = tpu.reciprocal %260 : vector<8x1xf32> -> vector<8x1xf32>
    %262 = vector.broadcast %261 : vector<8x1xf32> to vector<8x8xf32>
    %263 = arith.mulf %258, %262 : vector<8x8xf32>
    %264 = vector.extract_strided_slice %197 {offsets = [0, 24], sizes = [8, 8], strides = [1, 1]} : vector<8x32xf32> to vector<8x8xf32>
    %cst_104 = arith.constant dense<0.000000e+00> : vector<8x8xf32>
    %265 = tpu.matmul %263, %264, %cst_104 {dimension_numbers = #tpu.dot_dimension_numbers<[1], [0], [0], [1], [0, 0, 1, 1], [], []>, precision = #tpu.contract_precision<fp32>} : vector<8x8xf32>, vector<8x8xf32>, vector<8x8xf32> -> vector<8x8xf32>
    %266 = tpu.concatenate %214, %231, %248, %265 in 1 : vector<8x8xf32>, vector<8x8xf32>, vector<8x8xf32>, vector<8x8xf32> -> vector<8x32xf32>
    %c1_105 = arith.constant 1 : index
    %c0_106 = arith.constant 0 : index
    %c0_107 = arith.constant 0 : index
    %267 = vector.load %arg8[%c1_105, %c0_106, %c0_107] : memref<2x32x32xf32, #tpu.memory_space<vmem>>, vector<1x32x32xf32>
    %268 = vector.shape_cast %267 : vector<1x32x32xf32> to vector<32x32xf32>
    %cst_108 = arith.constant dense<0.000000e+00> : vector<8x32xf32>
    %269 = tpu.matmul %266, %268, %cst_108 {dimension_numbers = #tpu.dot_dimension_numbers<[1], [0], [0], [1], [0, 0, 1, 1], [], []>, precision = #tpu.contract_precision<fp32>} : vector<8x32xf32>, vector<32x32xf32>, vector<8x32xf32> -> vector<8x32xf32>
    %c1_109 = arith.constant 1 : index
    %c0_110 = arith.constant 0 : index
    %c0_111 = arith.constant 0 : index
    %270 = vector.load %arg9[%c1_109, %c0_110, %c0_111] : memref<2x1x32xf32, #tpu.memory_space<vmem>>, vector<1x1x32xf32>
    %271 = vector.shape_cast %270 : vector<1x1x32xf32> to vector<1x32xf32>
    %272 = vector.broadcast %271 : vector<1x32xf32> to vector<8x32xf32>
    %273 = arith.addf %269, %272 : vector<8x32xf32>
    %274 = arith.addf %187, %273 : vector<8x32xf32>
    %c1_112 = arith.constant 1 : index
    %c0_113 = arith.constant 0 : index
    %c0_114 = arith.constant 0 : index
    %275 = vector.load %arg10[%c1_112, %c0_113, %c0_114] : memref<2x1x32xf32, #tpu.memory_space<vmem>>, vector<1x1x32xf32>
    %276 = vector.shape_cast %275 : vector<1x1x32xf32> to vector<1x32xf32>
    %c1_115 = arith.constant 1 : index
    %c0_116 = arith.constant 0 : index
    %c0_117 = arith.constant 0 : index
    %277 = vector.load %arg11[%c1_115, %c0_116, %c0_117] : memref<2x1x32xf32, #tpu.memory_space<vmem>>, vector<1x1x32xf32>
    %278 = vector.shape_cast %277 : vector<1x1x32xf32> to vector<1x32xf32>
    %cst_118 = arith.constant dense<0.000000e+00> : vector<8xf32>
    %279 = vector.multi_reduction <add>, %274, %cst_118 [1] : vector<8x32xf32> to vector<8xf32>
    %280 = vector.shape_cast %279 : vector<8xf32> to vector<8x1xf32>
    %cst_119 = arith.constant 3.200000e+01 : f32
    %281 = vector.broadcast %cst_119 : f32 to vector<8x1xf32>
    %282 = arith.divf %280, %281 : vector<8x1xf32>
    %283 = vector.broadcast %282 : vector<8x1xf32> to vector<8x32xf32>
    %284 = arith.subf %274, %283 : vector<8x32xf32>
    %285 = arith.mulf %284, %284 : vector<8x32xf32>
    %cst_120 = arith.constant dense<0.000000e+00> : vector<8xf32>
    %286 = vector.multi_reduction <add>, %285, %cst_120 [1] : vector<8x32xf32> to vector<8xf32>
    %287 = vector.shape_cast %286 : vector<8xf32> to vector<8x1xf32>
    %cst_121 = arith.constant 3.200000e+01 : f32
    %288 = vector.broadcast %cst_121 : f32 to vector<8x1xf32>
    %289 = arith.divf %287, %288 : vector<8x1xf32>
    %290 = vector.broadcast %282 : vector<8x1xf32> to vector<8x32xf32>
    %291 = arith.subf %274, %290 : vector<8x32xf32>
    %cst_122 = arith.constant 9.99999974E-6 : f32
    %292 = vector.broadcast %cst_122 : f32 to vector<8x1xf32>
    %293 = arith.addf %289, %292 : vector<8x1xf32>
    %294 = math.rsqrt %293 : vector<8x1xf32>
    %295 = vector.broadcast %294 : vector<8x1xf32> to vector<8x32xf32>
    %296 = arith.mulf %291, %295 : vector<8x32xf32>
    %297 = vector.broadcast %276 : vector<1x32xf32> to vector<8x32xf32>
    %298 = arith.mulf %296, %297 : vector<8x32xf32>
    %299 = vector.broadcast %278 : vector<1x32xf32> to vector<8x32xf32>
    %300 = arith.addf %298, %299 : vector<8x32xf32>
    %c1_123 = arith.constant 1 : index
    %c0_124 = arith.constant 0 : index
    %c0_125 = arith.constant 0 : index
    %301 = vector.load %arg12[%c1_123, %c0_124, %c0_125] : memref<2x32x128xf32, #tpu.memory_space<vmem>>, vector<1x32x128xf32>
    %302 = vector.shape_cast %301 : vector<1x32x128xf32> to vector<32x128xf32>
    %cst_126 = arith.constant dense<0.000000e+00> : vector<8x128xf32>
    %303 = tpu.matmul %300, %302, %cst_126 {dimension_numbers = #tpu.dot_dimension_numbers<[1], [0], [0], [1], [0, 0, 1, 1], [], []>, precision = #tpu.contract_precision<fp32>} : vector<8x32xf32>, vector<32x128xf32>, vector<8x128xf32> -> vector<8x128xf32>
    %c1_127 = arith.constant 1 : index
    %c0_128 = arith.constant 0 : index
    %c0_129 = arith.constant 0 : index
    %304 = vector.load %arg13[%c1_127, %c0_128, %c0_129] : memref<2x1x128xf32, #tpu.memory_space<vmem>>, vector<1x1x128xf32>
    %305 = vector.shape_cast %304 : vector<1x1x128xf32> to vector<1x128xf32>
    %306 = vector.broadcast %305 : vector<1x128xf32> to vector<8x128xf32>
    %307 = arith.addf %303, %306 : vector<8x128xf32>
    %cst_130 = arith.constant 0.000000e+00 : f32
    %308 = vector.broadcast %cst_130 : f32 to vector<8x128xf32>
    %309 = arith.maximumf %307, %308 : vector<8x128xf32>
    %c1_131 = arith.constant 1 : index
    %c0_132 = arith.constant 0 : index
    %c0_133 = arith.constant 0 : index
    %310 = vector.load %arg14[%c1_131, %c0_132, %c0_133] : memref<2x128x32xf32, #tpu.memory_space<vmem>>, vector<1x128x32xf32>
    %311 = vector.shape_cast %310 : vector<1x128x32xf32> to vector<128x32xf32>
    %cst_134 = arith.constant dense<0.000000e+00> : vector<8x32xf32>
    %312 = tpu.matmul %309, %311, %cst_134 {dimension_numbers = #tpu.dot_dimension_numbers<[1], [0], [0], [1], [0, 0, 1, 1], [], []>, precision = #tpu.contract_precision<fp32>} : vector<8x128xf32>, vector<128x32xf32>, vector<8x32xf32> -> vector<8x32xf32>
    %c1_135 = arith.constant 1 : index
    %c0_136 = arith.constant 0 : index
    %c0_137 = arith.constant 0 : index
    %313 = vector.load %arg15[%c1_135, %c0_136, %c0_137] : memref<2x1x32xf32, #tpu.memory_space<vmem>>, vector<1x1x32xf32>
    %314 = vector.shape_cast %313 : vector<1x1x32xf32> to vector<1x32xf32>
    %315 = vector.broadcast %314 : vector<1x32xf32> to vector<8x32xf32>
    %316 = arith.addf %312, %315 : vector<8x32xf32>
    %317 = arith.addf %300, %316 : vector<8x32xf32>
    %c1_138 = arith.constant 1 : index
    %c0_139 = arith.constant 0 : index
    %c0_140 = arith.constant 0 : index
    %318 = vector.load %arg16[%c1_138, %c0_139, %c0_140] : memref<2x1x32xf32, #tpu.memory_space<vmem>>, vector<1x1x32xf32>
    %319 = vector.shape_cast %318 : vector<1x1x32xf32> to vector<1x32xf32>
    %c1_141 = arith.constant 1 : index
    %c0_142 = arith.constant 0 : index
    %c0_143 = arith.constant 0 : index
    %320 = vector.load %arg17[%c1_141, %c0_142, %c0_143] : memref<2x1x32xf32, #tpu.memory_space<vmem>>, vector<1x1x32xf32>
    %321 = vector.shape_cast %320 : vector<1x1x32xf32> to vector<1x32xf32>
    %cst_144 = arith.constant dense<0.000000e+00> : vector<8xf32>
    %322 = vector.multi_reduction <add>, %317, %cst_144 [1] : vector<8x32xf32> to vector<8xf32>
    %323 = vector.shape_cast %322 : vector<8xf32> to vector<8x1xf32>
    %cst_145 = arith.constant 3.200000e+01 : f32
    %324 = vector.broadcast %cst_145 : f32 to vector<8x1xf32>
    %325 = arith.divf %323, %324 : vector<8x1xf32>
    %326 = vector.broadcast %325 : vector<8x1xf32> to vector<8x32xf32>
    %327 = arith.subf %317, %326 : vector<8x32xf32>
    %328 = arith.mulf %327, %327 : vector<8x32xf32>
    %cst_146 = arith.constant dense<0.000000e+00> : vector<8xf32>
    %329 = vector.multi_reduction <add>, %328, %cst_146 [1] : vector<8x32xf32> to vector<8xf32>
    %330 = vector.shape_cast %329 : vector<8xf32> to vector<8x1xf32>
    %cst_147 = arith.constant 3.200000e+01 : f32
    %331 = vector.broadcast %cst_147 : f32 to vector<8x1xf32>
    %332 = arith.divf %330, %331 : vector<8x1xf32>
    %333 = vector.broadcast %325 : vector<8x1xf32> to vector<8x32xf32>
    %334 = arith.subf %317, %333 : vector<8x32xf32>
    %cst_148 = arith.constant 9.99999974E-6 : f32
    %335 = vector.broadcast %cst_148 : f32 to vector<8x1xf32>
    %336 = arith.addf %332, %335 : vector<8x1xf32>
    %337 = math.rsqrt %336 : vector<8x1xf32>
    %338 = vector.broadcast %337 : vector<8x1xf32> to vector<8x32xf32>
    %339 = arith.mulf %334, %338 : vector<8x32xf32>
    %340 = vector.broadcast %319 : vector<1x32xf32> to vector<8x32xf32>
    %341 = arith.mulf %339, %340 : vector<8x32xf32>
    %342 = vector.broadcast %321 : vector<1x32xf32> to vector<8x32xf32>
    %343 = arith.addf %341, %342 : vector<8x32xf32>
    %344 = vector.broadcast %29 : vector<8x1xf32> to vector<8x32xf32>
    %345 = arith.mulf %343, %344 : vector<8x32xf32>
    %c0_149 = arith.constant 0 : index
    %c0_150 = arith.constant 0 : index
    %c0_151 = arith.constant 0 : index
    %346 = vector.load %arg18[%c0_149, %c0_150, %c0_151] : memref<1x8x32xf32, #tpu.memory_space<vmem>>, vector<1x8x32xf32>
    %347 = vector.shape_cast %346 : vector<1x8x32xf32> to vector<8x32xf32>
    %348 = vector.shape_cast %345 : vector<8x32xf32> to vector<1x8x32xf32>
    tpu.vector_store %arg18[%c0_149, %c0_150, %c0_151], %348 {strides = array<i32>} : memref<1x8x32xf32, #tpu.memory_space<vmem>>, vector<1x8x32xf32>,
    return
  }
  func.func @transform_0(%arg0: i32) -> (i32, i32, i32) {
    %c0_i32 = arith.constant 0 : i32
    %c0_i32_0 = arith.constant 0 : i32
    %c0_i32_1 = arith.constant 0 : i32
    return %arg0, %c0_i32, %c0_i32_0 : i32, i32, i32
  }
  func.func @transform_1(%arg0: i32) -> (i32, i32, i32) {
    %c0_i32 = arith.constant 0 : i32
    %c0_i32_0 = arith.constant 0 : i32
    %c0_i32_1 = arith.constant 0 : i32
    return %arg0, %c0_i32, %c0_i32_0 : i32, i32, i32
  }
  func.func @transform_2(%arg0: i32) -> (i32, i32, i32) {
    %c0_i32 = arith.constant 0 : i32
    %c0_i32_0 = arith.constant 0 : i32
    %c0_i32_1 = arith.constant 0 : i32
    return %arg0, %c0_i32, %c0_i32_0 : i32, i32, i32
  }
  func.func @transform_3(%arg0: i32) -> (i32, i32) {
    %c0_i32 = arith.constant 0 : i32
    %c0_i32_0 = arith.constant 0 : i32
    %c0_i32_1 = arith.constant 0 : i32
    return %c0_i32, %c0_i32_0 : i32, i32
  }
  func.func @transform_4(%arg0: i32) -> (i32, i32) {
    %c0_i32 = arith.constant 0 : i32
    %c0_i32_0 = arith.constant 0 : i32
    %c0_i32_1 = arith.constant 0 : i32
    return %c0_i32, %c0_i32_0 : i32, i32
  }
  func.func @transform_5(%arg0: i32) -> (i32, i32, i32) {
    %c0_i32 = arith.constant 0 : i32
    %c0_i32_0 = arith.constant 0 : i32
    %c0_i32_1 = arith.constant 0 : i32
    %c0_i32_2 = arith.constant 0 : i32
    return %c0_i32, %c0_i32_0, %c0_i32_1 : i32, i32, i32
  }
  func.func @transform_6(%arg0: i32) -> (i32, i32, i32) {
    %c0_i32 = arith.constant 0 : i32
    %c0_i32_0 = arith.constant 0 : i32
    %c0_i32_1 = arith.constant 0 : i32
    %c0_i32_2 = arith.constant 0 : i32
    return %c0_i32, %c0_i32_0, %c0_i32_1 : i32, i32, i32
  }
  func.func @transform_7(%arg0: i32) -> (i32, i32, i32) {
    %c0_i32 = arith.constant 0 : i32
    %c0_i32_0 = arith.constant 0 : i32
    %c0_i32_1 = arith.constant 0 : i32
    %c0_i32_2 = arith.constant 0 : i32
    return %c0_i32, %c0_i32_0, %c0_i32_1 : i32, i32, i32
  }
  func.func @transform_8(%arg0: i32) -> (i32, i32, i32) {
    %c0_i32 = arith.constant 0 : i32
    %c0_i32_0 = arith.constant 0 : i32
    %c0_i32_1 = arith.constant 0 : i32
    %c0_i32_2 = arith.constant 0 : i32
    return %c0_i32, %c0_i32_0, %c0_i32_1 : i32, i32, i32
  }
  func.func @transform_9(%arg0: i32) -> (i32, i32, i32) {
    %c0_i32 = arith.constant 0 : i32
    %c0_i32_0 = arith.constant 0 : i32
    %c0_i32_1 = arith.constant 0 : i32
    %c0_i32_2 = arith.constant 0 : i32
    return %c0_i32, %c0_i32_0, %c0_i32_1 : i32, i32, i32
  }
  func.func @transform_10(%arg0: i32) -> (i32, i32, i32) {
    %c0_i32 = arith.constant 0 : i32
    %c0_i32_0 = arith.constant 0 : i32
    %c0_i32_1 = arith.constant 0 : i32
    %c0_i32_2 = arith.constant 0 : i32
    return %c0_i32, %c0_i32_0, %c0_i32_1 : i32, i32, i32
  }
  func.func @transform_11(%arg0: i32) -> (i32, i32, i32) {
    %c0_i32 = arith.constant 0 : i32
    %c0_i32_0 = arith.constant 0 : i32
    %c0_i32_1 = arith.constant 0 : i32
    %c0_i32_2 = arith.constant 0 : i32
    return %c0_i32, %c0_i32_0, %c0_i32_1 : i32, i32, i32
  }
  func.func @transform_12(%arg0: i32) -> (i32, i32, i32) {
    %c0_i32 = arith.constant 0 : i32
    %c0_i32_0 = arith.constant 0 : i32
    %c0_i32_1 = arith.constant 0 : i32
    %c0_i32_2 = arith.constant 0 : i32
    return %c0_i32, %c0_i32_0, %c0_i32_1 : i32, i32, i32
  }
  func.func @transform_13(%arg0: i32) -> (i32, i32, i32) {
    %c0_i32 = arith.constant 0 : i32
    %c0_i32_0 = arith.constant 0 : i32
    %c0_i32_1 = arith.constant 0 : i32
    %c0_i32_2 = arith.constant 0 : i32
    return %c0_i32, %c0_i32_0, %c0_i32_1 : i32, i32, i32
  }
  func.func @transform_14(%arg0: i32) -> (i32, i32, i32) {
    %c0_i32 = arith.constant 0 : i32
    %c0_i32_0 = arith.constant 0 : i32
    %c0_i32_1 = arith.constant 0 : i32
    %c0_i32_2 = arith.constant 0 : i32
    return %c0_i32, %c0_i32_0, %c0_i32_1 : i32, i32, i32
  }
  func.func @transform_15(%arg0: i32) -> (i32, i32, i32) {
    %c0_i32 = arith.constant 0 : i32
    %c0_i32_0 = arith.constant 0 : i32
    %c0_i32_1 = arith.constant 0 : i32
    %c0_i32_2 = arith.constant 0 : i32
    return %c0_i32, %c0_i32_0, %c0_i32_1 : i32, i32, i32
  }
  func.func @transform_16(%arg0: i32) -> (i32, i32, i32) {
    %c0_i32 = arith.constant 0 : i32
    %c0_i32_0 = arith.constant 0 : i32
    %c0_i32_1 = arith.constant 0 : i32
    %c0_i32_2 = arith.constant 0 : i32
    return %c0_i32, %c0_i32_0, %c0_i32_1 : i32, i32, i32
  }
  func.func @transform_17(%arg0: i32) -> (i32, i32, i32) {
    %c0_i32 = arith.constant 0 : i32
    %c0_i32_0 = arith.constant 0 : i32
    %c0_i32_1 = arith.constant 0 : i32
    return %arg0, %c0_i32, %c0_i32_0 : i32, i32, i32
  }
}

</mosaic_0001>

<bundles_post_ra>
// kernel: bert_forward.1
= control target key start
LH: loop header
LB: loop body
LE: loop exit
PB: predicated region body
PF: predicated region fallthrough
CT: control target
= control target key end

     0   :  { %s16931_s0 = inlined_call_operand.vmem [shape: f32[2,8,32], index: 0, kind: input, shape index: {}]   ;;  %s16932_s1 = inlined_call_operand.vmem [shape: f32[2,1,8], index: 1, kind: input, shape index: {}]   ;;  %s16933_s2 = inlined_call_operand.vmem [shape: f32[2,8,1], index: 2, kind: input, shape index: {}]   ;;  %s16934_s3 = inlined_call_operand.vmem [shape: f32[1,32], index: 3, kind: input, shape index: {}]   ;;  %s16935_s4 = inlined_call_operand.vmem [shape: f32[1,32], index: 4, kind: input, shape index: {}]   ;;  %s16936_s5 = inlined_call_operand.vmem [shape: f32[2,32,96], index: 5, kind: input, shape index: {}]   ;;  %s16937_s6 = inlined_call_operand.vmem [shape: f32[2,1,96], index: 6, kind: input, shape index: {}]   ;;  %s16938_s7 = inlined_call_operand.vmem [shape: f32[2,32,32], index: 7, kind: input, shape index: {}]   ;;  %s16939_s8 = inlined_call_operand.vmem [shape: f32[2,1,32], index: 8, kind: input, shape index: {}]   ;;  %s16940_s9 = inlined_call_operand.vmem [shape: f32[2,1,32], index: 9, kind: input, shape index: {}]   ;;  %s16941_s10 = inlined_call_operand.vmem [shape: f32[2,1,32], index: 10, kind: input, shape index: {}]   ;;  %s16942_s11 = inlined_call_operand.vmem [shape: f32[2,32,128], index: 11, kind: input, shape index: {}]   ;;  %s16943_s12 = inlined_call_operand.vmem [shape: f32[2,1,128], index: 12, kind: input, shape index: {}]   ;;  %s16944_s13 = inlined_call_operand.vmem [shape: f32[2,128,32], index: 13, kind: input, shape index: {}]   ;;  %s16945_s14 = inlined_call_operand.vmem [shape: f32[2,1,32], index: 14, kind: input, shape index: {}]   ;;  %s16946_s15 = inlined_call_operand.vmem [shape: f32[2,1,32], index: 15, kind: input, shape index: {}]   ;;  %s16947_s16 = inlined_call_operand.vmem [shape: f32[2,1,32], index: 16, kind: input, shape index: {}]   ;;  %s16948_s17 = inlined_call_operand.hbm [shape: f32[2,8,32], index: 17, kind: output, shape index: {}]  }
   0x1   :  { %16967 = sst [smem:[#allocation9_spill]] %s16931_s0 }
   0x2   :  { %16968 = sst [smem:[#allocation10_spill]] %s16932_s1 }
   0x3   :  { %16969 = sst [smem:[#allocation11_spill]] %s16933_s2 }
   0x4   :  { %16970 = sst [smem:[#allocation12_spill]] %s16934_s3 }
   0x5   :  { %22 = vsyncpa [#allocation3], 0 }
   0x6   :  { %24 = vsyncpa [#allocation3 + $0x1], 0  ;;  %s15468_s24 = smov 0   ;;  %s15470_s25 = smov 0  }
   0x7   :  { %s15472_s26 = smov 0   ;;  %s15474_s27 = smov 0  }
   0x8 LB: > { %16971 = sst [smem:[#allocation5_spill]] %s15353_s26  ;;  %s15489_s28 = sadd.s32 4294967295, %s15357_s27   ;;  %s15357_s27 = sphi %s15474_s27, %s16996_s27   ;;  %s15353_s26 = sphi %s15472_s26, %s16998_s26   ;;  %s15349_s25 = sphi %s15470_s25, %s17000_s25   ;;  %s15345_s24 = sphi %s15468_s24, %s16999_s24  }
   0x9   : > { %s12540_s29 = sadd.s32 4294967294, %s15357_s27   ;;  %s15493_s0 = sadd.s32 1, %s15357_s27  }
   0xa   : > { %16972 = sst [smem:[#allocation6_spill]] %s15493_s0  ;;  %s409_s30 = sadd.s32 1, %s15353_s26 }
   0xb   : > { %s406_s18 = ssub.s32 %s15357_s27, %s15493_s0  ;;  %p419_p0 = scmp.ne.s32.totalorder %s15353_s26, %s15349_s25 }
   0xc   : > { %p407_p1 = scmp.eq.s32.totalorder %s406_s18, 0  ;;  %p420_p2 = scmp.eq.s32.totalorder %s15489_s28, 1 }
   0xd   : > { %p425_p3 = scmp.ne.s32.totalorder %s15349_s25, %s15345_s24  ;;  %p426_p4 = scmp.eq.s32.totalorder %s12540_s29, 1 }
   0xe   : > { %s15504_s19 = scalar_select %p407_p1, %s15353_s26, %s409_s30  }
   0xf   : > { %p15506_p5 = por %p420_p2, %p419_p0  ;;  %p15510_p6 = por %p426_p4, %p425_p3 }
  0x10   : > { %16973 = sst [smem:[#allocation7_spill]] %s15504_s19  ;;  %p12543_p7 = scmp.ge.s32.totalorder %s15357_s27, 1 }
  0x11   : > { %s16975_s20 = scalar_select %p15510_p6, 1, 0 }
  0x12   : > { %p506_p8 = scmp.lt.s32.totalorder %s15357_s27, 3 }
  0x13   : > { %16976 = sst [smem:[#allocation8_spill]] %s16975_s20 }
  0x14   : > { %p507_p9 = pnand %p12543_p7, %p506_p8 }
  0x15   : > { %p564_p10 = scmp.lt.s32.totalorder (!%p507_p9), %s15489_s28, 1  ;;  %vm578_vm0 = vcmask (!%p507_p9), 261120   ;;  %s16977_s30 = sld [smem:[#allocation9_spill]] (!%p507_p9)  ;;  %v609_v7 = vld [vmem:[%s16936_s5] sm:$0xff] (!%p507_p9)  ;;  %v610_v8 = vld [vmem:[%s16936_s5 + $0x8] sm:$0xff] (!%p507_p9)  ;;  %v611_v9 = vld [vmem:[%s16936_s5 + $0x10] sm:$0xff] (!%p507_p9) }
  0x16   : > { %510 = sbr.rel (%p507_p9) target bundleno = 6344 (0x18c8), region = 88  ;;  %v15359_v10 = vmov (!%p507_p9), 0.0|0.0   ;;  %v624_v11 = vand.u32 (!%p507_p9), 4294901760, %v609_v7  ;;  %v627_v12 = vand.u32 (!%p507_p9), 4294901760, %v610_v8  ;;  %v612_v13 = vld [vmem:[%s16936_s5 + $0x18] sm:$0xff] (!%p507_p9)  ;;  %v630_v14 = vand.u32 (!%p507_p9), 4294901760, %v611_v9 }
  0x17   : > { %14478 = vmatprep.subr.bf16.mxu0 (!%p507_p9), %v15359_v10  ;;  %vm15360_vm1 = vmmov (!%p507_p9), 0   ;;  %v15361_v15 = vmov (!%p507_p9), 0.0   ;;  %v633_v16 = vand.u32 (!%p507_p9), 4294901760, %v612_v13  ;;  %s16978_s3 = sld [smem:[#allocation12_spill]] (!%p507_p9)  ;;  %v12548_v47 = vld [vmem:[%s16935_s4] ss:$0 sm:$0xff] (!%p507_p9) }
  0x18   : > { %13190 = vmatprep.mubr.msk.f32.mxu0 (!%p507_p9), %vm15360_vm1, %v15361_v15  ;;  %13248 = vmatprep.subr.mxu1 (!%p507_p9), %v15361_v15  ;;  %v15546_v17 = vpack.c.bf16 (!%p507_p9), %v627_v12, %v624_v11  ;;  %v704_v18 = vsub.f32 (!%p507_p9), %v609_v7, %v624_v11  ;;  %v711_v19 = vsub.f32 (!%p507_p9), %v610_v8, %v627_v12  ;;  %v12549_v56 = vld [vmem:[%s16937_s6] ss:$0 sm:$0xff] (!%p507_p9)  ;;  %s16962_s26 = smov (!%p507_p9), 120   ;;  %s16956_s0 = smov (!%p507_p9), 112   ;;  %vm1117_vm2 = vcmask (!%p507_p9), 64512  }
  0x19   : > { %13250 = vmatprep.mubr.msk.f32.mxu1 (!%p507_p9), %vm15360_vm1, %v15361_v15  ;;  %v718_v20 = vsub.f32 (!%p507_p9), %v611_v9, %v630_v14  ;;  %v725_v21 = vsub.f32 (!%p507_p9), %v612_v13, %v633_v16  ;;  %v15549_v22 = vpack.c.bf16 (!%p507_p9), %v633_v16, %v630_v14  ;;  %s16955_s19 = smov (!%p507_p9), 80   ;;  %s16954_s20 = smov (!%p507_p9), 104   ;;  %vm4795_vm3 = vcmask (!%p507_p9), 130048  }
  0x1a   : > { %14480 = vmatpush3.bf16.msra.mxu0 (!%p507_p9), %v15546_v17  ;;  %v705_v23 = vand.u32 (!%p507_p9), 4294901760, %v704_v18  ;;  %v712_v24 = vand.u32 (!%p507_p9), 4294901760, %v711_v19  ;;  %v14491_v37 = vpack.c.bf16 (!%p507_p9), %v711_v19, %v704_v18  ;;  %s16953_s23 = smov (!%p507_p9), 72   ;;  %s16958_s29 = smov (!%p507_p9), 48   ;;  %vm4797_vm4 = vcmask (!%p507_p9), 195584  }
  0x1b   : > { %14481 = vmatprep.subr.bf16.mxu0 (!%p507_p9), %v15359_v10  ;;  %v719_v29 = vand.u32 (!%p507_p9), 4294901760, %v718_v20  ;;  %v726_v30 = vand.u32 (!%p507_p9), 4294901760, %v725_v21  ;;  %v14494_v38 = vpack.c.bf16 (!%p507_p9), %v725_v21, %v718_v20  ;;  %s16981_s2 = sld [smem:[#allocation11_spill]] (!%p507_p9) }
  0x1c   : > { %v706_v25 = vsub.f32 (!%p507_p9), %v704_v18, %v705_v23  ;;  %v713_v26 = vsub.f32 (!%p507_p9), %v711_v19, %v712_v24  ;;  %v14503_v39 = vpack.c.bf16 (!%p507_p9), %v712_v24, %v705_v23 }
  0x1d   : > { %s15518_s21 = scalar_select %p564_p10, %s15489_s28, 1  ;;  %v720_v32 = vsub.f32 %v718_v20, %v719_v29  ;;  %v727_v33 = vsub.f32 %v725_v21, %v726_v30  ;;  %v14506_v40 = vpack.c.bf16 %v726_v30, %v719_v29  ;;  %v12547_v45 = vld [vmem:[%s16978_s3] ss:$0 sm:$0xff] }
  0x1e   : > { %14483 = vmatpush3.bf16.msra.mxu0 %v15549_v22  ;;  %v707_v27 = vand.u32 4294901760, %v706_v25  ;;  %v714_v28 = vand.u32 4294901760, %v713_v26  ;;  %s16966_s3 = smov 24  }
  0x1f   : > { %s16964_s22 = sshll.u32 %s15518_s21, 3  ;;  %14484 = vmatprep.subr.bf16.mxu0 %v15359_v10  ;;  %v721_v34 = vand.u32 4294901760, %v720_v32  ;;  %v728_v35 = vand.u32 4294901760, %v727_v33 }
  0x20   : > { %s567_s18 = scalar_lea.vmem %s16977_s30, %s16964_s22  ;;  %v14485_v31 = vpack.c.bf16 %v714_v28, %v707_v27  ;;  %s16961_s30 = smov 88  }
  0x21   : > { %v575_v0 = vld [vmem:[%s567_s18] sm:$0xff]  ;;  %v14488_v36 = vpack.c.bf16 %v728_v35, %v721_v34  ;;  %s16963_s18 = smov 96   ;;  %s16989_s22 = smov 64  }
  0x22   : > { %v579_v1 = vsel %vm578_vm0, %v575_v0, 0.0 }
  0x23   : > { %580 = vadd.xlane.f32.xlu0 %v579_v1 }
  0xb0   : > { %v581_v2 = vpop.xlane.xlu0 %580 }
  0xb1   : > { %v583_v3 = vmul.f32 0.03125, %v581_v2 }
  0xb3   : > { %v584_v4 = vsub.f32 %v575_v0, %v583_v3 }
  0xb5   : > { %v585_v5 = vmul.f32 %v584_v4, %v584_v4 }
  0xb7   : > { %v586_v6 = vsel %vm578_vm0, %v585_v5, 0.0 }
  0xb8   : > { %587 = vadd.xlane.f32.xlu0 %v586_v6 }
 0x145   : > { %v588_v41 = vpop.xlane.xlu0 %587 }
 0x146   : > { %v589_v42 = vmul.f32 0.03125, %v588_v41 }
 0x148   : > { %v590_v43 = vadd.f32 1e-05, %v589_v42 }
 0x14a   : > { %15252 = vrsqrt.f32 %v590_v43 }
 0x154   : > { %v15253_v44 = vpop.eup %15252 }
 0x155   : > { %v592_v46 = vmul.f32 %v15253_v44, %v584_v4 }
 0x157   : > { %v599_v48 = vmul.f32 %v12547_v45, %v592_v46 }
 0x159   : > { %v15560_v49 = vadd.f32 %v12548_v47, %v599_v48 }
 0x15b   : > { %v621_v50 = vsel %vm578_vm0, %v15560_v49, 0 }
 0x15c   : > { %v692_v51 = vand.u32 4294901760, %v621_v50 }
 0x15e   : > { %v693_v52 = vsub.f32 %v621_v50, %v692_v51 }
 0x160   : > { %v694_v53 = vand.u32 4294901760, %v693_v52 }
 0x162   : > { %v695_v54 = vsub.f32 %v693_v52, %v694_v53 }
 0x164   : > { %v696_v55 = vand.u32 4294901760, %v695_v54 }
 0x166   : > { %13191 = vmatmul.mubr.f32.vlgmr.msra.gmra.mrb[0].mxu0 %v696_v55 }
 0x167   : > { %14486 = vmatpush3.bf16.msra.mxu0 %v14485_v31  ;;  %13201 = vmatprep.mubr.msk.f32.mxu0 %vm15360_vm1, %v15361_v15 }
 0x168   : > { %14487 = vmatprep.subr.bf16.mxu0 %v15359_v10 }
 0x16b   : > { %14489 = vmatpush3.bf16.msra.mxu0 %v14488_v36 }
 0x16c   : > { %14490 = vmatprep.subr.bf16.mxu0 %v15359_v10 }
 0x16e   : > { %13202 = vmatmul.mubr.f32.vlgmr.msra.gmra.mrb[0].mxu0 %v692_v51 }
 0x16f   : > { %14492 = vmatpush3.bf16.msra.mxu0 %v14491_v37  ;;  %13212 = vmatprep.mubr.msk.f32.mxu0 %vm15360_vm1, %v15361_v15 }
 0x170   : > { %14493 = vmatprep.subr.bf16.mxu0 %v15359_v10 }
 0x173   : > { %14495 = vmatpush3.bf16.msra.mxu0 %v14494_v38 }
 0x174   : > { %14496 = vmatprep.subr.bf16.mxu0 %v15359_v10 }
 0x176   : > { %13213 = vmatmul.mubr.f32.vlgmr.msra.gmra.mrb[0].mxu0 %v693_v52 }
 0x177   : > { %14498 = vmatpush3.bf16.msra.mxu0 %v15546_v17  ;;  %13223 = vmatprep.mubr.msk.f32.mxu0 %vm15360_vm1, %v15361_v15 }
 0x178   : > { %14499 = vmatprep.subr.bf16.mxu0 %v15359_v10 }
 0x17b   : > { %14501 = vmatpush3.bf16.msra.mxu0 %v15549_v22 }
 0x17c   : > { %14502 = vmatprep.subr.bf16.mxu0 %v15359_v10 }
 0x17e   : > { %13224 = vmatmul.mubr.f32.vlgmr.msra.gmra.mrb[0].mxu0 %v694_v53 }
 0x17f   : > { %14504 = vmatpush3.bf16.msra.mxu0 %v14503_v39  ;;  %13234 = vmatprep.mubr.msk.f32.mxu0 %vm15360_vm1, %v15361_v15 }
 0x180   : > { %14505 = vmatprep.subr.bf16.mxu0 %v15359_v10 }
 0x183   : > { %14507 = vmatpush3.bf16.msra.mxu0 %v14506_v40 }
 0x184   : > { %14508 = vmatprep.subr.bf16.mxu0 %v15359_v10 }
 0x186   : > { %13235 = vmatmul.mubr.f32.vlgmr.msra.gmra.mrb[0].mxu0 %v692_v51 }
 0x187   : > { %14510 = vmatpush3.bf16.msra.mxu0 %v15546_v17  ;;  %13245 = vmatprep.mubr.msk.f32.mxu0 %vm15360_vm1, %v15361_v15 }
 0x188   : > { %14511 = vmatprep.subr.bf16.mxu0 %v15359_v10 }
 0x18b   : > { %14513 = vmatpush3.bf16.msra.mxu0 %v15549_v22 }
 0x18c   : > { %13308 = vmatprep.subr.mxu0 %v15361_v15 }
 0x18e   : > { %13246 = vmatmul.mubr.f32.vlgmr.msra.gmra.mrb[0].mxu0 %v692_v51 }
 0x18f   : > { %13310 = vmatprep.mubr.msk.f32.mxu0 %vm15360_vm1, %v15361_v15 }
 0x261   : > { %v1104_v57 = vpop.f32.mrb[0].mxu0 }
 0x262   : > { %v15593_v58 = vadd.f32 %v12549_v56, %v1104_v57  ;;  %v13247_v59 = vpop.f32.mrb[1].mxu0 }
 0x264   : > { %2033 = vrot.lane.b32.xlu0 %v15593_v58, %s16961_s30  ;;  %1115 = vrot.lane.b32.xlu1 %v15593_v58, %s16963_s18  ;;  %v1118_v60 = vsel %vm1117_vm2, %v15593_v58, 0  ;;  %s16983_s18 = smov 120   ;;  %s16991_s30 = smov 48  }
 0x265   : > { %v15611_v61 = vand.u32 4294901760, %v1118_v60 }
 0x267   : > { %v1189_v62 = vsub.f32 %v1118_v60, %v15611_v61 }
 0x268   : > { %2031 = vrot.lane.b32.xlu1 %v15593_v58, %s16962_s26  ;;  %s16984_s26 = smov 88  }
 0x269   : > { %v1190_v63 = vand.u32 4294901760, %v1189_v62 }
 0x26b   : > { %v1191_v4 = vsub.f32 %v1189_v62, %v1190_v63 }
 0x26c   : > { %2948 = vrot.lane.b32.xlu1 %v15593_v58, %s16956_s0  ;;  %s16957_s0 = smov 40  }
 0x26d   : > { %v1192_v12 = vand.u32 4294901760, %v1191_v4 }
 0x270   : > { %2950 = vrot.lane.b32.xlu1 %v15593_v58, %s16955_s19 }
 0x274   : > { %3865 = vrot.lane.b32.xlu1 %v15593_v58, %s16954_s20  ;;  %s16979_s20 = sld [smem:[#allocation10_spill]] }
 0x278   : > { %3867 = vrot.lane.b32.xlu1 %v15593_v58, %s16953_s23  ;;  %s16959_s23 = smov 56  }
 0x27a   : > { %s15712_s19 = scalar_lea.vmem %s16979_s20, %s15518_s21  ;;  %s16960_s20 = smov 64  }
 0x27b   : > { %v12550_v54 = vld [vmem:[%s15712_s19] ss:$0 sm:$0xff] }
 0x2d6   : > { %v2034_v0 = vpop.permute.xlu0 %2033  ;;  %v1116_v1 = vpop.permute.xlu1 %1115 }
 0x2d7   : > { %v2037_v2 = vsel %vm1117_vm2, %v2034_v0, 0  ;;  %v1120_v3 = vsel %vm1117_vm2, %v1116_v1, 0 }
 0x2d8   : > { %v15616_v5 = vand.u32 4294901760, %v2037_v2  ;;  %v1123_v6 = vand.u32 4294901760, %v1120_v3 }
 0x2da   : > { %v2117_v7 = vsub.f32 %v2037_v2, %v15616_v5  ;;  %v1200_v8 = vsub.f32 %v1120_v3, %v1123_v6  ;;  %13249 = vmatpush3.xpose.msra.mxu1 %v1123_v6  ;;  %13309 = vmatpush3.xpose.msra.mxu0 %v15616_v5  ;;  %v2032_v9 = vpop.permute.xlu1 %2031 }
 0x2db   : > { %v2035_v11 = vsel %vm1117_vm2, %v2032_v9, 0  ;;  %13253 = vmatprep.subr.mxu1 %v15361_v15  ;;  %13313 = vmatprep.subr.mxu0 %v15361_v15 }
 0x2dc   : > { %v1201_v13 = vand.u32 4294901760, %v1200_v8  ;;  %v15623_v14 = vand.u32 4294901760, %v2035_v11  ;;  %v2118_v16 = vand.u32 4294901760, %v2117_v7 }
 0x2dd   : > { %13251 = vmatmul.mubr.f32.vlgmr.msra.gmra.mrb[0].mxu1 %v1192_v12 }
 0x2de   : > { %v1202_v17 = vsub.f32 %v1200_v8, %v1201_v13  ;;  %v2106_v18 = vsub.f32 %v2035_v11, %v15623_v14  ;;  %13255 = vmatprep.mubr.msk.f32.mxu1 %vm15360_vm1, %v15361_v15  ;;  %v2119_v21 = vsub.f32 %v2117_v7, %v2118_v16  ;;  %v2949_v25 = vpop.permute.xlu1 %2948 }
 0x2df   : > { %v2952_v27 = vsel %vm1117_vm2, %v2949_v25, 0 }
 0x2e0   : > { %v1203_v19 = vand.u32 4294901760, %v1202_v17  ;;  %v2107_v20 = vand.u32 4294901760, %v2106_v18  ;;  %v2120_v24 = vand.u32 4294901760, %v2119_v21  ;;  %v3022_v29 = vand.u32 4294901760, %v2952_v27 }
 0x2e2   : > { %v2108_v22 = vsub.f32 %v2106_v18, %v2107_v20  ;;  %13254 = vmatpush3.xpose.msra.mxu1 %v1203_v19  ;;  %v2951_v26 = vpop.permute.xlu1 %2950  ;;  %v3023_v31 = vsub.f32 %v2952_v27, %v3022_v29 }
 0x2e3   : > { %13258 = vmatprep.subr.mxu1 %v15361_v15  ;;  %v2954_v28 = vsel %vm1117_vm2, %v2951_v26, 0 }
 0x2e4   : > { %v2109_v23 = vand.u32 4294901760, %v2108_v22  ;;  %v2957_v30 = vand.u32 4294901760, %v2954_v28  ;;  %v3024_v33 = vand.u32 4294901760, %v3023_v31 }
 0x2e5   : > { %13256 = vmatmul.mubr.f32.vlgmr.msra.gmra.mrb[0].mxu1 %v15611_v61 }
 0x2e6   : > { %13311 = vmatmul.mubr.f32.vlgmr.msra.gmra.mrb[2].mxu0 %v2109_v23  ;;  %13259 = vmatpush3.xpose.msra.mxu1 %v1200_v8  ;;  %v3034_v32 = vsub.f32 %v2954_v28, %v2957_v30  ;;  %v3025_v35 = vsub.f32 %v3023_v31, %v3024_v33  ;;  %v3866_v39 = vpop.permute.xlu1 %3865 }
 0x2e7   : > { %13314 = vmatpush3.xpose.msra.mxu0 %v2120_v24  ;;  %13260 = vmatprep.mubr.msk.f32.mxu1 %vm15360_vm1, %v15361_v15  ;;  %v3869_v41 = vsel %vm1117_vm2, %v3866_v39, 0 }
 0x2e8   : > { %13263 = vmatprep.subr.mxu1 %v15361_v15  ;;  %13315 = vmatprep.mubr.msk.f32.mxu0 %vm15360_vm1, %v15361_v15  ;;  %v3035_v34 = vand.u32 4294901760, %v3034_v32  ;;  %v3026_v37 = vand.u32 4294901760, %v3025_v35  ;;  %v3939_v43 = vand.u32 4294901760, %v3869_v41 }
 0x2e9   : > { %13318 = vmatprep.subr.mxu0 %v15361_v15 }
 0x2ea   : > { %v3036_v36 = vsub.f32 %v3034_v32, %v3035_v34  ;;  %v3868_v40 = vpop.permute.xlu1 %3867  ;;  %v3940_v45 = vsub.f32 %v3869_v41, %v3939_v43 }
 0x2eb   : > { %v3871_v42 = vsel %vm1117_vm2, %v3868_v40, 0 }
 0x2ec   : > { %v3037_v38 = vand.u32 4294901760, %v3036_v36  ;;  %v3874_v44 = vand.u32 4294901760, %v3871_v42  ;;  %v3941_v47 = vand.u32 4294901760, %v3940_v45 }
 0x2ed   : > { %13261 = vmatmul.mubr.f32.vlgmr.msra.gmra.mrb[0].mxu1 %v1189_v62 }
 0x2ee   : > { %13264 = vmatpush3.xpose.msra.mxu1 %v1123_v6  ;;  %13316 = vmatmul.mubr.f32.vlgmr.msra.gmra.mrb[2].mxu0 %v15623_v14  ;;  %v3951_v46 = vsub.f32 %v3871_v42, %v3874_v44  ;;  %v3942_v50 = vsub.f32 %v3940_v45, %v3941_v47 }
 0x2ef   : > { %13319 = vmatpush3.xpose.msra.mxu0 %v2117_v7  ;;  %13265 = vmatprep.mubr.msk.f32.mxu1 %vm15360_vm1, %v15361_v15 }
 0x2f0   : > { %13268 = vmatprep.subr.mxu1 %v15361_v15  ;;  %13320 = vmatprep.mubr.msk.f32.mxu0 %vm15360_vm1, %v15361_v15  ;;  %v3952_v48 = vand.u32 4294901760, %v3951_v46  ;;  %v3943_v52 = vand.u32 4294901760, %v3942_v50 }
 0x2f1   : > { %13323 = vmatprep.subr.mxu0 %v15361_v15 }
 0x2f2   : > { %v3953_v51 = vsub.f32 %v3951_v46, %v3952_v48 }
 0x2f4   : > { %v3954_v53 = vand.u32 4294901760, %v3953_v51 }
 0x2f5   : > { %13266 = vmatmul.mubr.f32.vlgmr.msra.gmra.mrb[0].mxu1 %v1190_v63 }
 0x2f6   : > { %13269 = vmatpush3.xpose.msra.mxu1 %v1201_v13  ;;  %13321 = vmatmul.mubr.f32.vlgmr.msra.gmra.mrb[2].mxu0 %v2106_v18 }
 0x2f7   : > { %13324 = vmatpush3.xpose.msra.mxu0 %v15616_v5  ;;  %13270 = vmatprep.mubr.msk.f32.mxu1 %vm15360_vm1, %v15361_v15 }
 0x2f8   : > { %13273 = vmatprep.subr.mxu1 %v15361_v15  ;;  %13325 = vmatprep.mubr.msk.f32.mxu0 %vm15360_vm1, %v15361_v15 }
 0x2f9   : > { %13328 = vmatprep.subr.mxu0 %v15361_v15 }
 0x2fd   : > { %13271 = vmatmul.mubr.f32.vlgmr.msra.gmra.mrb[0].mxu1 %v15611_v61 }
 0x2fe   : > { %13274 = vmatpush3.xpose.msra.mxu1 %v1123_v6  ;;  %13326 = vmatmul.mubr.f32.vlgmr.msra.gmra.mrb[2].mxu0 %v2107_v20 }
 0x2ff   : > { %13329 = vmatpush3.xpose.msra.mxu0 %v2118_v16  ;;  %13275 = vmatprep.mubr.msk.f32.mxu1 %vm15360_vm1, %v15361_v15 }
 0x300   : > { %13330 = vmatprep.mubr.msk.f32.mxu0 %vm15360_vm1, %v15361_v15  ;;  %13333 = vmatprep.subr.mxu0 %v15361_v15 }
 0x301   : > { %13278 = vmatprep.subr.mxu1 %v15361_v15 }
 0x305   : > { %13276 = vmatmul.mubr.f32.vlgmr.msra.gmra.mrb[0].mxu1 %v15611_v61 }
 0x306   : > { %13331 = vmatmul.mubr.f32.vlgmr.msra.gmra.mrb[2].mxu0 %v15623_v14  ;;  %13280 = vmatprep.mubr.msk.f32.mxu1 %vm15360_vm1, %v15361_v15 }
 0x307   : > { %13334 = vmatpush3.xpose.msra.mxu0 %v15616_v5  ;;  %13335 = vmatprep.mubr.msk.f32.mxu0 %vm15360_vm1, %v15361_v15 }
 0x308   : > { %13368 = vmatprep.subr.mxu0 %v15361_v15 }
 0x30e   : > { %13336 = vmatmul.mubr.f32.vlgmr.msra.gmra.mrb[2].mxu0 %v15623_v14 }
 0x30f   : > { %13369 = vmatpush3.xpose.msra.mxu0 %v2957_v30  ;;  %13370 = vmatprep.mubr.msk.f32.mxu0 %vm15360_vm1, %v15361_v15 }
 0x310   : > { %13373 = vmatprep.subr.mxu0 %v15361_v15 }
 0x312   : > { %13371 = vmatmul.mubr.f32.vlgmr.msra.gmra.mrb[4].mxu0 %v3026_v37 }
 0x313   : > { %13374 = vmatpush3.xpose.msra.mxu0 %v3037_v38  ;;  %13375 = vmatprep.mubr.msk.f32.mxu0 %vm15360_vm1, %v15361_v15 }
 0x314   : > { %13378 = vmatprep.subr.mxu0 %v15361_v15 }
 0x31a   : > { %13376 = vmatmul.mubr.f32.vlgmr.msra.gmra.mrb[4].mxu0 %v3022_v29 }
 0x31b   : > { %13379 = vmatpush3.xpose.msra.mxu0 %v3034_v32  ;;  %13380 = vmatprep.mubr.msk.f32.mxu0 %vm15360_vm1, %v15361_v15 }
 0x31c   : > { %13383 = vmatprep.subr.mxu0 %v15361_v15 }
 0x322   : > { %13381 = vmatmul.mubr.f32.vlgmr.msra.gmra.mrb[4].mxu0 %v3023_v31 }
 0x323   : > { %13384 = vmatpush3.xpose.msra.mxu0 %v2957_v30  ;;  %13385 = vmatprep.mubr.msk.f32.mxu0 %vm15360_vm1, %v15361_v15 }
 0x324   : > { %13388 = vmatprep.subr.mxu0 %v15361_v15 }
 0x32a   : > { %13386 = vmatmul.mubr.f32.vlgmr.msra.gmra.mrb[4].mxu0 %v3024_v33 }
 0x32b   : > { %13389 = vmatpush3.xpose.msra.mxu0 %v3035_v34  ;;  %13390 = vmatprep.mubr.msk.f32.mxu0 %vm15360_vm1, %v15361_v15 }
 0x32c   : > { %13393 = vmatprep.subr.mxu0 %v15361_v15 }
 0x332   : > { %13391 = vmatmul.mubr.f32.vlgmr.msra.gmra.mrb[4].mxu0 %v3022_v29 }
 0x333   : > { %13394 = vmatpush3.xpose.msra.mxu0 %v2957_v30  ;;  %13395 = vmatprep.mubr.msk.f32.mxu0 %vm15360_vm1, %v15361_v15 }
 0x334   : > { %13428 = vmatprep.subr.mxu0 %v15361_v15 }
 0x33a   : > { %13396 = vmatmul.mubr.f32.vlgmr.msra.gmra.mrb[4].mxu0 %v3022_v29 }
 0x33b   : > { %13429 = vmatpush3.xpose.msra.mxu0 %v3874_v44  ;;  %13430 = vmatprep.mubr.msk.f32.mxu0 %vm15360_vm1, %v15361_v15 }
 0x33c   : > { %13433 = vmatprep.subr.mxu0 %v15361_v15 }
 0x33e   : > { %13431 = vmatmul.mubr.f32.vlgmr.msra.gmra.mrb[6].mxu0 %v3943_v52 }
 0x33f   : > { %13434 = vmatpush3.xpose.msra.mxu0 %v3954_v53  ;;  %13435 = vmatprep.mubr.msk.f32.mxu0 %vm15360_vm1, %v15361_v15 }
 0x340   : > { %13438 = vmatprep.subr.mxu0 %v15361_v15 }
 0x346   : > { %13436 = vmatmul.mubr.f32.vlgmr.msra.gmra.mrb[6].mxu0 %v3939_v43 }
 0x347   : > { %13439 = vmatpush3.xpose.msra.mxu0 %v3951_v46  ;;  %13440 = vmatprep.mubr.msk.f32.mxu0 %vm15360_vm1, %v15361_v15 }
 0x348   : > { %13443 = vmatprep.subr.mxu0 %v15361_v15 }
 0x34e   : > { %13441 = vmatmul.mubr.f32.vlgmr.msra.gmra.mrb[6].mxu0 %v3940_v45 }
 0x34f   : > { %13444 = vmatpush3.xpose.msra.mxu0 %v3874_v44  ;;  %13445 = vmatprep.mubr.msk.f32.mxu0 %vm15360_vm1, %v15361_v15 }
 0x350   : > { %13448 = vmatprep.subr.mxu0 %v15361_v15 }
 0x356   : > { %13446 = vmatmul.mubr.f32.vlgmr.msra.gmra.mrb[6].mxu0 %v3941_v47 }
 0x357   : > { %13449 = vmatpush3.xpose.msra.mxu0 %v3952_v48  ;;  %13450 = vmatprep.mubr.msk.f32.mxu0 %vm15360_vm1, %v15361_v15 }
 0x358   : > { %13453 = vmatprep.subr.mxu0 %v15361_v15 }
 0x35e   : > { %13451 = vmatmul.mubr.f32.vlgmr.msra.gmra.mrb[6].mxu0 %v3939_v43 }
 0x35f   : > { %13454 = vmatpush3.xpose.msra.mxu0 %v3874_v44  ;;  %13455 = vmatprep.mubr.msk.f32.mxu0 %vm15360_vm1, %v15361_v15 }
 0x360   : > { %14514 = vmatprep.subr.bf16.mxu0 %v15359_v10 }
 0x366   : > { %13456 = vmatmul.mubr.f32.vlgmr.msra.gmra.mrb[6].mxu0 %v3939_v43 }
 0x367   : > { %13496 = vmatprep.mubr.msk.f32.mxu0 %vm15360_vm1, %v15361_v15 }
 0x3d8   : > { %v1564_v55 = vpop.f32.mrb[0].mxu1 }
 0x3d9   : > { %v14983_v56 = vadd.f32 %v12550_v54, %v1564_v55  ;;  %v13277_v57 = vpop.f32.mrb[1].mxu1 }
 0x3db   : > { %v1568_v59 = vsel %vm1117_vm2, %v14983_v56, -inf }
 0x3dc   : > { %1569 = vmax.xlane.f32.xlu1 %v1568_v59 }
 0x3e1   : > { %v2481_v60 = vpop.f32.mrb[2].mxu0 }
 0x3e2   : > { %v14984_v61 = vadd.f32 %v12550_v54, %v2481_v60  ;;  %v13337_v62 = vpop.f32.mrb[3].mxu0 }
 0x3e4   : > { %v2485_v63 = vsel %vm1117_vm2, %v14984_v61, -inf }
 0x3e5   : > { %2486 = vmax.xlane.f32.xlu0 %v2485_v63 }
 0x40d   : > { %v3398_v0 = vpop.f32.mrb[4].mxu0 }
 0x40e   : > { %v14985_v1 = vadd.f32 %v12550_v54, %v3398_v0  ;;  %v13397_v2 = vpop.f32.mrb[5].mxu0 }
 0x410   : > { %v3402_v3 = vsel %vm1117_vm2, %v14985_v1, -inf }
 0x411   : > { %3403 = vmax.xlane.f32.xlu0 %v3402_v3 }
 0x439   : > { %v4315_v4 = vpop.f32.mrb[6].mxu0 }
 0x43a   : > { %v13457_v5 = vpop.f32.mrb[7].mxu0  ;;  %v14986_v17 = vadd.f32 %v12550_v54, %v4315_v4 }
 0x43c   : > { %v4319_v19 = vsel %vm1117_vm2, %v14986_v17, -inf }
 0x469   : > { %v1570_v6 = vpop.xlane.xlu1 %1569 }
 0x46a   : > { %v1571_v7 = vsub.f32 %v14983_v56, %v1570_v6 }
 0x46c   : > { %v1572_v8 = vmul.f32 1.442695, %v1571_v7 }
 0x46e   : > { %15254 = vpow2.f32 %v1572_v8 }
 0x472   : > { %v2487_v9 = vpop.xlane.xlu0 %2486 }
 0x473   : > { %v2488_v11 = vsub.f32 %v14984_v61, %v2487_v9 }
 0x475   : > { %v2489_v12 = vmul.f32 1.442695, %v2488_v11 }
 0x477   : > { %15256 = vpow2.f32 %v2489_v12 }
 0x478   : > { %v15255_v13 = vpop.eup %15254 }
 0x479   : > { %v1574_v14 = vsel %vm1117_vm2, %v15255_v13, 0.0 }
 0x47a   : > { %1575 = vadd.xlane.f32.xlu1 %v1574_v14 }
 0x481   : > { %v15257_v16 = vpop.eup %15256 }
 0x482   : > { %v2491_v18 = vsel %vm1117_vm2, %v15257_v16, 0.0 }
 0x483   : > { %2492 = vadd.xlane.f32.xlu0 %v2491_v18 }
 0x487   : > { %4320 = vmax.xlane.f32.xlu0 %v4319_v19 }
 0x48b   : > { %1579 = vrot.lane.b32.xlu1 %v15593_v58, %s16960_s20  ;;  %s16986_s20 = smov 80  }
 0x49d   : > { %2496 = vrot.lane.b32.xlu0 %v15593_v58, %s16959_s23  ;;  %s16987_s23 = smov 104  }
 0x49e   : > { %v3404_v20 = vpop.xlane.xlu0 %3403 }
 0x49f   : > { %v3405_v21 = vsub.f32 %v14985_v1, %v3404_v20 }
 0x4a1   : > { %v3406_v22 = vmul.f32 1.442695, %v3405_v21  ;;  %3413 = vrot.lane.b32.xlu0 %v15593_v58, %s16958_s29  ;;  %s15374_s29 = smov 16  }
 0x4a3   : > { %15258 = vpow2.f32 %v3406_v22 }
 0x4ad   : > { %v15727_v23 = vpop.eup %15258 }
 0x4ae   : > { %v3408_v24 = vsel %vm1117_vm2, %v15727_v23, 0.0 }
 0x4af   : > { %3409 = vadd.xlane.f32.xlu1 %v3408_v24 }
 0x4c0   : > { %4330 = vrot.lane.b32.xlu1 %v15593_v58, %s16957_s0  ;;  %s16965_s0 = smov 8  }
 0x507   : > { %v1576_v25 = vpop.xlane.xlu1 %1575 }
 0x508   : > { %15260 = vrcp.f32 %v1576_v25 }
 0x50b   : > { %v1580_v26 = vpop.permute.xlu1 %1579 }
 0x50c   : > { %v1586_v27 = vand.u32 4294901760, %v1580_v26 }
 0x50e   : > { %13279 = vmatpush3.msra.mxu1 %v1586_v27  ;;  %v1663_v31 = vsub.f32 %v1580_v26, %v1586_v27 }
 0x50f   : > { %13283 = vmatprep.subr.mxu1 %v15361_v15 }
 0x510   : > { %v2493_v28 = vpop.xlane.xlu0 %2492  ;;  %v1664_v36 = vand.u32 4294901760, %v1663_v31 }
 0x512   : > { %v15261_v29 = vpop.eup %15260  ;;  %v1665_v39 = vsub.f32 %v1663_v31, %v1664_v36 }
 0x513   : > { %v1578_v30 = vmul.f32 %v15261_v29, %v15255_v13 }
 0x514   : > { %v4321_v32 = vpop.xlane.xlu0 %4320  ;;  %v1666_v42 = vand.u32 4294901760, %v1665_v39  ;;  %v4801_v39 = vld [vmem:[%s16938_s7 + $0x10] sm:$0xff] }
 0x515   : > { %v4322_v33 = vsub.f32 %v14986_v17, %v4321_v32  ;;  %v1583_v34 = vsel %vm1117_vm2, %v1578_v30, 0 }
 0x516   : > { %v1651_v35 = vand.u32 4294901760, %v1583_v34 }
 0x517   : > { %v4323_v37 = vmul.f32 1.442695, %v4322_v33 }
 0x518   : > { %v1652_v38 = vsub.f32 %v1583_v34, %v1651_v35  ;;  %v2497_v48 = vpop.permute.xlu0 %2496 }
 0x519   : > { %15262 = vpow2.f32 %v4323_v37  ;;  %v2503_v51 = vand.u32 4294901760, %v2497_v48 }
 0x51a   : > { %v1653_v58 = vand.u32 4294901760, %v1652_v38  ;;  %15264 = vrcp.f32 %v2493_v28 }
 0x51b   : > { %v2580_v53 = vsub.f32 %v2497_v48, %v2503_v51 }
 0x51c   : > { %v1654_v40 = vsub.f32 %v1652_v38, %v1653_v58  ;;  %v3414_v1 = vpop.permute.xlu0 %3413 }
 0x51d   : > { %v2581_v55 = vand.u32 4294901760, %v2580_v53  ;;  %v3420_v3 = vand.u32 4294901760, %v3414_v1 }
 0x51e   : > { %v1655_v41 = vand.u32 4294901760, %v1654_v40  ;;  %v4802_v40 = vld [vmem:[%s16938_s7 + $0x18] sm:$0xff] }
 0x51f   : > { %v2582_v57 = vsub.f32 %v2580_v53, %v2581_v55  ;;  %v3497_v5 = vsub.f32 %v3414_v1, %v3420_v3 }
 0x520   : > { %13281 = vmatmul.mubr.f32.vlgmr.msra.gmra.mrb[2].mxu1 %v1655_v41  ;;  %v4820_v41 = vand.u32 4294901760, %v4801_v39 }
 0x521   : > { %13284 = vmatpush3.msra.mxu1 %v1666_v42  ;;  %13285 = vmatprep.mubr.msk.f32.mxu1 %vm15360_vm1, %v15361_v15  ;;  %v2583_v60 = vand.u32 4294901760, %v2582_v57  ;;  %v3498_v7 = vand.u32 4294901760, %v3497_v5  ;;  %v4823_v42 = vand.u32 4294901760, %v4802_v40 }
 0x522   : > { %13288 = vmatprep.subr.mxu1 %v15361_v15 }
 0x523   : > { %v15738_v43 = vpop.eup %15262  ;;  %v3499_v9 = vsub.f32 %v3497_v5, %v3498_v7 }
 0x524   : > { %v4325_v44 = vsel %vm1117_vm2, %v15738_v43, 0.0  ;;  %v15265_v45 = vpop.eup %15264 }
 0x525   : > { %4326 = vadd.xlane.f32.xlu0 %v4325_v44  ;;  %v2495_v46 = vmul.f32 %v15265_v45, %v15257_v16  ;;  %v3500_v12 = vand.u32 4294901760, %v3499_v9  ;;  %v14518_v45 = vpack.c.bf16 %v4823_v42, %v4820_v41 }
 0x527   : > { %v2500_v47 = vsel %vm1117_vm2, %v2495_v46, 0  ;;  %v4908_v46 = vsub.f32 %v4801_v39, %v4820_v41 }
 0x528   : > { %13286 = vmatmul.mubr.f32.vlgmr.msra.gmra.mrb[2].mxu1 %v1651_v35  ;;  %v2568_v50 = vand.u32 4294901760, %v2500_v47 }
 0x529   : > { %13289 = vmatpush3.msra.mxu1 %v1663_v31  ;;  %13290 = vmatprep.mubr.msk.f32.mxu1 %vm15360_vm1, %v15361_v15 }
 0x52a   : > { %13293 = vmatprep.subr.mxu1 %v15361_v15  ;;  %v2569_v52 = vsub.f32 %v2500_v47, %v2568_v50  ;;  %v4915_v47 = vsub.f32 %v4802_v40, %v4823_v42 }
 0x52c   : > { %v2570_v54 = vand.u32 4294901760, %v2569_v52 }
 0x52e   : > { %v2571_v56 = vsub.f32 %v2569_v52, %v2570_v54 }
 0x530   : > { %13291 = vmatmul.mubr.f32.vlgmr.msra.gmra.mrb[2].mxu1 %v1652_v38  ;;  %v2572_v59 = vand.u32 4294901760, %v2571_v56  ;;  %v4916_v56 = vand.u32 4294901760, %v4915_v47 }
 0x531   : > { %13294 = vmatpush3.msra.mxu1 %v1586_v27  ;;  %13295 = vmatprep.mubr.msk.f32.mxu1 %vm15360_vm1, %v15361_v15 }
 0x532   : > { %13298 = vmatprep.subr.mxu1 %v15361_v15 }
 0x538   : > { %13296 = vmatmul.mubr.f32.vlgmr.msra.gmra.mrb[2].mxu1 %v1653_v58 }
 0x539   : > { %13299 = vmatpush3.msra.mxu1 %v1664_v36  ;;  %13300 = vmatprep.mubr.msk.f32.mxu1 %vm15360_vm1, %v15361_v15  ;;  %v4800_v36 = vld [vmem:[%s16938_s7 + $0x8] sm:$0xff] }
 0x53a   : > { %13303 = vmatprep.subr.mxu1 %v15361_v15  ;;  %v4817_v38 = vand.u32 4294901760, %v4800_v36 }
 0x53c   : > { %v3410_v61 = vpop.xlane.xlu1 %3409  ;;  %v4901_v44 = vsub.f32 %v4800_v36, %v4817_v38 }
 0x53d   : > { %15266 = vrcp.f32 %v3410_v61 }
 0x540   : > { %13301 = vmatmul.mubr.f32.vlgmr.msra.gmra.mrb[2].mxu1 %v1651_v35  ;;  %v4331_v13 = vpop.permute.xlu1 %4330 }
 0x541   : > { %13304 = vmatpush3.msra.mxu1 %v1586_v27  ;;  %13305 = vmatprep.mubr.msk.f32.mxu1 %vm15360_vm1, %v15361_v15  ;;  %v4337_v14 = vand.u32 4294901760, %v4331_v13 }
 0x542   : > { %13338 = vmatprep.subr.mxu1 %v15361_v15 }
 0x543   : > { %v4414_v18 = vsub.f32 %v4331_v13, %v4337_v14 }
 0x545   : > { %v4415_v22 = vand.u32 4294901760, %v4414_v18 }
 0x547   : > { %v15267_v62 = vpop.eup %15266  ;;  %v4416_v25 = vsub.f32 %v4414_v18, %v4415_v22 }
 0x548   : > { %13306 = vmatmul.mubr.f32.vlgmr.msra.gmra.mrb[2].mxu1 %v1651_v35  ;;  %v3412_v63 = vmul.f32 %v15267_v62, %v15727_v23  ;;  %v4799_v35 = vld [vmem:[%s16938_s7] sm:$0xff] }
 0x549   : > { %13339 = vmatpush3.msra.mxu1 %v2503_v51  ;;  %13340 = vmatprep.mubr.msk.f32.mxu1 %vm15360_vm1, %v15361_v15  ;;  %v4417_v28 = vand.u32 4294901760, %v4416_v25  ;;  %v4814_v37 = vand.u32 4294901760, %v4799_v35 }
 0x54a   : > { %13343 = vmatprep.subr.mxu1 %v15361_v15  ;;  %v3417_v0 = vsel %vm1117_vm2, %v3412_v63, 0 }
 0x54b   : > { %v3485_v2 = vand.u32 4294901760, %v3417_v0  ;;  %v14515_v58 = vpack.c.bf16 %v4817_v38, %v4814_v37 }
 0x54c   : > { %13341 = vmatmul.mubr.f32.vlgmr.msra.gmra.mrb[4].mxu1 %v2572_v59 }
 0x54d   : > { %13344 = vmatpush3.msra.mxu1 %v2583_v60  ;;  %13345 = vmatprep.mubr.msk.f32.mxu1 %vm15360_vm1, %v15361_v15  ;;  %v3486_v4 = vsub.f32 %v3417_v0, %v3485_v2  ;;  %v4917_v60 = vsub.f32 %v4915_v47, %v4916_v56 }
 0x54e   : > { %13348 = vmatprep.subr.mxu1 %v15361_v15  ;;  %14516 = vmatpush3.bf16.msra.mxu0 %v14515_v58 }
 0x54f   : > { %v3487_v6 = vand.u32 4294901760, %v3486_v4  ;;  %14517 = vmatprep.subr.bf16.mxu0 %v15359_v10  ;;  %v4918_v0 = vand.u32 4294901760, %v4917_v60 }
 0x551   : > { %v3488_v8 = vsub.f32 %v3486_v4, %v3487_v6 }
 0x552   : > { %14519 = vmatpush3.bf16.msra.mxu0 %v14518_v45 }
 0x553   : > { %v3489_v11 = vand.u32 4294901760, %v3488_v8  ;;  %14520 = vmatprep.subr.bf16.mxu0 %v15359_v10 }
 0x554   : > { %13346 = vmatmul.mubr.f32.vlgmr.msra.gmra.mrb[4].mxu1 %v2568_v50 }
 0x555   : > { %13349 = vmatpush3.msra.mxu1 %v2580_v53  ;;  %13350 = vmatprep.mubr.msk.f32.mxu1 %vm15360_vm1, %v15361_v15 }
 0x556   : > { %13353 = vmatprep.subr.mxu1 %v15361_v15 }
 0x55c   : > { %13351 = vmatmul.mubr.f32.vlgmr.msra.gmra.mrb[4].mxu1 %v2569_v52 }
 0x55d   : > { %13354 = vmatpush3.msra.mxu1 %v2503_v51  ;;  %13355 = vmatprep.mubr.msk.f32.mxu1 %vm15360_vm1, %v15361_v15 }
 0x55e   : > { %13358 = vmatprep.subr.mxu1 %v15361_v15 }
 0x564   : > { %13356 = vmatmul.mubr.f32.vlgmr.msra.gmra.mrb[4].mxu1 %v2570_v54 }
 0x565   : > { %13359 = vmatpush3.msra.mxu1 %v2581_v55  ;;  %13360 = vmatprep.mubr.msk.f32.mxu1 %vm15360_vm1, %v15361_v15  ;;  %v4909_v55 = vand.u32 4294901760, %v4908_v46 }
 0x566   : > { %13363 = vmatprep.subr.mxu1 %v15361_v15 }
 0x567   : > { %v4910_v59 = vsub.f32 %v4908_v46, %v4909_v55 }
 0x569   : > { %v4911_v63 = vand.u32 4294901760, %v4910_v59 }
 0x56b   : > { %v14524_v1 = vpack.c.bf16 %v4918_v0, %v4911_v63 }
 0x56c   : > { %13361 = vmatmul.mubr.f32.vlgmr.msra.gmra.mrb[4].mxu1 %v2568_v50 }
 0x56d   : > { %13364 = vmatpush3.msra.mxu1 %v2503_v51  ;;  %13365 = vmatprep.mubr.msk.f32.mxu1 %vm15360_vm1, %v15361_v15 }
 0x56e   : > { %13398 = vmatprep.subr.mxu1 %v15361_v15 }
 0x574   : > { %13366 = vmatmul.mubr.f32.vlgmr.msra.gmra.mrb[4].mxu1 %v2568_v50  ;;  %v4902_v50 = vand.u32 4294901760, %v4901_v44 }
 0x575   : > { %13399 = vmatpush3.msra.mxu1 %v3420_v3  ;;  %13400 = vmatprep.mubr.msk.f32.mxu1 %vm15360_vm1, %v15361_v15 }
 0x576   : > { %13403 = vmatprep.subr.mxu1 %v15361_v15  ;;  %v4903_v52 = vsub.f32 %v4901_v44, %v4902_v50 }
 0x578   : > { %13401 = vmatmul.mubr.f32.vlgmr.msra.gmra.mrb[6].mxu1 %v3489_v11  ;;  %v4904_v54 = vand.u32 4294901760, %v4903_v52 }
 0x579   : > { %13404 = vmatpush3.msra.mxu1 %v3500_v12  ;;  %13405 = vmatprep.mubr.msk.f32.mxu1 %vm15360_vm1, %v15361_v15 }
 0x57a   : > { %13408 = vmatprep.subr.mxu1 %v15361_v15 }
 0x580   : > { %13406 = vmatmul.mubr.f32.vlgmr.msra.gmra.mrb[6].mxu1 %v3485_v2 }
 0x581   : > { %13409 = vmatpush3.msra.mxu1 %v3497_v5  ;;  %13410 = vmatprep.mubr.msk.f32.mxu1 %vm15360_vm1, %v15361_v15  ;;  %v14542_v5 = vpack.c.bf16 %v4916_v56, %v4909_v55 }
 0x582   : > { %13413 = vmatprep.subr.mxu1 %v15361_v15 }
 0x588   : > { %13411 = vmatmul.mubr.f32.vlgmr.msra.gmra.mrb[6].mxu1 %v3486_v4 }
 0x589   : > { %13414 = vmatpush3.msra.mxu1 %v3420_v3  ;;  %13415 = vmatprep.mubr.msk.f32.mxu1 %vm15360_vm1, %v15361_v15 }
 0x58a   : > { %13418 = vmatprep.subr.mxu1 %v15361_v15 }
 0x590   : > { %13416 = vmatmul.mubr.f32.vlgmr.msra.gmra.mrb[6].mxu1 %v3487_v6 }
 0x591   : > { %13419 = vmatpush3.msra.mxu1 %v3498_v7  ;;  %13420 = vmatprep.mubr.msk.f32.mxu1 %vm15360_vm1, %v15361_v15 }
 0x592   : > { %13423 = vmatprep.subr.mxu1 %v15361_v15 }
 0x598   : > { %13421 = vmatmul.mubr.f32.vlgmr.msra.gmra.mrb[6].mxu1 %v3485_v2 }
 0x599   : > { %13424 = vmatpush3.msra.mxu1 %v3420_v3  ;;  %13425 = vmatprep.mubr.msk.f32.mxu1 %vm15360_vm1, %v15361_v15  ;;  %v14530_v3 = vpack.c.bf16 %v4915_v47, %v4908_v46  ;;  %v5330_v46 = vld [vmem:[%s16942_s11 + $0x10] sm:$0xff] }
 0x59a   : > { %13458 = vmatprep.subr.mxu1 %v15361_v15 }
 0x5a0   : > { %13426 = vmatmul.mubr.f32.vlgmr.msra.gmra.mrb[6].mxu1 %v3485_v2 }
 0x5a1   : > { %13459 = vmatpush3.msra.mxu1 %v4337_v14  ;;  %13460 = vmatprep.mubr.msk.f32.mxu1 %vm15360_vm1, %v15361_v15 }
 0x5a2   : > { %13463 = vmatprep.subr.mxu1 %v15361_v15 }
 0x5b2   : > { %v4327_v16 = vpop.xlane.xlu0 %4326 }
 0x5b3   : > { %15268 = vrcp.f32 %v4327_v16 }
 0x5bd   : > { %v15269_v17 = vpop.eup %15268 }
 0x5be   : > { %v4329_v19 = vmul.f32 %v15269_v17, %v15738_v43  ;;  %v4894_v43 = vsub.f32 %v4799_v35, %v4814_v37 }
 0x5c0   : > { %v4334_v20 = vsel %vm1117_vm2, %v4329_v19, 0  ;;  %v4895_v48 = vand.u32 4294901760, %v4894_v43  ;;  %v14527_v2 = vpack.c.bf16 %v4901_v44, %v4894_v43 }
 0x5c1   : > { %v4402_v21 = vand.u32 4294901760, %v4334_v20 }
 0x5c2   : > { %v4896_v51 = vsub.f32 %v4894_v43, %v4895_v48  ;;  %v14539_v4 = vpack.c.bf16 %v4902_v50, %v4895_v48  ;;  %v5331_v50 = vld [vmem:[%s16942_s11 + $0x18] sm:$0xff] }
 0x5c3   : > { %v4403_v23 = vsub.f32 %v4334_v20, %v4402_v21  ;;  %v5352_v52 = vand.u32 4294901760, %v5331_v50 }
 0x5c4   : > { %v4897_v53 = vand.u32 4294901760, %v4896_v51  ;;  %v5349_v51 = vand.u32 4294901760, %v5330_v46 }
 0x5c5   : > { %v4404_v24 = vand.u32 4294901760, %v4403_v23 }
 0x5c6   : > { %v14521_v57 = vpack.c.bf16 %v4904_v54, %v4897_v53  ;;  %v15886_v56 = vsub.f32 %v5330_v46, %v5349_v51  ;;  %v15891_v59 = vpack.c.bf16 %v5352_v52, %v5349_v51 }
 0x5c7   : > { %v4405_v26 = vsub.f32 %v4403_v23, %v4404_v24 }
 0x5c9   : > { %v4406_v27 = vand.u32 4294901760, %v4405_v26 }
 0x5cb   : > { %13461 = vmatmul.mubr.f32.vlgmr.msra.gmra.mrb[8].mxu1 %v4406_v27 }
 0x5cc   : > { %13464 = vmatpush3.msra.mxu1 %v4417_v28  ;;  %13465 = vmatprep.mubr.msk.f32.mxu1 %vm15360_vm1, %v15361_v15 }
 0x5cd   : > { %13468 = vmatprep.subr.mxu1 %v15361_v15 }
 0x5d3   : > { %13466 = vmatmul.mubr.f32.vlgmr.msra.gmra.mrb[8].mxu1 %v4402_v21 }
 0x5d4   : > { %13469 = vmatpush3.msra.mxu1 %v4414_v18  ;;  %13470 = vmatprep.mubr.msk.f32.mxu1 %vm15360_vm1, %v15361_v15 }
 0x5d5   : > { %13473 = vmatprep.subr.mxu1 %v15361_v15 }
 0x5db   : > { %13471 = vmatmul.mubr.f32.vlgmr.msra.gmra.mrb[8].mxu1 %v4403_v23 }
 0x5dc   : > { %13474 = vmatpush3.msra.mxu1 %v4337_v14  ;;  %13475 = vmatprep.mubr.msk.f32.mxu1 %vm15360_vm1, %v15361_v15 }
 0x5dd   : > { %13478 = vmatprep.subr.mxu1 %v15361_v15 }
 0x5e3   : > { %13476 = vmatmul.mubr.f32.vlgmr.msra.gmra.mrb[8].mxu1 %v4404_v24  ;;  %v12551_v24 = vld [vmem:[%s16939_s8] ss:$0 sm:$0xff] }
 0x5e4   : > { %13479 = vmatpush3.msra.mxu1 %v4415_v22  ;;  %13480 = vmatprep.mubr.msk.f32.mxu1 %vm15360_vm1, %v15361_v15 }
 0x5e5   : > { %13483 = vmatprep.subr.mxu1 %v15361_v15 }
 0x5eb   : > { %13481 = vmatmul.mubr.f32.vlgmr.msra.gmra.mrb[8].mxu1 %v4402_v21 }
 0x5ec   : > { %13484 = vmatpush3.msra.mxu1 %v4337_v14  ;;  %13485 = vmatprep.mubr.msk.f32.mxu1 %vm15360_vm1, %v15361_v15 }
 0x5ed   : > { %14532 = vmatprep.subr.bf16.mxu1 %v15359_v10 }
 0x5f3   : > { %13486 = vmatmul.mubr.f32.vlgmr.msra.gmra.mrb[8].mxu1 %v4402_v21 }
 0x5f4   : > { %13529 = vmatprep.mubr.msk.f32.mxu1 %vm15360_vm1, %v15361_v15  ;;  %14534 = vmatpush3.bf16.msra.mxu1 %v14515_v58 }
 0x5f5   : > { %14535 = vmatprep.subr.bf16.mxu1 %v15359_v10 }
 0x5f8   : > { %14537 = vmatpush3.bf16.msra.mxu1 %v14518_v45 }
 0x5f9   : > { %14544 = vmatprep.subr.bf16.mxu1 %v15359_v10 }
 0x61b   : > { %v2027_v29 = vpop.f32.mrb[2].mxu1 }
 0x61c   : > { %v13307_v30 = vpop.f32.mrb[3].mxu1 }
 0x647   : > { %v2944_v31 = vpop.f32.mrb[4].mxu1 }
 0x648   : > { %4783 = vrot.lane.b32.xlu0 %v2944_v31, %s16965_s0  ;;  %v13367_v32 = vpop.f32.mrb[5].mxu1 }
 0x673   : > { %v3861_v33 = vpop.f32.mrb[6].mxu1 }
 0x674   : > { %4787 = vrot.lane.b32.xlu1 %v3861_v33, %s15374_s29  ;;  %v13427_v34 = vpop.f32.mrb[7].mxu1 }
 0x6ba   : > { %v4784_v6 = vpop.permute.xlu0 %4783 }
 0x6bb   : > { %v4794_v8 = vsel %vm1117_vm2, %v2027_v29, %v4784_v6 }
 0x6c6   : > { %v4778_v61 = vpop.f32.mrb[8].mxu1 }
 0x6c7   : > { %4791 = vrot.lane.b32.xlu1 %v4778_v61, %s16966_s3  ;;  %v13487_v62 = vpop.f32.mrb[9].mxu1  ;;  %s16980_s3 = sshll.u32 %s15518_s21, 3  ;;  %s16988_s21 = smov 72  }
 0x6c8   : > { %s574_s0 = scalar_lea.vmem %s16981_s2, %s16980_s3  ;;  %s16982_s3 = smov 96  }
 0x6e6   : > { %v4788_v7 = vpop.permute.xlu1 %4787 }
 0x6e7   : > { %v4796_v9 = vsel %vm4795_vm3, %v4794_v8, %v4788_v7 }
 0x739   : > { %v4792_v11 = vpop.permute.xlu1 %4791 }
 0x73a   : > { %v4798_v12 = vsel %vm4797_vm4, %v4796_v9, %v4792_v11 }
 0x73b   : > { %v4811_v13 = vsel %vm578_vm0, %v4798_v12, 0 }
 0x73c   : > { %v4882_v14 = vand.u32 4294901760, %v4811_v13 }
 0x73e   : > { %v4883_v16 = vsub.f32 %v4811_v13, %v4882_v14 }
 0x740   : > { %v4884_v17 = vand.u32 4294901760, %v4883_v16 }
 0x742   : > { %13530 = vmatmul.mubr.f32.vlgmr.msra.gmra.mrb[10].mxu1 %v4884_v17  ;;  %v4885_v18 = vsub.f32 %v4883_v16, %v4884_v17  ;;  %v5829_v17 = vld [vmem:[%s16944_s13 + $0x8] sm:$0xff] }
 0x743   : > { %14546 = vmatpush3.bf16.msra.mxu1 %v14515_v58  ;;  %13551 = vmatprep.mubr.msk.f32.mxu1 %vm15360_vm1, %v15361_v15 }
 0x744   : > { %14547 = vmatprep.subr.bf16.mxu1 %v15359_v10  ;;  %v4886_v19 = vand.u32 4294901760, %v4885_v18 }
 0x746   : > { %13497 = vmatmul.mubr.f32.vlgmr.msra.gmra.mrb[8].mxu0 %v4886_v19  ;;  %v5855_v19 = vand.u32 4294901760, %v5829_v17 }
 0x747   : > { %14522 = vmatpush3.bf16.msra.mxu0 %v14521_v57  ;;  %14549 = vmatpush3.bf16.msra.mxu1 %v14518_v45  ;;  %v5328_v45 = vld [vmem:[%s16942_s11] sm:$0xff]  ;;  %v15888_v57 = vsub.f32 %v5331_v50, %v5352_v52 }
 0x748   : > { %14523 = vmatprep.subr.bf16.mxu0 %v15359_v10  ;;  %13507 = vmatprep.mubr.msk.f32.mxu0 %vm15360_vm1, %v15361_v15  ;;  %v5343_v47 = vand.u32 4294901760, %v5328_v45 }
 0x749   : > { %14586 = vmatprep.subr.bf16.mxu1 %v15359_v10  ;;  %v14566_v12 = vpack.c.bf16 %v15888_v57, %v15886_v56 }
 0x74a   : > { %13552 = vmatmul.mubr.f32.vlgmr.msra.gmra.mrb[12].mxu1 %v4882_v14  ;;  %v15882_v54 = vsub.f32 %v5328_v45, %v5343_v47 }
 0x74b   : > { %14525 = vmatpush3.bf16.msra.mxu0 %v14524_v1  ;;  %13652 = vmatprep.mubr.msk.f32.mxu1 %vm15360_vm1, %v15361_v15 }
 0x74c   : > { %14526 = vmatprep.subr.bf16.mxu0 %v15359_v10  ;;  %v5424_v60 = vand.u32 4294901760, %v15882_v54 }
 0x74e   : > { %13508 = vmatmul.mubr.f32.vlgmr.msra.gmra.mrb[10].mxu0 %v4882_v14  ;;  %v5425_v62 = vsub.f32 %v15882_v54, %v5424_v60 }
 0x74f   : > { %14528 = vmatpush3.bf16.msra.mxu0 %v14527_v2  ;;  %13518 = vmatprep.mubr.msk.f32.mxu0 %vm15360_vm1, %v15361_v15  ;;  %v5438_v2 = vand.u32 4294901760, %v15886_v56 }
 0x750   : > { %14529 = vmatprep.subr.bf16.mxu0 %v15359_v10  ;;  %v5426_v0 = vand.u32 4294901760, %v5425_v62  ;;  %v12552_v62 = vld [vmem:[%s16940_s9] ss:$0 sm:$0xff] }
 0x753   : > { %14531 = vmatpush3.bf16.msra.mxu0 %v14530_v3  ;;  %v5445_v3 = vand.u32 4294901760, %v15888_v57 }
 0x754   : > { %14538 = vmatprep.subr.bf16.mxu0 %v15359_v10 }
 0x755   : > { %v5446_v6 = vsub.f32 %v15888_v57, %v5445_v3 }
 0x756   : > { %13519 = vmatmul.mubr.f32.vlgmr.msra.gmra.mrb[12].mxu0 %v4883_v16  ;;  %v5828_v16 = vld [vmem:[%s16944_s13] sm:$0xff] }
 0x757   : > { %14540 = vmatpush3.bf16.msra.mxu0 %v14539_v4  ;;  %13540 = vmatprep.mubr.msk.f32.mxu0 %vm15360_vm1, %v15361_v15  ;;  %v5447_v8 = vand.u32 4294901760, %v5446_v6  ;;  %v5852_v18 = vand.u32 4294901760, %v5828_v16 }
 0x758   : > { %14541 = vmatprep.subr.bf16.mxu0 %v15359_v10 }
 0x75b   : > { %14543 = vmatpush3.bf16.msra.mxu0 %v14542_v5  ;;  %v5439_v5 = vsub.f32 %v15886_v56, %v5438_v2  ;;  %v5839_v56 = vld [vmem:[%s16944_s13 + $0x58] sm:$0xff] }
 0x75c   : > { %14550 = vmatprep.subr.bf16.mxu0 %v15359_v10 }
 0x75d   : > { %v5440_v7 = vand.u32 4294901760, %v5439_v5 }
 0x75e   : > { %13541 = vmatmul.mubr.f32.vlgmr.msra.gmra.mrb[14].mxu0 %v4882_v14  ;;  %v15914_v14 = vpack.c.bf16 %v5445_v3, %v5438_v2 }
 0x75f   : > { %13562 = vmatprep.mubr.msk.f32.mxu0 %vm15360_vm1, %v15361_v15  ;;  %v15906_v9 = vpack.c.bf16 %v5447_v8, %v5440_v7 }
 0x815   : > { %v5136_v20 = vpop.f32.mrb[10].mxu1 }
 0x816   : > { %v13531_v21 = vpop.f32.mrb[11].mxu1 }
 0x817   : > { %v5831_v21 = vld [vmem:[%s16944_s13 + $0x18] sm:$0xff] }
 0x819   : > { %v4888_v22 = vpop.f32.mrb[8].mxu0 }
 0x81a   : > { %v13498_v23 = vpop.f32.mrb[9].mxu0  ;;  %v4889_v27 = vadd.f32 %v12551_v24, %v4888_v22  ;;  %v15928_v22 = vsub.f32 %v5828_v16, %v5852_v18 }
 0x81b   : > { %v15930_v23 = vsub.f32 %v5829_v17, %v5855_v19  ;;  %v5841_v17 = vld [vmem:[%s16944_s13 + $0x68] sm:$0xff] }
 0x81d   : > { %v5294_v25 = vpop.f32.mrb[12].mxu1 }
 0x81e   : > { %v13553_v26 = vpop.f32.mrb[13].mxu1 }
 0x821   : > { %v4979_v28 = vpop.f32.mrb[10].mxu0 }
 0x822   : > { %v4980_v29 = vadd.f32 %v4979_v28, %v4889_v27  ;;  %v13509_v30 = vpop.f32.mrb[11].mxu0  ;;  %v15936_v28 = vpack.c.bf16 %v5855_v19, %v5852_v18  ;;  %v5891_v19 = vand.u32 4294901760, %v5841_v17 }
 0x823   : > { %v5833_v30 = vld [vmem:[%s16944_s13 + $0x28] sm:$0xff] }
 0x824   : > { %14588 = vmatpush3.bf16.msra.mxu1 %v15936_v28 }
 0x825   : > { %14589 = vmatprep.subr.bf16.mxu1 %v15359_v10 }
 0x829   : > { %v5059_v31 = vpop.f32.mrb[12].mxu0 }
 0x82a   : > { %v5060_v32 = vadd.f32 %v5059_v31, %v4980_v29  ;;  %v13520_v33 = vpop.f32.mrb[13].mxu0  ;;  %v5832_v29 = vld [vmem:[%s16944_s13 + $0x20] sm:$0xff] }
 0x82b   : > { %v5864_v31 = vand.u32 4294901760, %v5832_v29 }
 0x82c   : > { %v5137_v34 = vadd.f32 %v5136_v20, %v5060_v32  ;;  %v5830_v20 = vld [vmem:[%s16944_s13 + $0x10] sm:$0xff]  ;;  %v5867_v32 = vand.u32 4294901760, %v5833_v30 }
 0x82d   : > { %v5858_v24 = vand.u32 4294901760, %v5830_v20  ;;  %v15946_v33 = vsub.f32 %v5832_v29, %v5864_v31 }
 0x82f   : > { %v15932_v26 = vsub.f32 %v5830_v20, %v5858_v24 }
 0x831   : > { %v5219_v35 = vpop.f32.mrb[14].mxu0 }
 0x832   : > { %v5220_v36 = vadd.f32 %v5219_v35, %v5137_v34  ;;  %v13542_v37 = vpop.f32.mrb[15].mxu0  ;;  %v15948_v34 = vsub.f32 %v5833_v30, %v5867_v32 }
 0x833   : > { %v5835_v37 = vld [vmem:[%s16944_s13 + $0x38] sm:$0xff] }
 0x834   : > { %v5295_v38 = vadd.f32 %v5294_v25, %v5220_v36  ;;  %v5861_v25 = vand.u32 4294901760, %v5831_v21  ;;  %v5834_v36 = vld [vmem:[%s16944_s13 + $0x30] sm:$0xff] }
 0x836   : > { %v5298_v58 = vadd.f32 %v5295_v38, %v15560_v49  ;;  %v5329_v49 = vld [vmem:[%s16942_s11 + $0x8] sm:$0xff]  ;;  %v15934_v27 = vsub.f32 %v5831_v21, %v5861_v25  ;;  %v15950_v35 = vpack.c.bf16 %v5861_v25, %v5858_v24  ;;  %v5870_v38 = vand.u32 4294901760, %v5834_v36  ;;  %v5842_v24 = vld [vmem:[%s16944_s13 + $0x70] sm:$0xff]  ;;  %v5843_v25 = vld [vmem:[%s16944_s13 + $0x78] sm:$0xff] }
 0x837   : > { %v5346_v48 = vand.u32 4294901760, %v5329_v49  ;;  %v6035_v21 = vsub.f32 %v5841_v17, %v5891_v19  ;;  %v5894_v30 = vand.u32 4294901760, %v5842_v24 }
 0x838   : > { %v5301_v39 = vsel %vm578_vm0, %v5298_v58, 0.0  ;;  %14591 = vmatpush3.bf16.msra.mxu1 %v15950_v35  ;;  %v5966_v17 = vand.u32 4294901760, %v15934_v27 }
 0x839   : > { %5302 = vadd.xlane.f32.xlu1 %v5301_v39  ;;  %v15880_v53 = vpack.c.bf16 %v5346_v48, %v5343_v47  ;;  %v15884_v55 = vsub.f32 %v5329_v49, %v5346_v48  ;;  %14592 = vmatprep.subr.bf16.mxu1 %v15359_v10  ;;  %v15960_v39 = vsub.f32 %v5834_v36, %v5870_v38 }
 0x83a   : > { %v6042_v36 = vsub.f32 %v5842_v24, %v5894_v30  ;;  %v5967_v24 = vsub.f32 %v15934_v27, %v5966_v17 }
 0x83b   : > { %14552 = vmatpush3.bf16.msra.mxu0 %v15880_v53  ;;  %v5431_v61 = vand.u32 4294901760, %v15884_v55  ;;  %v14563_v11 = vpack.c.bf16 %v15884_v55, %v15882_v54  ;;  %v14638_v54 = vpack.c.bf16 %v15934_v27, %v15932_v26 }
 0x83c   : > { %14553 = vmatprep.subr.bf16.mxu0 %v15359_v10 }
 0x83d   : > { %v5432_v63 = vsub.f32 %v15884_v55, %v5431_v61  ;;  %v15912_v13 = vpack.c.bf16 %v5431_v61, %v5424_v60  ;;  %v5838_v55 = vld [vmem:[%s16944_s13 + $0x50] sm:$0xff] }
 0x83f   : > { %14555 = vmatpush3.bf16.msra.mxu0 %v15891_v59  ;;  %v5433_v1 = vand.u32 4294901760, %v5432_v63 }
 0x840   : > { %14556 = vmatprep.subr.bf16.mxu0 %v15359_v10 }
 0x841   : > { %v15902_v4 = vpack.c.bf16 %v5433_v1, %v5426_v0  ;;  %v12553_v0 = vld [vmem:[%s16941_s10] ss:$0 sm:$0xff] }
 0x8c6   : > { %v5303_v40 = vpop.xlane.xlu1 %5302 }
 0x8c7   : > { %v5304_v41 = vmul.f32 0.03125, %v5303_v40 }
 0x8c9   : > { %v15863_v42 = vsub.f32 %v5298_v58, %v5304_v41  ;;  %v5873_v58 = vand.u32 4294901760, %v5835_v37  ;;  %v15964_v41 = vpack.c.bf16 %v5867_v32, %v5864_v31  ;;  %v5897_v31 = vand.u32 4294901760, %v5843_v25 }
 0x8cb   : > { %v5306_v43 = vmul.f32 %v15863_v42, %v15863_v42  ;;  %v15962_v40 = vsub.f32 %v5835_v37, %v5873_v58  ;;  %14594 = vmatpush3.bf16.msra.mxu1 %v15964_v41  ;;  %v15978_v48 = vpack.c.bf16 %v5873_v58, %v5870_v38  ;;  %v6049_v37 = vsub.f32 %v5843_v25, %v5897_v31 }
 0x8cc   : > { %14595 = vmatprep.subr.bf16.mxu1 %v15359_v10  ;;  %v5973_v25 = vand.u32 4294901760, %v15946_v33 }
 0x8cd   : > { %v5307_v44 = vsel %vm578_vm0, %v5306_v43, 0.0  ;;  %v5836_v43 = vld [vmem:[%s16944_s13 + $0x40] sm:$0xff]  ;;  %v14644_v57 = vpack.c.bf16 %v15962_v40, %v15960_v39  ;;  %v14656_v38 = vpack.c.bf16 %v6049_v37, %v6042_v36 }
 0x8ce   : > { %5308 = vadd.xlane.f32.xlu0 %v5307_v44  ;;  %v5837_v44 = vld [vmem:[%s16944_s13 + $0x48] sm:$0xff]  ;;  %v5876_v45 = vand.u32 4294901760, %v5836_v43 }
 0x8cf   : > { %v5879_v49 = vand.u32 4294901760, %v5837_v44  ;;  %14597 = vmatpush3.bf16.msra.mxu1 %v15978_v48 }
 0x8d0   : > { %v15974_v46 = vsub.f32 %v5836_v43, %v5876_v45  ;;  %14598 = vmatprep.subr.bf16.mxu1 %v15359_v10  ;;  %v16083_v43 = vpack.c.bf16 %v5897_v31, %v5894_v30  ;;  %v5968_v31 = vand.u32 4294901760, %v5967_v24 }
 0x8d1   : > { %v15976_v47 = vsub.f32 %v5837_v44, %v5879_v49  ;;  %v15982_v50 = vpack.c.bf16 %v5879_v49, %v5876_v45  ;;  %v6036_v45 = vand.u32 4294901760, %v6035_v21 }
 0x8d3   : > { %14600 = vmatpush3.bf16.msra.mxu1 %v15982_v50 }
 0x8d4   : > { %14601 = vmatprep.subr.bf16.mxu1 %v15359_v10 }
 0x95b   : > { %v5309_v51 = vpop.xlane.xlu0 %5308 }
 0x95c   : > { %v5310_v52 = vmul.f32 0.03125, %v5309_v51  ;;  %v6043_v51 = vand.u32 4294901760, %v6042_v36 }
 0x95e   : > { %v5311_v60 = vadd.f32 1e-05, %v5310_v52  ;;  %v6050_v52 = vand.u32 4294901760, %v6049_v37 }
 0x960   : > { %15270 = vrsqrt.f32 %v5311_v60 }
 0x96a   : > { %v15271_v61 = vpop.eup %15270 }
 0x96b   : > { %v5313_v63 = vmul.f32 %v15271_v61, %v15863_v42  ;;  %v14635_v42 = vpack.c.bf16 %v15930_v23, %v15928_v22  ;;  %v6037_v61 = vsub.f32 %v6035_v21, %v6036_v45 }
 0x96d   : > { %v5320_v1 = vmul.f32 %v12552_v62, %v5313_v63  ;;  %v16089_v62 = vpack.c.bf16 %v6050_v52, %v6043_v51 }
 0x96f   : > { %v15993_v2 = vadd.f32 %v12553_v0, %v5320_v1  ;;  %v6038_v0 = vand.u32 4294901760, %v6037_v61  ;;  %v6044_v1 = vsub.f32 %v6042_v36, %v6043_v51  ;;  %v5974_v36 = vsub.f32 %v15946_v33, %v5973_v25 }
 0x971   : > { %v5340_v3 = vsel %vm578_vm0, %v15993_v2, 0 }
 0x972   : > { %v5411_v5 = vand.u32 4294901760, %v5340_v3 }
 0x974   : > { %v5412_v6 = vsub.f32 %v5340_v3, %v5411_v5  ;;  %v6051_v3 = vsub.f32 %v6049_v37, %v6050_v52 }
 0x976   : > { %v5413_v7 = vand.u32 4294901760, %v5412_v6 }
 0x978   : > { %v5414_v8 = vsub.f32 %v5412_v6, %v5413_v7 }
 0x97a   : > { %v5415_v16 = vand.u32 4294901760, %v5414_v8 }
 0x97c   : > { %13563 = vmatmul.mubr.f32.vlgmr.msra.gmra.mrb[16].mxu0 %v5415_v16  ;;  %v12554_v16 = vld [vmem:[%s16943_s12] ss:$0 sm:$0xff] }
 0x97d   : > { %14558 = vmatpush3.bf16.msra.mxu0 %v15902_v4  ;;  %13573 = vmatprep.mubr.msk.f32.mxu0 %vm15360_vm1, %v15361_v15  ;;  %v5885_v4 = vand.u32 4294901760, %v5839_v56 }
 0x97e   : > { %14559 = vmatprep.subr.bf16.mxu0 %v15359_v10 }
 0x981   : > { %14561 = vmatpush3.bf16.msra.mxu0 %v15906_v9  ;;  %v14647_v9 = vpack.c.bf16 %v15976_v47, %v15974_v46 }
 0x982   : > { %14562 = vmatprep.subr.bf16.mxu0 %v15359_v10 }
 0x984   : > { %13574 = vmatmul.mubr.f32.vlgmr.msra.gmra.mrb[16].mxu0 %v5411_v5 }
 0x985   : > { %14564 = vmatpush3.bf16.msra.mxu0 %v14563_v11  ;;  %13584 = vmatprep.mubr.msk.f32.mxu0 %vm15360_vm1, %v15361_v15 }
 0x986   : > { %14565 = vmatprep.subr.bf16.mxu0 %v15359_v10 }
 0x989   : > { %14567 = vmatpush3.bf16.msra.mxu0 %v14566_v12  ;;  %v16054_v12 = vsub.f32 %v5839_v56, %v5885_v4  ;;  %v5952_v56 = vand.u32 4294901760, %v15930_v23 }
 0x98a   : > { %14568 = vmatprep.subr.bf16.mxu0 %v15359_v10 }
 0x98c   : > { %13585 = vmatmul.mubr.f32.vlgmr.msra.gmra.mrb[16].mxu0 %v5412_v6  ;;  %v6045_v6 = vand.u32 4294901760, %v6044_v1  ;;  %v6008_v1 = vand.u32 4294901760, %v15976_v47 }
 0x98d   : > { %14570 = vmatpush3.bf16.msra.mxu0 %v15880_v53  ;;  %13595 = vmatprep.mubr.msk.f32.mxu0 %vm15360_vm1, %v15361_v15 }
 0x98e   : > { %14571 = vmatprep.subr.bf16.mxu0 %v15359_v10 }
 0x991   : > { %14573 = vmatpush3.bf16.msra.mxu0 %v15891_v59 }
 0x992   : > { %14574 = vmatprep.subr.bf16.mxu0 %v15359_v10 }
 0x994   : > { %13596 = vmatmul.mubr.f32.vlgmr.msra.gmra.mrb[16].mxu0 %v5413_v7  ;;  %v6052_v7 = vand.u32 4294901760, %v6051_v3 }
 0x995   : > { %14576 = vmatpush3.bf16.msra.mxu0 %v15912_v13  ;;  %13606 = vmatprep.mubr.msk.f32.mxu0 %vm15360_vm1, %v15361_v15 }
 0x996   : > { %14577 = vmatprep.subr.bf16.mxu0 %v15359_v10  ;;  %v16093_v8 = vpack.c.bf16 %v6052_v7, %v6045_v6  ;;  %v6009_v7 = vsub.f32 %v15976_v47, %v6008_v1 }
 0x999   : > { %14579 = vmatpush3.bf16.msra.mxu0 %v15914_v14  ;;  %v5840_v14 = vld [vmem:[%s16944_s13 + $0x60] sm:$0xff] }
 0x99a   : > { %14580 = vmatprep.subr.bf16.mxu0 %v15359_v10  ;;  %v5888_v18 = vand.u32 4294901760, %v5840_v14 }
 0x99c   : > { %13607 = vmatmul.mubr.f32.vlgmr.msra.gmra.mrb[16].mxu0 %v5411_v5  ;;  %v6028_v20 = vsub.f32 %v5840_v14, %v5888_v18  ;;  %v16078_v58 = vpack.c.bf16 %v5891_v19, %v5888_v18  ;;  %v5959_v14 = vand.u32 4294901760, %v15932_v26 }
 0x99d   : > { %14582 = vmatpush3.bf16.msra.mxu0 %v15880_v53  ;;  %13617 = vmatprep.mubr.msk.f32.mxu0 %vm15360_vm1, %v15361_v15  ;;  %v14641_v53 = vpack.c.bf16 %v15948_v34, %v15946_v33 }
 0x99e   : > { %14583 = vmatprep.subr.bf16.mxu0 %v15359_v10  ;;  %v14653_v29 = vpack.c.bf16 %v6035_v21, %v6028_v20  ;;  %v6029_v44 = vand.u32 4294901760, %v6028_v20  ;;  %v5960_v21 = vsub.f32 %v15932_v26, %v5959_v14 }
 0x9a0   : > { %v16087_v49 = vpack.c.bf16 %v6036_v45, %v6029_v44  ;;  %v6030_v60 = vsub.f32 %v6028_v20, %v6029_v44  ;;  %v5961_v27 = vand.u32 4294901760, %v5960_v21  ;;  %v5987_v44 = vand.u32 4294901760, %v15960_v39 }
 0x9a1   : > { %14585 = vmatpush3.bf16.msra.mxu0 %v15891_v59  ;;  %v5882_v59 = vand.u32 4294901760, %v5838_v55  ;;  %v5994_v45 = vand.u32 4294901760, %v15962_v40 }
 0x9a2   : > { %14634 = vmatprep.subr.bf16.mxu0 %v15359_v10  ;;  %v6031_v63 = vand.u32 4294901760, %v6030_v60  ;;  %v5988_v52 = vsub.f32 %v15960_v39, %v5987_v44  ;;  %v14614_v61 = vpack.c.bf16 %v5968_v31, %v5961_v27  ;;  %v12559_v31 = vld [vmem:[%s16936_s5 + $0x28] sm:$0xff] }
 0x9a3   : > { %v16052_v11 = vsub.f32 %v5838_v55, %v5882_v59  ;;  %v16073_v32 = vpack.c.bf16 %v5885_v4, %v5882_v59  ;;  %v5945_v55 = vand.u32 4294901760, %v15928_v22  ;;  %v5953_v4 = vsub.f32 %v15930_v23, %v5952_v56 }
 0x9a4   : > { %13618 = vmatmul.mubr.f32.vlgmr.msra.gmra.mrb[16].mxu0 %v5411_v5  ;;  %v16091_v5 = vpack.c.bf16 %v6038_v0, %v6031_v63  ;;  %v14686_v23 = vpack.c.bf16 %v5966_v17, %v5959_v14  ;;  %v5995_v60 = vsub.f32 %v15962_v40, %v5994_v45  ;;  %v5975_v63 = vand.u32 4294901760, %v5974_v36 }
 0x9a5   : > { %14636 = vmatpush3.bf16.msra.mxu0 %v14635_v42  ;;  %13722 = vmatprep.mubr.msk.f32.mxu0 %vm15360_vm1, %v15361_v15  ;;  %v14650_v13 = vpack.c.bf16 %v16054_v12, %v16052_v11  ;;  %v5946_v59 = vsub.f32 %v15928_v22, %v5945_v55  ;;  %v5954_v20 = vand.u32 4294901760, %v5953_v4  ;;  %v6001_v0 = vand.u32 4294901760, %v15974_v46 }
 0x9a6   : > { %14637 = vmatprep.subr.bf16.mxu0 %v15359_v10  ;;  %14603 = vmatpush3.bf16.msra.mxu1 %v16073_v32  ;;  %v5989_v39 = vand.u32 4294901760, %v5988_v52  ;;  %v5996_v3 = vand.u32 4294901760, %v5995_v60  ;;  %v12561_v52 = vld [vmem:[%s16936_s5 + $0x38] sm:$0xff] }
 0x9a7   : > { %14604 = vmatprep.subr.bf16.mxu1 %v15359_v10  ;;  %v5947_v19 = vand.u32 4294901760, %v5946_v59  ;;  %v6002_v6 = vsub.f32 %v15974_v46, %v6001_v0 }
 0x9a9   : > { %14639 = vmatpush3.bf16.msra.mxu0 %v14638_v54  ;;  %v14611_v26 = vpack.c.bf16 %v5954_v20, %v5947_v19 }
 0x9aa   : > { %14640 = vmatprep.subr.bf16.mxu0 %v15359_v10  ;;  %14606 = vmatpush3.bf16.msra.mxu1 %v16078_v58 }
 0x9ab   : > { %14607 = vmatprep.subr.bf16.mxu1 %v15359_v10 }
 0x9ad   : > { %14642 = vmatpush3.bf16.msra.mxu0 %v14641_v53 }
 0x9ae   : > { %14643 = vmatprep.subr.bf16.mxu0 %v15359_v10  ;;  %14609 = vmatpush3.bf16.msra.mxu1 %v16083_v43 }
 0x9af   : > { %14610 = vmatprep.subr.bf16.mxu1 %v15359_v10 }
 0x9b1   : > { %14645 = vmatpush3.bf16.msra.mxu0 %v14644_v57 }
 0x9b2   : > { %14646 = vmatprep.subr.bf16.mxu0 %v15359_v10 }
 0x9b5   : > { %14648 = vmatpush3.bf16.msra.mxu0 %v14647_v9 }
 0x9b6   : > { %14649 = vmatprep.subr.bf16.mxu0 %v15359_v10 }
 0x9b9   : > { %14651 = vmatpush3.bf16.msra.mxu0 %v14650_v13  ;;  %v14683_v13 = vpack.c.bf16 %v5952_v56, %v5945_v55  ;;  %v6003_v55 = vand.u32 4294901760, %v6002_v6  ;;  %v6010_v56 = vand.u32 4294901760, %v6009_v7 }
 0x9ba   : > { %14652 = vmatprep.subr.bf16.mxu0 %v15359_v10 }
 0x9bb   : > { %v14623_v59 = vpack.c.bf16 %v6010_v56, %v6003_v55 }
 0x9bd   : > { %14654 = vmatpush3.bf16.msra.mxu0 %v14653_v29  ;;  %v5980_v29 = vand.u32 4294901760, %v15948_v34 }
 0x9be   : > { %14655 = vmatprep.subr.bf16.mxu0 %v15359_v10 }
 0x9bf   : > { %v5981_v37 = vsub.f32 %v15948_v34, %v5980_v29  ;;  %v14689_v51 = vpack.c.bf16 %v5980_v29, %v5973_v25  ;;  %v14692_v34 = vpack.c.bf16 %v5994_v45, %v5987_v44 }
 0x9c1   : > { %14657 = vmatpush3.bf16.msra.mxu0 %v14656_v38  ;;  %v5982_v33 = vand.u32 4294901760, %v5981_v37  ;;  %v6548_v37 = vand.u32 4294901760, %v12559_v31 }
 0x9c2   : > { %14682 = vmatprep.subr.bf16.mxu0 %v15359_v10 }
 0x9c3   : > { %v14617_v40 = vpack.c.bf16 %v5982_v33, %v5975_v63  ;;  %v6632_v45 = vsub.f32 %v12559_v31, %v6548_v37 }
 0x9c5   : > { %v6633_v33 = vand.u32 4294901760, %v6632_v45 }
 0xa77   : > { %v5823_v42 = vpop.f32.mrb[16].mxu0 }
 0xa78   : > { %v14987_v54 = vadd.f32 %v12554_v16, %v5823_v42  ;;  %v13619_v53 = vpop.f32.mrb[17].mxu0  ;;  %v14695_v16 = vpack.c.bf16 %v6008_v1, %v6001_v0  ;;  %v6015_v42 = vand.u32 4294901760, %v16052_v11 }
 0xa79   : > { %v14620_v53 = vpack.c.bf16 %v5996_v3, %v5989_v39  ;;  %v6634_v3 = vsub.f32 %v6632_v45, %v6633_v33 }
 0xa7a   : > { %v5827_v57 = vmax.f32 %v14987_v54, 0.0  ;;  %v6022_v54 = vand.u32 4294901760, %v16054_v12 }
 0xa7c   : > { %v16102_v9 = vand.u32 4294901760, %v5827_v57  ;;  %v6023_v46 = vsub.f32 %v16054_v12, %v6022_v54  ;;  %v14698_v47 = vpack.c.bf16 %v6022_v54, %v6015_v42  ;;  %v12555_v12 = vld [vmem:[%s16945_s14] ss:$0 sm:$0xff] }
 0xa7e   : > { %v16107_v18 = vsub.f32 %v5827_v57, %v16102_v9  ;;  %v6016_v57 = vsub.f32 %v16052_v11, %v6015_v42 }
 0xa80   : > { %v5934_v22 = vand.u32 4294901760, %v16107_v18  ;;  %13723 = vmatmul.mubr.f32.vlgmr.msra.gmra.mrb[18].mxu0 %v16107_v18  ;;  %v6017_v4 = vand.u32 4294901760, %v6016_v57 }
 0xa81   : > { %14684 = vmatpush3.bf16.msra.mxu0 %v14683_v13  ;;  %13792 = vmatprep.mubr.msk.f32.mxu0 %vm15360_vm1, %v15361_v15  ;;  %v6024_v13 = vand.u32 4294901760, %v6023_v46 }
 0xa82   : > { %v5935_v30 = vsub.f32 %v16107_v18, %v5934_v22  ;;  %14685 = vmatprep.subr.bf16.mxu0 %v15359_v10 }
 0xa83   : > { %v14626_v14 = vpack.c.bf16 %v6024_v13, %v6017_v4 }
 0xa84   : > { %v5936_v38 = vand.u32 4294901760, %v5935_v30 }
 0xa85   : > { %14687 = vmatpush3.bf16.msra.mxu0 %v14686_v23  ;;  %v608_v23 = vld [vmem:[%s574_s0] sm:$0xff]  ;;  %s16985_s0 = smov 112  }
 0xa86   : > { %13653 = vmatmul.mubr.f32.vlgmr.msra.gmra.mrb[14].mxu1 %v5936_v38  ;;  %14688 = vmatprep.subr.bf16.mxu0 %v15359_v10 }
 0xa87   : > { %14612 = vmatpush3.bf16.msra.mxu1 %v14611_v26  ;;  %13687 = vmatprep.mubr.msk.f32.mxu1 %vm15360_vm1, %v15361_v15 }
 0xa88   : > { %14613 = vmatprep.subr.bf16.mxu1 %v15359_v10 }
 0xa89   : > { %14690 = vmatpush3.bf16.msra.mxu0 %v14689_v51  ;;  %v12560_v51 = vld [vmem:[%s16936_s5 + $0x30] sm:$0xff] }
 0xa8a   : > { %14691 = vmatprep.subr.bf16.mxu0 %v15359_v10  ;;  %v6551_v60 = vand.u32 4294901760, %v12560_v51 }
 0xa8b   : > { %14615 = vmatpush3.bf16.msra.mxu1 %v14614_v61  ;;  %v6554_v61 = vand.u32 4294901760, %v12561_v52 }
 0xa8c   : > { %14616 = vmatprep.subr.bf16.mxu1 %v15359_v10  ;;  %v6639_v0 = vsub.f32 %v12560_v51, %v6551_v60 }
 0xa8d   : > { %14693 = vmatpush3.bf16.msra.mxu0 %v14692_v34  ;;  %v16228_v34 = vpack.c.bf16 %v6554_v61, %v6551_v60  ;;  %v6646_v1 = vsub.f32 %v12561_v52, %v6554_v61 }
 0xa8e   : > { %14694 = vmatprep.subr.bf16.mxu0 %v15359_v10  ;;  %v6640_v6 = vand.u32 4294901760, %v6639_v0 }
 0xa8f   : > { %14618 = vmatpush3.bf16.msra.mxu1 %v14617_v40  ;;  %v6647_v7 = vand.u32 4294901760, %v6646_v1 }
 0xa90   : > { %14619 = vmatprep.subr.bf16.mxu1 %v15359_v10  ;;  %v6641_v42 = vsub.f32 %v6639_v0, %v6640_v6 }
 0xa91   : > { %14696 = vmatpush3.bf16.msra.mxu0 %v14695_v16  ;;  %v6635_v16 = vand.u32 4294901760, %v6634_v3  ;;  %v6648_v54 = vsub.f32 %v6646_v1, %v6647_v7  ;;  %v14758_v4 = vpack.c.bf16 %v6647_v7, %v6640_v6 }
 0xa92   : > { %14697 = vmatprep.subr.bf16.mxu0 %v15359_v10  ;;  %v6642_v55 = vand.u32 4294901760, %v6641_v42 }
 0xa93   : > { %14621 = vmatpush3.bf16.msra.mxu1 %v14620_v53  ;;  %v6649_v56 = vand.u32 4294901760, %v6648_v54 }
 0xa94   : > { %14622 = vmatprep.subr.bf16.mxu1 %v15359_v10 }
 0xa95   : > { %14699 = vmatpush3.bf16.msra.mxu0 %v14698_v47  ;;  %v14740_v57 = vpack.c.bf16 %v6649_v56, %v6642_v55  ;;  %v14746_v47 = vpack.c.bf16 %v6646_v1, %v6639_v0 }
 0xa96   : > { %14700 = vmatprep.subr.bf16.mxu0 %v15359_v10 }
 0xa97   : > { %14624 = vmatpush3.bf16.msra.mxu1 %v14623_v59 }
 0xa98   : > { %14625 = vmatprep.subr.bf16.mxu1 %v15359_v10 }
 0xa99   : > { %14702 = vmatpush3.bf16.msra.mxu0 %v16087_v49 }
 0xa9a   : > { %14703 = vmatprep.subr.bf16.mxu0 %v15359_v10 }
 0xa9b   : > { %14627 = vmatpush3.bf16.msra.mxu1 %v14626_v14 }
 0xa9c   : > { %14628 = vmatprep.subr.bf16.mxu1 %v15359_v10 }
 0xa9d   : > { %14705 = vmatpush3.bf16.msra.mxu0 %v16089_v62 }
 0xa9e   : > { %14730 = vmatprep.subr.bf16.mxu0 %v15359_v10 }
 0xa9f   : > { %14630 = vmatpush3.bf16.msra.mxu1 %v16091_v5 }
 0xaa0   : > { %13793 = vmatmul.mubr.f32.vlgmr.msra.gmra.mrb[20].mxu0 %v16102_v9  ;;  %14631 = vmatprep.subr.bf16.mxu1 %v15359_v10 }
 0xaa1   : > { %13838 = vmatprep.mubr.msk.f32.mxu0 %vm15360_vm1, %v15361_v15 }
 0xaa3   : > { %14633 = vmatpush3.bf16.msra.mxu1 %v16093_v8 }
 0xaa4   : > { %14658 = vmatprep.subr.bf16.mxu1 %v15359_v10 }
 0xaa6   : > { %13688 = vmatmul.mubr.f32.vlgmr.msra.gmra.mrb[16].mxu1 %v16102_v9 }
 0xaa7   : > { %14660 = vmatpush3.bf16.msra.mxu1 %v15936_v28  ;;  %13757 = vmatprep.mubr.msk.f32.mxu1 %vm15360_vm1, %v15361_v15 }
 0xaa8   : > { %14661 = vmatprep.subr.bf16.mxu1 %v15359_v10 }
 0xaab   : > { %14663 = vmatpush3.bf16.msra.mxu1 %v15950_v35 }
 0xaac   : > { %14664 = vmatprep.subr.bf16.mxu1 %v15359_v10 }
 0xaaf   : > { %14666 = vmatpush3.bf16.msra.mxu1 %v15964_v41 }
 0xab0   : > { %14667 = vmatprep.subr.bf16.mxu1 %v15359_v10 }
 0xab3   : > { %14669 = vmatpush3.bf16.msra.mxu1 %v15978_v48 }
 0xab4   : > { %14670 = vmatprep.subr.bf16.mxu1 %v15359_v10 }
 0xab7   : > { %14672 = vmatpush3.bf16.msra.mxu1 %v15982_v50 }
 0xab8   : > { %14673 = vmatprep.subr.bf16.mxu1 %v15359_v10 }
 0xabb   : > { %14675 = vmatpush3.bf16.msra.mxu1 %v16073_v32 }
 0xabc   : > { %14676 = vmatprep.subr.bf16.mxu1 %v15359_v10 }
 0xabf   : > { %14678 = vmatpush3.bf16.msra.mxu1 %v16078_v58 }
 0xac0   : > { %14679 = vmatprep.subr.bf16.mxu1 %v15359_v10 }
 0xac3   : > { %14681 = vmatpush3.bf16.msra.mxu1 %v16083_v43 }
 0xac4   : > { %14706 = vmatprep.subr.bf16.mxu1 %v15359_v10 }
 0xac6   : > { %13758 = vmatmul.mubr.f32.vlgmr.msra.gmra.mrb[18].mxu1 %v5934_v22  ;;  %v15376_v22 = vmov 0  }
 0xac7   : > { %14708 = vmatpush3.bf16.msra.mxu1 %v15936_v28  ;;  %13827 = vmatprep.mubr.msk.f32.mxu1 %vm15360_vm1, %v15361_v15 }
 0xac8   : > { %14709 = vmatprep.subr.bf16.mxu1 %v15359_v10  ;;  %15251 = vset.pattern.permute.xlu0 %v15376_v22 }
 0xac9   : > { %6524 = vperm.xlu0 %15251, %v608_v23  }
 0xacb   : > { %14711 = vmatpush3.bf16.msra.mxu1 %v15950_v35 }
 0xacc   : > { %14712 = vmatprep.subr.bf16.mxu1 %v15359_v10 }
 0xacf   : > { %14714 = vmatpush3.bf16.msra.mxu1 %v15964_v41 }
 0xad0   : > { %14715 = vmatprep.subr.bf16.mxu1 %v15359_v10 }
 0xad3   : > { %14717 = vmatpush3.bf16.msra.mxu1 %v15978_v48 }
 0xad4   : > { %14718 = vmatprep.subr.bf16.mxu1 %v15359_v10 }
 0xad7   : > { %14720 = vmatpush3.bf16.msra.mxu1 %v15982_v50 }
 0xad8   : > { %14721 = vmatprep.subr.bf16.mxu1 %v15359_v10 }
 0xadb   : > { %14723 = vmatpush3.bf16.msra.mxu1 %v16073_v32 }
 0xadc   : > { %14724 = vmatprep.subr.bf16.mxu1 %v15359_v10 }
 0xadf   : > { %14726 = vmatpush3.bf16.msra.mxu1 %v16078_v58 }
 0xae0   : > { %14727 = vmatprep.subr.bf16.mxu1 %v15359_v10 }
 0xae3   : > { %14729 = vmatpush3.bf16.msra.mxu1 %v16083_v43 }
 0xae4   : > { %13896 = vmatprep.subr.mxu1 %v15361_v15 }
 0xae6   : > { %13828 = vmatmul.mubr.f32.vlgmr.msra.gmra.mrb[20].mxu1 %v16102_v9 }
 0xae7   : > { %13898 = vmatprep.mubr.msk.f32.mxu1 %vm15360_vm1, %v15361_v15 }
 0xb53   : > { %v6193_v28 = vpop.f32.mrb[18].mxu0 }
 0xb54   : > { %v13724_v35 = vpop.f32.mrb[19].mxu0 }
 0xb59   : > { %v5938_v41 = vpop.f32.mrb[14].mxu1 }
 0xb5a   : > { %v13654_v48 = vpop.f32.mrb[15].mxu1  ;;  %v5939_v32 = vadd.f32 %v12555_v12, %v5938_v41  ;;  %v12556_v41 = vld [vmem:[%s16946_s15] ss:$0 sm:$0xff]  ;;  %v16238_v12 = vpop.permute.xlu0 %6524 }
 0xb73   : > { %v6401_v50 = vpop.f32.mrb[20].mxu0 }
 0xb74   : > { %v13794_v11 = vpop.f32.mrb[21].mxu0 }
 0xb79   : > { %v6089_v58 = vpop.f32.mrb[16].mxu1 }
 0xb7a   : > { %v6090_v43 = vadd.f32 %v6089_v58, %v5939_v32  ;;  %v13689_v49 = vpop.f32.mrb[17].mxu1 }
 0xb7c   : > { %v6194_v62 = vadd.f32 %v6193_v28, %v6090_v43 }
 0xb99   : > { %v6282_v5 = vpop.f32.mrb[18].mxu1 }
 0xb9a   : > { %v6283_v8 = vadd.f32 %v6282_v5, %v6194_v62  ;;  %v13759_v9 = vpop.f32.mrb[19].mxu1 }
 0xb9c   : > { %v6402_v17 = vadd.f32 %v6401_v50, %v6283_v8  ;;  %v12557_v50 = vld [vmem:[%s16947_s16] ss:$0 sm:$0xff] }
 0xbb9   : > { %v6488_v18 = vpop.f32.mrb[20].mxu1 }
 0xbba   : > { %v6489_v19 = vadd.f32 %v6488_v18, %v6402_v17  ;;  %v13829_v20 = vpop.f32.mrb[21].mxu1  ;;  %v12563_v17 = vld [vmem:[%s16937_s6 + $0x1] ss:$0 sm:$0xff] }
 0xbbc   : > { %v6492_v21 = vadd.f32 %v6489_v19, %v15993_v2  ;;  %v12558_v2 = vld [vmem:[%s16936_s5 + $0x20] sm:$0xff] }
 0xbbd   : > { %v6545_v36 = vand.u32 4294901760, %v12558_v2 }
 0xbbe   : > { %v6495_v24 = vsel %vm578_vm0, %v6492_v21, 0.0 }
 0xbbf   : > { %6496 = vadd.xlane.f32.xlu1 %v6495_v24  ;;  %v16218_v38 = vpack.c.bf16 %v6548_v37, %v6545_v36  ;;  %v6625_v44 = vsub.f32 %v12558_v2, %v6545_v36 }
 0xbc1   : > { %14732 = vmatpush3.bf16.msra.mxu0 %v16218_v38  ;;  %v6626_v63 = vand.u32 4294901760, %v6625_v44  ;;  %v14743_v46 = vpack.c.bf16 %v6632_v45, %v6625_v44 }
 0xbc2   : > { %14733 = vmatprep.subr.bf16.mxu0 %v15359_v10 }
 0xbc3   : > { %v6627_v39 = vsub.f32 %v6625_v44, %v6626_v63  ;;  %v14755_v59 = vpack.c.bf16 %v6633_v33, %v6626_v63 }
 0xbc5   : > { %14735 = vmatpush3.bf16.msra.mxu0 %v16228_v34  ;;  %v6628_v40 = vand.u32 4294901760, %v6627_v39 }
 0xbc6   : > { %14736 = vmatprep.subr.bf16.mxu0 %v15359_v10 }
 0xbc7   : > { %v14737_v53 = vpack.c.bf16 %v6635_v16, %v6628_v40 }
 0xc4c   : > { %v6497_v25 = vpop.xlane.xlu1 %6496 }
 0xc4d   : > { %v6498_v29 = vmul.f32 0.03125, %v6497_v25 }
 0xc4f   : > { %v6499_v30 = vsub.f32 %v6492_v21, %v6498_v29 }
 0xc51   : > { %v6500_v26 = vmul.f32 %v6499_v30, %v6499_v30 }
 0xc53   : > { %v6501_v27 = vsel %vm578_vm0, %v6500_v26, 0.0 }
 0xc54   : > { %6502 = vadd.xlane.f32.xlu1 %v6501_v27 }
 0xce1   : > { %v6503_v13 = vpop.xlane.xlu1 %6502 }
 0xce2   : > { %v6504_v14 = vmul.f32 0.03125, %v6503_v13 }
 0xce4   : > { %v6505_v28 = vadd.f32 1e-05, %v6504_v14 }
 0xce6   : > { %15272 = vrsqrt.f32 %v6505_v28 }
 0xcf0   : > { %v15273_v35 = vpop.eup %15272 }
 0xcf1   : > { %v6507_v48 = vmul.f32 %v15273_v35, %v6499_v30 }
 0xcf3   : > { %v6514_v11 = vmul.f32 %v12556_v41, %v6507_v48 }
 0xcf5   : > { %v6521_v32 = vadd.f32 %v12557_v50, %v6514_v11 }
 0xcf7   : > { %v16241_v58 = vmul.f32 %v16238_v12, %v6521_v32 }
 0xcf9   : > { %v6542_v43 = vsel %vm578_vm0, %v16241_v58, 0 }
 0xcfa   : > { %v6613_v49 = vand.u32 4294901760, %v6542_v43 }
 0xcfc   : > { %v6614_v62 = vsub.f32 %v6542_v43, %v6613_v49 }
 0xcfe   : > { %v6615_v5 = vand.u32 4294901760, %v6614_v62 }
 0xd00   : > { %v6616_v8 = vsub.f32 %v6614_v62, %v6615_v5 }
 0xd02   : > { %v6617_v9 = vand.u32 4294901760, %v6616_v8 }
 0xd04   : > { %13839 = vmatmul.mubr.f32.vlgmr.msra.gmra.mrb[22].mxu0 %v6617_v9 }
 0xd05   : > { %14738 = vmatpush3.bf16.msra.mxu0 %v14737_v53  ;;  %13849 = vmatprep.mubr.msk.f32.mxu0 %vm15360_vm1, %v15361_v15 }
 0xd06   : > { %14739 = vmatprep.subr.bf16.mxu0 %v15359_v10 }
 0xd09   : > { %14741 = vmatpush3.bf16.msra.mxu0 %v14740_v57 }
 0xd0a   : > { %14742 = vmatprep.subr.bf16.mxu0 %v15359_v10 }
 0xd0c   : > { %13850 = vmatmul.mubr.f32.vlgmr.msra.gmra.mrb[22].mxu0 %v6613_v49 }
 0xd0d   : > { %14744 = vmatpush3.bf16.msra.mxu0 %v14743_v46  ;;  %13860 = vmatprep.mubr.msk.f32.mxu0 %vm15360_vm1, %v15361_v15 }
 0xd0e   : > { %14745 = vmatprep.subr.bf16.mxu0 %v15359_v10 }
 0xd11   : > { %14747 = vmatpush3.bf16.msra.mxu0 %v14746_v47 }
 0xd12   : > { %14748 = vmatprep.subr.bf16.mxu0 %v15359_v10 }
 0xd14   : > { %13861 = vmatmul.mubr.f32.vlgmr.msra.gmra.mrb[22].mxu0 %v6614_v62 }
 0xd15   : > { %14750 = vmatpush3.bf16.msra.mxu0 %v16218_v38  ;;  %13871 = vmatprep.mubr.msk.f32.mxu0 %vm15360_vm1, %v15361_v15 }
 0xd16   : > { %14751 = vmatprep.subr.bf16.mxu0 %v15359_v10 }
 0xd19   : > { %14753 = vmatpush3.bf16.msra.mxu0 %v16228_v34 }
 0xd1a   : > { %14754 = vmatprep.subr.bf16.mxu0 %v15359_v10 }
 0xd1c   : > { %13872 = vmatmul.mubr.f32.vlgmr.msra.gmra.mrb[22].mxu0 %v6615_v5 }
 0xd1d   : > { %14756 = vmatpush3.bf16.msra.mxu0 %v14755_v59  ;;  %13882 = vmatprep.mubr.msk.f32.mxu0 %vm15360_vm1, %v15361_v15 }
 0xd1e   : > { %14757 = vmatprep.subr.bf16.mxu0 %v15359_v10 }
 0xd21   : > { %14759 = vmatpush3.bf16.msra.mxu0 %v14758_v4 }
 0xd22   : > { %14760 = vmatprep.subr.bf16.mxu0 %v15359_v10 }
 0xd24   : > { %13883 = vmatmul.mubr.f32.vlgmr.msra.gmra.mrb[22].mxu0 %v6613_v49 }
 0xd25   : > { %14762 = vmatpush3.bf16.msra.mxu0 %v16218_v38  ;;  %13893 = vmatprep.mubr.msk.f32.mxu0 %vm15360_vm1, %v15361_v15 }
 0xd26   : > { %14763 = vmatprep.subr.bf16.mxu0 %v15359_v10 }
 0xd29   : > { %14765 = vmatpush3.bf16.msra.mxu0 %v16228_v34 }
 0xd2a   : > { %13956 = vmatprep.subr.mxu0 %v15361_v15 }
 0xd2c   : > { %13894 = vmatmul.mubr.f32.vlgmr.msra.gmra.mrb[22].mxu0 %v6613_v49 }
 0xd2d   : > { %13958 = vmatprep.mubr.msk.f32.mxu0 %vm15360_vm1, %v15361_v15 }
 0xdff   : > { %v7025_v18 = vpop.f32.mrb[22].mxu0 }
 0xe00   : > { %v16274_v19 = vadd.f32 %v12563_v17, %v7025_v18  ;;  %v13895_v20 = vpop.f32.mrb[23].mxu0  ;;  %v15294_v17 = vld [vmem:[%s15712_s19] ss:$0 sm:$0xff]  ;;  %s16990_s19 = smov 56  }
 0xe02   : > { %7030 = vrot.lane.b32.xlu1 %v16274_v19, %s16982_s3  ;;  %v7032_v21 = vsel %vm1117_vm2, %v16274_v19, 0  ;;  %s16992_s3 = smov 40  }
 0xe03   : > { %v16292_v24 = vand.u32 4294901760, %v7032_v21 }
 0xe05   : > { %v7103_v22 = vsub.f32 %v7032_v21, %v16292_v24 }
 0xe06   : > { %7945 = vrot.lane.b32.xlu1 %v16274_v19, %s16983_s18  ;;  %s16993_s18 = smov 8  }
 0xe07   : > { %v7104_v23 = vand.u32 4294901760, %v7103_v22 }
 0xe09   : > { %v7105_v30 = vsub.f32 %v7103_v22, %v7104_v23 }
 0xe0a   : > { %7947 = vrot.lane.b32.xlu1 %v16274_v19, %s16984_s26 }
 0xe0b   : > { %v7106_v36 = vand.u32 4294901760, %v7105_v30 }
 0xe0e   : > { %8862 = vrot.lane.b32.xlu1 %v16274_v19, %s16985_s0 }
 0xe12   : > { %8864 = vrot.lane.b32.xlu1 %v16274_v19, %s16986_s20 }
 0xe16   : > { %9779 = vrot.lane.b32.xlu1 %v16274_v19, %s16987_s23 }
 0xe1a   : > { %9781 = vrot.lane.b32.xlu1 %v16274_v19, %s16988_s21  ;;  %s561_s21 = sand.u32 1, %s15349_s25  }
 0xe74   : > { %v7031_v25 = vpop.permute.xlu1 %7030 }
 0xe75   : > { %v7034_v29 = vsel %vm1117_vm2, %v7031_v25, 0 }
 0xe76   : > { %v7037_v26 = vand.u32 4294901760, %v7034_v29 }
 0xe78   : > { %v7114_v27 = vsub.f32 %v7034_v29, %v7037_v26  ;;  %13897 = vmatpush3.xpose.msra.mxu1 %v7037_v26  ;;  %v7946_v2 = vpop.permute.xlu1 %7945 }
 0xe79   : > { %v7949_v31 = vsel %vm1117_vm2, %v7946_v2, 0  ;;  %13901 = vmatprep.subr.mxu1 %v15361_v15 }
 0xe7a   : > { %v7115_v37 = vand.u32 4294901760, %v7114_v27  ;;  %v16298_v38 = vand.u32 4294901760, %v7949_v31 }
 0xe7b   : > { %13899 = vmatmul.mubr.f32.vlgmr.msra.gmra.mrb[22].mxu1 %v7106_v36 }
 0xe7c   : > { %v7116_v44 = vsub.f32 %v7114_v27, %v7115_v37  ;;  %v8020_v45 = vsub.f32 %v7949_v31, %v16298_v38  ;;  %v7948_v51 = vpop.permute.xlu1 %7947  ;;  %13903 = vmatprep.mubr.msk.f32.mxu1 %vm15360_vm1, %v15361_v15 }
 0xe7d   : > { %v7951_v52 = vsel %vm1117_vm2, %v7948_v51, 0 }
 0xe7e   : > { %v7117_v60 = vand.u32 4294901760, %v7116_v44  ;;  %v8021_v61 = vand.u32 4294901760, %v8020_v45  ;;  %v7954_v63 = vand.u32 4294901760, %v7951_v52 }
 0xe80   : > { %v8022_v33 = vsub.f32 %v8020_v45, %v8021_v61  ;;  %v8031_v34 = vsub.f32 %v7951_v52, %v7954_v63  ;;  %13957 = vmatpush3.xpose.msra.mxu0 %v7954_v63  ;;  %13902 = vmatpush3.xpose.msra.mxu1 %v7117_v60  ;;  %v8863_v40 = vpop.permute.xlu1 %8862 }
 0xe81   : > { %13906 = vmatprep.subr.mxu1 %v15361_v15  ;;  %13961 = vmatprep.subr.mxu0 %v15361_v15  ;;  %v8866_v7 = vsel %vm1117_vm2, %v8863_v40, 0 }
 0xe82   : > { %v8023_v0 = vand.u32 4294901760, %v8022_v33  ;;  %v8032_v1 = vand.u32 4294901760, %v8031_v34  ;;  %v8936_v42 = vand.u32 4294901760, %v8866_v7 }
 0xe83   : > { %13904 = vmatmul.mubr.f32.vlgmr.msra.gmra.mrb[22].mxu1 %v16292_v24 }
 0xe84   : > { %v8033_v39 = vsub.f32 %v8031_v34, %v8032_v1  ;;  %13959 = vmatmul.mubr.f32.vlgmr.msra.gmra.mrb[24].mxu0 %v8023_v0  ;;  %13907 = vmatpush3.xpose.msra.mxu1 %v7114_v27  ;;  %v8865_v6 = vpop.permute.xlu1 %8864  ;;  %v8937_v53 = vsub.f32 %v8866_v7, %v8936_v42 }
 0xe85   : > { %13908 = vmatprep.mubr.msk.f32.mxu1 %vm15360_vm1, %v15361_v15  ;;  %13911 = vmatprep.subr.mxu1 %v15361_v15  ;;  %v8868_v16 = vsel %vm1117_vm2, %v8865_v6, 0 }
 0xe86   : > { %v8034_v3 = vand.u32 4294901760, %v8033_v39  ;;  %13963 = vmatprep.mubr.msk.f32.mxu0 %vm15360_vm1, %v15361_v15  ;;  %v8871_v54 = vand.u32 4294901760, %v8868_v16  ;;  %v8938_v56 = vand.u32 4294901760, %v8937_v53 }
 0xe88   : > { %13962 = vmatpush3.xpose.msra.mxu0 %v8034_v3  ;;  %v8948_v55 = vsub.f32 %v8868_v16, %v8871_v54  ;;  %v8939_v46 = vsub.f32 %v8937_v53, %v8938_v56  ;;  %v9780_v13 = vpop.permute.xlu1 %9779 }
 0xe89   : > { %13966 = vmatprep.subr.mxu0 %v15361_v15  ;;  %v9783_v28 = vsel %vm1117_vm2, %v9780_v13, 0 }
 0xe8a   : > { %v8949_v57 = vand.u32 4294901760, %v8948_v55  ;;  %v8940_v59 = vand.u32 4294901760, %v8939_v46  ;;  %v9853_v41 = vand.u32 4294901760, %v9783_v28 }
 0xe8b   : > { %13909 = vmatmul.mubr.f32.vlgmr.msra.gmra.mrb[22].mxu1 %v7103_v22 }
 0xe8c   : > { %13912 = vmatpush3.xpose.msra.mxu1 %v7037_v26  ;;  %13964 = vmatmul.mubr.f32.vlgmr.msra.gmra.mrb[24].mxu0 %v16298_v38  ;;  %v8950_v47 = vsub.f32 %v8948_v55, %v8949_v57  ;;  %v9782_v14 = vpop.permute.xlu1 %9781  ;;  %v9854_v50 = vsub.f32 %v9783_v28, %v9853_v41 }
 0xe8d   : > { %13967 = vmatpush3.xpose.msra.mxu0 %v8031_v34  ;;  %13913 = vmatprep.mubr.msk.f32.mxu1 %vm15360_vm1, %v15361_v15  ;;  %v9785_v35 = vsel %vm1117_vm2, %v9782_v14, 0 }
 0xe8e   : > { %13916 = vmatprep.subr.mxu1 %v15361_v15  ;;  %13968 = vmatprep.mubr.msk.f32.mxu0 %vm15360_vm1, %v15361_v15  ;;  %v8951_v4 = vand.u32 4294901760, %v8950_v47  ;;  %v9788_v48 = vand.u32 4294901760, %v9785_v35  ;;  %v9855_v32 = vand.u32 4294901760, %v9854_v50 }
 0xe8f   : > { %13971 = vmatprep.subr.mxu0 %v15361_v15 }
 0xe90   : > { %v9865_v11 = vsub.f32 %v9785_v35, %v9788_v48  ;;  %v9856_v49 = vsub.f32 %v9854_v50, %v9855_v32 }
 0xe92   : > { %v9866_v43 = vand.u32 4294901760, %v9865_v11  ;;  %v9857_v5 = vand.u32 4294901760, %v9856_v49 }
 0xe93   : > { %13914 = vmatmul.mubr.f32.vlgmr.msra.gmra.mrb[22].mxu1 %v7104_v23 }
 0xe94   : > { %13917 = vmatpush3.xpose.msra.mxu1 %v7115_v37  ;;  %13969 = vmatmul.mubr.f32.vlgmr.msra.gmra.mrb[24].mxu0 %v8020_v45  ;;  %v9867_v62 = vsub.f32 %v9865_v11, %v9866_v43 }
 0xe95   : > { %13972 = vmatpush3.xpose.msra.mxu0 %v7954_v63  ;;  %13918 = vmatprep.mubr.msk.f32.mxu1 %vm15360_vm1, %v15361_v15 }
 0xe96   : > { %13921 = vmatprep.subr.mxu1 %v15361_v15  ;;  %13973 = vmatprep.mubr.msk.f32.mxu0 %vm15360_vm1, %v15361_v15  ;;  %v9868_v8 = vand.u32 4294901760, %v9867_v62 }
 0xe97   : > { %13976 = vmatprep.subr.mxu0 %v15361_v15 }
 0xe9b   : > { %13919 = vmatmul.mubr.f32.vlgmr.msra.gmra.mrb[22].mxu1 %v16292_v24 }
 0xe9c   : > { %13922 = vmatpush3.xpose.msra.mxu1 %v7037_v26  ;;  %13974 = vmatmul.mubr.f32.vlgmr.msra.gmra.mrb[24].mxu0 %v8021_v61 }
 0xe9d   : > { %13977 = vmatpush3.xpose.msra.mxu0 %v8032_v1  ;;  %13923 = vmatprep.mubr.msk.f32.mxu1 %vm15360_vm1, %v15361_v15 }
 0xe9e   : > { %13978 = vmatprep.mubr.msk.f32.mxu0 %vm15360_vm1, %v15361_v15  ;;  %13981 = vmatprep.subr.mxu0 %v15361_v15 }
 0xe9f   : > { %13926 = vmatprep.subr.mxu1 %v15361_v15 }
 0xea3   : > { %13924 = vmatmul.mubr.f32.vlgmr.msra.gmra.mrb[22].mxu1 %v16292_v24 }
 0xea4   : > { %13979 = vmatmul.mubr.f32.vlgmr.msra.gmra.mrb[24].mxu0 %v16298_v38  ;;  %13928 = vmatprep.mubr.msk.f32.mxu1 %vm15360_vm1, %v15361_v15 }
 0xea5   : > { %13982 = vmatpush3.xpose.msra.mxu0 %v7954_v63  ;;  %13983 = vmatprep.mubr.msk.f32.mxu0 %vm15360_vm1, %v15361_v15 }
 0xea6   : > { %14016 = vmatprep.subr.mxu0 %v15361_v15 }
 0xeac   : > { %13984 = vmatmul.mubr.f32.vlgmr.msra.gmra.mrb[24].mxu0 %v16298_v38 }
 0xead   : > { %14017 = vmatpush3.xpose.msra.mxu0 %v8871_v54  ;;  %14018 = vmatprep.mubr.msk.f32.mxu0 %vm15360_vm1, %v15361_v15 }
 0xeae   : > { %14021 = vmatprep.subr.mxu0 %v15361_v15 }
 0xeb0   : > { %14019 = vmatmul.mubr.f32.vlgmr.msra.gmra.mrb[26].mxu0 %v8940_v59 }
 0xeb1   : > { %14022 = vmatpush3.xpose.msra.mxu0 %v8951_v4  ;;  %14023 = vmatprep.mubr.msk.f32.mxu0 %vm15360_vm1, %v15361_v15 }
 0xeb2   : > { %14026 = vmatprep.subr.mxu0 %v15361_v15 }
 0xeb8   : > { %14024 = vmatmul.mubr.f32.vlgmr.msra.gmra.mrb[26].mxu0 %v8936_v42 }
 0xeb9   : > { %14027 = vmatpush3.xpose.msra.mxu0 %v8948_v55  ;;  %14028 = vmatprep.mubr.msk.f32.mxu0 %vm15360_vm1, %v15361_v15 }
 0xeba   : > { %14031 = vmatprep.subr.mxu0 %v15361_v15 }
 0xec0   : > { %14029 = vmatmul.mubr.f32.vlgmr.msra.gmra.mrb[26].mxu0 %v8937_v53 }
 0xec1   : > { %14032 = vmatpush3.xpose.msra.mxu0 %v8871_v54  ;;  %14033 = vmatprep.mubr.msk.f32.mxu0 %vm15360_vm1, %v15361_v15 }
 0xec2   : > { %14036 = vmatprep.subr.mxu0 %v15361_v15 }
 0xec8   : > { %14034 = vmatmul.mubr.f32.vlgmr.msra.gmra.mrb[26].mxu0 %v8938_v56 }
 0xec9   : > { %14037 = vmatpush3.xpose.msra.mxu0 %v8949_v57  ;;  %14038 = vmatprep.mubr.msk.f32.mxu0 %vm15360_vm1, %v15361_v15 }
 0xeca   : > { %14041 = vmatprep.subr.mxu0 %v15361_v15 }
 0xed0   : > { %14039 = vmatmul.mubr.f32.vlgmr.msra.gmra.mrb[26].mxu0 %v8936_v42 }
 0xed1   : > { %14042 = vmatpush3.xpose.msra.mxu0 %v8871_v54  ;;  %14043 = vmatprep.mubr.msk.f32.mxu0 %vm15360_vm1, %v15361_v15 }
 0xed2   : > { %14076 = vmatprep.subr.mxu0 %v15361_v15 }
 0xed8   : > { %14044 = vmatmul.mubr.f32.vlgmr.msra.gmra.mrb[26].mxu0 %v8936_v42 }
 0xed9   : > { %14077 = vmatpush3.xpose.msra.mxu0 %v9788_v48  ;;  %14078 = vmatprep.mubr.msk.f32.mxu0 %vm15360_vm1, %v15361_v15 }
 0xeda   : > { %14081 = vmatprep.subr.mxu0 %v15361_v15 }
 0xedc   : > { %14079 = vmatmul.mubr.f32.vlgmr.msra.gmra.mrb[28].mxu0 %v9857_v5 }
 0xedd   : > { %14082 = vmatpush3.xpose.msra.mxu0 %v9868_v8  ;;  %14083 = vmatprep.mubr.msk.f32.mxu0 %vm15360_vm1, %v15361_v15 }
 0xede   : > { %14086 = vmatprep.subr.mxu0 %v15361_v15 }
 0xee4   : > { %14084 = vmatmul.mubr.f32.vlgmr.msra.gmra.mrb[28].mxu0 %v9853_v41 }
 0xee5   : > { %14087 = vmatpush3.xpose.msra.mxu0 %v9865_v11  ;;  %14088 = vmatprep.mubr.msk.f32.mxu0 %vm15360_vm1, %v15361_v15 }
 0xee6   : > { %14091 = vmatprep.subr.mxu0 %v15361_v15 }
 0xeec   : > { %14089 = vmatmul.mubr.f32.vlgmr.msra.gmra.mrb[28].mxu0 %v9854_v50 }
 0xeed   : > { %14092 = vmatpush3.xpose.msra.mxu0 %v9788_v48  ;;  %14093 = vmatprep.mubr.msk.f32.mxu0 %vm15360_vm1, %v15361_v15 }
 0xeee   : > { %14096 = vmatprep.subr.mxu0 %v15361_v15 }
 0xef4   : > { %14094 = vmatmul.mubr.f32.vlgmr.msra.gmra.mrb[28].mxu0 %v9855_v32 }
 0xef5   : > { %14097 = vmatpush3.xpose.msra.mxu0 %v9866_v43  ;;  %14098 = vmatprep.mubr.msk.f32.mxu0 %vm15360_vm1, %v15361_v15 }
 0xef6   : > { %14101 = vmatprep.subr.mxu0 %v15361_v15 }
 0xefc   : > { %14099 = vmatmul.mubr.f32.vlgmr.msra.gmra.mrb[28].mxu0 %v9853_v41 }
 0xefd   : > { %14102 = vmatpush3.xpose.msra.mxu0 %v9788_v48  ;;  %14103 = vmatprep.mubr.msk.f32.mxu0 %vm15360_vm1, %v15361_v15 }
 0xefe   : > { %14766 = vmatprep.subr.bf16.mxu0 %v15359_v10 }
 0xf04   : > { %14104 = vmatmul.mubr.f32.vlgmr.msra.gmra.mrb[28].mxu0 %v9853_v41 }
 0xf05   : > { %14144 = vmatprep.mubr.msk.f32.mxu0 %vm15360_vm1, %v15361_v15 }
 0xf76   : > { %v7478_v9 = vpop.f32.mrb[22].mxu1 }
 0xf77   : > { %v14989_v18 = vadd.f32 %v15294_v17, %v7478_v9  ;;  %v13925_v20 = vpop.f32.mrb[23].mxu1 }
 0xf79   : > { %v7482_v21 = vsel %vm1117_vm2, %v14989_v18, -inf }
 0xf7a   : > { %7483 = vmax.xlane.f32.xlu0 %v7482_v21 }
 0xf7f   : > { %v8395_v24 = vpop.f32.mrb[24].mxu0 }
 0xf80   : > { %v14990_v22 = vadd.f32 %v15294_v17, %v8395_v24  ;;  %v13985_v23 = vpop.f32.mrb[25].mxu0 }
 0xf82   : > { %v8399_v25 = vsel %vm1117_vm2, %v14990_v22, -inf }
 0xf83   : > { %8400 = vmax.xlane.f32.xlu1 %v8399_v25 }
 0xf94   : > { %7493 = vrot.lane.b32.xlu1 %v16274_v19, %s16989_s22  ;;  %s12544_s22 = sshll.u32 %s561_s21, 3 }
 0xf95   : > { %s563_s26 = scalar_lea.vmem [#allocation2], %s12544_s22 }
 0xf96   : > { %s12460_s0 = sshll.u32 %s563_s26, 4  ;;  %s16890_s0 = int_to_ptr.vmem [resolvable:$true] %s12460_s0 }
 0xfab   : > { %v9312_v29 = vpop.f32.mrb[26].mxu0 }
 0xfac   : > { %v14045_v30 = vpop.f32.mrb[27].mxu0  ;;  %v14991_v60 = vadd.f32 %v15294_v17, %v9312_v29 }
 0xfae   : > { %v9316_v63 = vsel %vm1117_vm2, %v14991_v60, -inf }
 0xfd7   : > { %v10229_v26 = vpop.f32.mrb[28].mxu0 }
 0xfd8   : > { %v14105_v27 = vpop.f32.mrb[29].mxu0  ;;  %v14992_v34 = vadd.f32 %v15294_v17, %v10229_v26 }
 0xfda   : > { %v10233_v1 = vsel %vm1117_vm2, %v14992_v34, -inf }
0x1007   : > { %v7484_v2 = vpop.xlane.xlu0 %7483 }
0x1008   : > { %v7485_v31 = vsub.f32 %v14989_v18, %v7484_v2 }
0x100a   : > { %v7486_v36 = vmul.f32 1.442695, %v7485_v31 }
0x100c   : > { %15274 = vpow2.f32 %v7486_v36 }
0x1010   : > { %v8401_v37 = vpop.xlane.xlu1 %8400 }
0x1011   : > { %v8402_v38 = vsub.f32 %v14990_v22, %v8401_v37 }
0x1013   : > { %v8403_v44 = vmul.f32 1.442695, %v8402_v38 }
0x1014   : > { %v7494_v45 = vpop.permute.xlu1 %7493 }
0x1015   : > { %15276 = vpow2.f32 %v8403_v44  ;;  %v16388_v51 = vand.u32 4294901760, %v7494_v45 }
0x1016   : > { %v15275_v52 = vpop.eup %15274 }
0x1017   : > { %13927 = vmatpush3.msra.mxu1 %v16388_v51  ;;  %v7488_v61 = vsel %vm1117_vm2, %v15275_v52, 0.0  ;;  %v7577_v42 = vsub.f32 %v7494_v45, %v16388_v51 }
0x1018   : > { %7489 = vadd.xlane.f32.xlu0 %v7488_v61  ;;  %13931 = vmatprep.subr.mxu1 %v15361_v15 }
0x1019   : > { %v7578_v46 = vand.u32 4294901760, %v7577_v42 }
0x101b   : > { %v7579_v14 = vsub.f32 %v7577_v42, %v7578_v46 }
0x101c   : > { %9317 = vmax.xlane.f32.xlu0 %v9316_v63 }
0x101d   : > { %v7580_v48 = vand.u32 4294901760, %v7579_v14 }
0x101f   : > { %v15277_v33 = vpop.eup %15276 }
0x1020   : > { %v8405_v0 = vsel %vm1117_vm2, %v15277_v33, 0.0 }
0x1021   : > { %8406 = vadd.xlane.f32.xlu0 %v8405_v0 }
0x1025   : > { %10234 = vmax.xlane.f32.xlu0 %v10233_v1 }
0x103b   : > { %8410 = vrot.lane.b32.xlu0 %v16274_v19, %s16990_s19  ;;  %s12447_s19 = scalar_lea.sflag [#allocation3], %s561_s21 }
0x103f   : > { %9327 = vrot.lane.b32.xlu0 %v16274_v19, %s16991_s30  ;;  %s15295_s30 = scalar_lea.vmem %s16890_s0, 128 }
0x1040   : > { %p15296_p11 = scmp.ne.s32.totalorder %s16890_s0, %s15295_s30 }
0x1042   : > { %p15297_p12 = pnand %p15296_p11, %p15506_p5 }
0x1044   : > { %p15298_p13 = pneg %p15297_p12 }
0x10a5   : > { %v7490_v39 = vpop.xlane.xlu0 %7489 }
0x10a6   : > { %15278 = vrcp.f32 %v7490_v39 }
0x10a9   : > { %v9318_v3 = vpop.xlane.xlu0 %9317 }
0x10aa   : > { %v9319_v40 = vsub.f32 %v14991_v60, %v9318_v3 }
0x10ac   : > { %v9320_v6 = vmul.f32 1.442695, %v9319_v40 }
0x10ae   : > { %15280 = vpow2.f32 %v9320_v6  ;;  %v8407_v7 = vpop.xlane.xlu0 %8406 }
0x10b0   : > { %v15279_v16 = vpop.eup %15278 }
0x10b1   : > { %v7492_v54 = vmul.f32 %v15279_v16, %v15275_v52 }
0x10b2   : > { %v10235_v53 = vpop.xlane.xlu0 %10234 }
0x10b3   : > { %v10236_v55 = vsub.f32 %v14992_v34, %v10235_v53  ;;  %v7497_v56 = vsel %vm1117_vm2, %v7492_v54, 0 }
0x10b4   : > { %v7565_v57 = vand.u32 4294901760, %v7497_v56 }
0x10b5   : > { %v10237_v47 = vmul.f32 1.442695, %v10236_v55 }
0x10b6   : > { %v7566_v59 = vsub.f32 %v7497_v56, %v7565_v57  ;;  %v8411_v62 = vpop.permute.xlu0 %8410 }
0x10b7   : > { %15282 = vpow2.f32 %v10237_v47  ;;  %v8417_v5 = vand.u32 4294901760, %v8411_v62 }
0x10b8   : > { %v16402_v4 = vpop.eup %15280  ;;  %v7567_v13 = vand.u32 4294901760, %v7566_v59  ;;  %15284 = vrcp.f32 %v8407_v7 }
0x10b9   : > { %v9322_v28 = vsel %vm1117_vm2, %v16402_v4, 0.0  ;;  %v8494_v9 = vsub.f32 %v8411_v62, %v8417_v5 }
0x10ba   : > { %9323 = vadd.xlane.f32.xlu1 %v9322_v28  ;;  %v7568_v35 = vsub.f32 %v7566_v59, %v7567_v13  ;;  %v9328_v23 = vpop.permute.xlu0 %9327 }
0x10bb   : > { %v8495_v18 = vand.u32 4294901760, %v8494_v9  ;;  %v9334_v25 = vand.u32 4294901760, %v9328_v23 }
0x10bc   : > { %v7569_v41 = vand.u32 4294901760, %v7568_v35  ;;  %v12566_v35 = vld [vmem:[%s16938_s7 + $0x30] sm:$0xff] }
0x10bd   : > { %v8496_v21 = vsub.f32 %v8494_v9, %v8495_v18  ;;  %v9411_v26 = vsub.f32 %v9328_v23, %v9334_v25 }
0x10be   : > { %13929 = vmatmul.mubr.f32.vlgmr.msra.gmra.mrb[24].mxu1 %v7569_v41  ;;  %v12567_v41 = vld [vmem:[%s16938_s7 + $0x38] sm:$0xff] }
0x10bf   : > { %13932 = vmatpush3.msra.mxu1 %v7580_v48  ;;  %13933 = vmatprep.mubr.msk.f32.mxu1 %vm15360_vm1, %v15361_v15  ;;  %v8497_v22 = vand.u32 4294901760, %v8496_v21  ;;  %v9412_v36 = vand.u32 4294901760, %v9411_v26  ;;  %v10734_v48 = vand.u32 4294901760, %v12566_v35 }
0x10c0   : > { %13936 = vmatprep.subr.mxu1 %v15361_v15 }
0x10c1   : > { %v16409_v50 = vpop.eup %15282  ;;  %v9413_v44 = vsub.f32 %v9411_v26, %v9412_v36 }
0x10c2   : > { %v10239_v11 = vsel %vm1117_vm2, %v16409_v50, 0.0  ;;  %v15285_v32 = vpop.eup %15284 }
0x10c3   : > { %10240 = vadd.xlane.f32.xlu0 %v10239_v11  ;;  %v8409_v43 = vmul.f32 %v15285_v32, %v15277_v33  ;;  %v9414_v52 = vand.u32 4294901760, %v9413_v44 }
0x10c5   : > { %v8414_v49 = vsel %vm1117_vm2, %v8409_v43, 0 }
0x10c6   : > { %13934 = vmatmul.mubr.f32.vlgmr.msra.gmra.mrb[24].mxu1 %v7565_v57 }
0x10c7   : > { %13937 = vmatpush3.msra.mxu1 %v7577_v42  ;;  %13938 = vmatprep.mubr.msk.f32.mxu1 %vm15360_vm1, %v15361_v15 }
0x10c8   : > { %13941 = vmatprep.subr.mxu1 %v15361_v15 }
0x10cb   : > { %10244 = vrot.lane.b32.xlu1 %v16274_v19, %s16992_s3  ;;  %v8482_v19 = vand.u32 4294901760, %v8414_v49 }
0x10cd   : > { %v8483_v8 = vsub.f32 %v8414_v49, %v8482_v19  ;;  %v10822_v49 = vsub.f32 %v12566_v35, %v10734_v48 }
0x10ce   : > { %13939 = vmatmul.mubr.f32.vlgmr.msra.gmra.mrb[24].mxu1 %v7566_v59  ;;  %v12564_v59 = vld [vmem:[%s16938_s7 + $0x20] sm:$0xff] }
0x10cf   : > { %13942 = vmatpush3.msra.mxu1 %v16388_v51  ;;  %13943 = vmatprep.mubr.msk.f32.mxu1 %vm15360_vm1, %v15361_v15  ;;  %v8484_v17 = vand.u32 4294901760, %v8483_v8 }
0x10d0   : > { %13946 = vmatprep.subr.mxu1 %v15361_v15 }
0x10d1   : > { %v8485_v20 = vsub.f32 %v8483_v8, %v8484_v17 }
0x10d3   : > { %v8486_v24 = vand.u32 4294901760, %v8485_v20  ;;  %v10823_v20 = vand.u32 4294901760, %v10822_v49 }
0x10d6   : > { %13944 = vmatmul.mubr.f32.vlgmr.msra.gmra.mrb[24].mxu1 %v7567_v13  ;;  %v10728_v13 = vand.u32 4294901760, %v12564_v59 }
0x10d7   : > { %13947 = vmatpush3.msra.mxu1 %v7578_v46  ;;  %13948 = vmatprep.mubr.msk.f32.mxu1 %vm15360_vm1, %v15361_v15 }
0x10d8   : > { %13951 = vmatprep.subr.mxu1 %v15361_v15  ;;  %v10808_v11 = vsub.f32 %v12564_v59, %v10728_v13 }
0x10de   : > { %13949 = vmatmul.mubr.f32.vlgmr.msra.gmra.mrb[24].mxu1 %v7565_v57 }
0x10df   : > { %13952 = vmatpush3.msra.mxu1 %v16388_v51  ;;  %13953 = vmatprep.mubr.msk.f32.mxu1 %vm15360_vm1, %v15361_v15 }
0x10e0   : > { %13986 = vmatprep.subr.mxu1 %v15361_v15 }
0x10e6   : > { %13954 = vmatmul.mubr.f32.vlgmr.msra.gmra.mrb[24].mxu1 %v7565_v57 }
0x10e7   : > { %13987 = vmatpush3.msra.mxu1 %v8417_v5  ;;  %13988 = vmatprep.mubr.msk.f32.mxu1 %vm15360_vm1, %v15361_v15 }
0x10e8   : > { %13991 = vmatprep.subr.mxu1 %v15361_v15 }
0x10ea   : > { %13989 = vmatmul.mubr.f32.vlgmr.msra.gmra.mrb[26].mxu1 %v8486_v24 }
0x10eb   : > { %13992 = vmatpush3.msra.mxu1 %v8497_v22  ;;  %13993 = vmatprep.mubr.msk.f32.mxu1 %vm15360_vm1, %v15361_v15  ;;  %v10824_v22 = vsub.f32 %v10822_v49, %v10823_v20 }
0x10ec   : > { %13996 = vmatprep.subr.mxu1 %v15361_v15 }
0x10f2   : > { %13994 = vmatmul.mubr.f32.vlgmr.msra.gmra.mrb[26].mxu1 %v8482_v19 }
0x10f3   : > { %13997 = vmatpush3.msra.mxu1 %v8494_v9  ;;  %13998 = vmatprep.mubr.msk.f32.mxu1 %vm15360_vm1, %v15361_v15 }
0x10f4   : > { %14001 = vmatprep.subr.mxu1 %v15361_v15 }
0x10fa   : > { %13999 = vmatmul.mubr.f32.vlgmr.msra.gmra.mrb[26].mxu1 %v8483_v8 }
0x10fb   : > { %14002 = vmatpush3.msra.mxu1 %v8417_v5  ;;  %14003 = vmatprep.mubr.msk.f32.mxu1 %vm15360_vm1, %v15361_v15 }
0x10fc   : > { %14006 = vmatprep.subr.mxu1 %v15361_v15 }
0x1102   : > { %14004 = vmatmul.mubr.f32.vlgmr.msra.gmra.mrb[26].mxu1 %v8484_v17 }
0x1103   : > { %14007 = vmatpush3.msra.mxu1 %v8495_v18  ;;  %14008 = vmatprep.mubr.msk.f32.mxu1 %vm15360_vm1, %v15361_v15 }
0x1104   : > { %14011 = vmatprep.subr.mxu1 %v15361_v15 }
0x110a   : > { %14009 = vmatmul.mubr.f32.vlgmr.msra.gmra.mrb[26].mxu1 %v8482_v19 }
0x110b   : > { %14012 = vmatpush3.msra.mxu1 %v8417_v5  ;;  %14013 = vmatprep.mubr.msk.f32.mxu1 %vm15360_vm1, %v15361_v15 }
0x110c   : > { %14046 = vmatprep.subr.mxu1 %v15361_v15 }
0x1112   : > { %14014 = vmatmul.mubr.f32.vlgmr.msra.gmra.mrb[26].mxu1 %v8482_v19  ;;  %v10809_v19 = vand.u32 4294901760, %v10808_v11 }
0x1113   : > { %14047 = vmatpush3.msra.mxu1 %v9334_v25  ;;  %14048 = vmatprep.mubr.msk.f32.mxu1 %vm15360_vm1, %v15361_v15 }
0x1114   : > { %14051 = vmatprep.subr.mxu1 %v15361_v15  ;;  %v10810_v8 = vsub.f32 %v10808_v11, %v10809_v19 }
0x1116   : > { %v10811_v17 = vand.u32 4294901760, %v10810_v8  ;;  %v12577_v8 = vld [vmem:[%s16942_s11 + $0x38] sm:$0xff] }
0x1147   : > { %v9324_v29 = vpop.xlane.xlu1 %9323 }
0x1148   : > { %15286 = vrcp.f32 %v9324_v29 }
0x114b   : > { %v10245_v34 = vpop.permute.xlu1 %10244 }
0x114c   : > { %v10251_v1 = vand.u32 4294901760, %v10245_v34 }
0x114e   : > { %v10328_v3 = vsub.f32 %v10245_v34, %v10251_v1 }
0x1150   : > { %v10241_v60 = vpop.xlane.xlu0 %10240  ;;  %v10329_v6 = vand.u32 4294901760, %v10328_v3 }
0x1151   : > { %15288 = vrcp.f32 %v10241_v60 }
0x1152   : > { %v15287_v30 = vpop.eup %15286  ;;  %v10330_v16 = vsub.f32 %v10328_v3, %v10329_v6 }
0x1153   : > { %v9326_v27 = vmul.f32 %v15287_v30, %v16402_v4  ;;  %v12565_v4 = vld [vmem:[%s16938_s7 + $0x28] sm:$0xff]  ;;  %v10825_v30 = vand.u32 4294901760, %v10824_v22 }
0x1154   : > { %v10331_v54 = vand.u32 4294901760, %v10330_v16  ;;  %v10731_v14 = vand.u32 4294901760, %v12565_v4 }
0x1155   : > { %v9331_v2 = vsel %vm1117_vm2, %v9326_v27, 0 }
0x1156   : > { %v9399_v31 = vand.u32 4294901760, %v9331_v2  ;;  %v14767_v28 = vpack.c.bf16 %v10731_v14, %v10728_v13  ;;  %v10815_v32 = vsub.f32 %v12565_v4, %v10731_v14 }
0x1158   : > { %v9400_v37 = vsub.f32 %v9331_v2, %v9399_v31  ;;  %14768 = vmatpush3.bf16.msra.mxu0 %v14767_v28  ;;  %v10816_v5 = vand.u32 4294901760, %v10815_v32  ;;  %v14779_v2 = vpack.c.bf16 %v10815_v32, %v10808_v11 }
0x1159   : > { %14769 = vmatprep.subr.bf16.mxu0 %v15359_v10 }
0x115a   : > { %v9401_v38 = vand.u32 4294901760, %v9400_v37  ;;  %v10817_v9 = vsub.f32 %v10815_v32, %v10816_v5 }
0x115b   : > { %v15289_v61 = vpop.eup %15288 }
0x115c   : > { %v9402_v45 = vsub.f32 %v9400_v37, %v9401_v38  ;;  %v10243_v63 = vmul.f32 %v15289_v61, %v16409_v50  ;;  %v10737_v50 = vand.u32 4294901760, %v12567_v41  ;;  %v10818_v18 = vand.u32 4294901760, %v10817_v9 }
0x115e   : > { %v9403_v51 = vand.u32 4294901760, %v9402_v45  ;;  %v10248_v33 = vsel %vm1117_vm2, %v10243_v63, 0  ;;  %v14770_v43 = vpack.c.bf16 %v10737_v50, %v10734_v48  ;;  %v10829_v62 = vsub.f32 %v12567_v41, %v10737_v50 }
0x115f   : > { %v10316_v0 = vand.u32 4294901760, %v10248_v33  ;;  %v14773_v24 = vpack.c.bf16 %v10818_v18, %v10811_v17  ;;  %v11270_v17 = vand.u32 4294901760, %v12577_v8 }
0x1160   : > { %14049 = vmatmul.mubr.f32.vlgmr.msra.gmra.mrb[28].mxu1 %v9403_v51  ;;  %14771 = vmatpush3.bf16.msra.mxu0 %v14770_v43  ;;  %v10830_v21 = vand.u32 4294901760, %v10829_v62 }
0x1161   : > { %14052 = vmatpush3.msra.mxu1 %v9414_v52  ;;  %14053 = vmatprep.mubr.msk.f32.mxu1 %vm15360_vm1, %v15361_v15  ;;  %v10317_v39 = vsub.f32 %v10248_v33, %v10316_v0  ;;  %v16563_v22 = vsub.f32 %v12577_v8, %v11270_v17 }
0x1162   : > { %14056 = vmatprep.subr.mxu1 %v15361_v15  ;;  %14772 = vmatprep.subr.bf16.mxu0 %v15359_v10  ;;  %v10831_v23 = vsub.f32 %v10829_v62, %v10830_v21 }
0x1163   : > { %v10318_v40 = vand.u32 4294901760, %v10317_v39 }
0x1165   : > { %v10319_v7 = vsub.f32 %v10317_v39, %v10318_v40 }
0x1167   : > { %v10320_v42 = vand.u32 4294901760, %v10319_v7  ;;  %v12569_v7 = vld [vmem:[%s16939_s8 + $0x1] ss:$0 sm:$0xff] }
0x1168   : > { %14054 = vmatmul.mubr.f32.vlgmr.msra.gmra.mrb[28].mxu1 %v9399_v31 }
0x1169   : > { %14057 = vmatpush3.msra.mxu1 %v9411_v26  ;;  %14058 = vmatprep.mubr.msk.f32.mxu1 %vm15360_vm1, %v15361_v15  ;;  %v10832_v26 = vand.u32 4294901760, %v10831_v23 }
0x116a   : > { %14061 = vmatprep.subr.mxu1 %v15361_v15 }
0x116b   : > { %v14776_v27 = vpack.c.bf16 %v10832_v26, %v10825_v30 }
0x1170   : > { %14059 = vmatmul.mubr.f32.vlgmr.msra.gmra.mrb[28].mxu1 %v9400_v37  ;;  %v14794_v37 = vpack.c.bf16 %v10830_v21, %v10823_v20 }
0x1171   : > { %14062 = vmatpush3.msra.mxu1 %v9334_v25  ;;  %14063 = vmatprep.mubr.msk.f32.mxu1 %vm15360_vm1, %v15361_v15 }
0x1172   : > { %14066 = vmatprep.subr.mxu1 %v15361_v15 }
0x1178   : > { %14064 = vmatmul.mubr.f32.vlgmr.msra.gmra.mrb[28].mxu1 %v9401_v38 }
0x1179   : > { %14067 = vmatpush3.msra.mxu1 %v9412_v36  ;;  %14068 = vmatprep.mubr.msk.f32.mxu1 %vm15360_vm1, %v15361_v15  ;;  %v14791_v36 = vpack.c.bf16 %v10816_v5, %v10809_v19 }
0x117a   : > { %14071 = vmatprep.subr.mxu1 %v15361_v15 }
0x1180   : > { %14069 = vmatmul.mubr.f32.vlgmr.msra.gmra.mrb[28].mxu1 %v9399_v31 }
0x1181   : > { %14072 = vmatpush3.msra.mxu1 %v9334_v25  ;;  %14073 = vmatprep.mubr.msk.f32.mxu1 %vm15360_vm1, %v15361_v15 }
0x1182   : > { %14106 = vmatprep.subr.mxu1 %v15361_v15 }
0x1188   : > { %14074 = vmatmul.mubr.f32.vlgmr.msra.gmra.mrb[28].mxu1 %v9399_v31  ;;  %v14782_v31 = vpack.c.bf16 %v10829_v62, %v10822_v49  ;;  %v12574_v49 = vld [vmem:[%s16942_s11 + $0x20] sm:$0xff]  ;;  %v12576_v62 = vld [vmem:[%s16942_s11 + $0x30] sm:$0xff] }
0x1189   : > { %14107 = vmatpush3.msra.mxu1 %v10251_v1  ;;  %14108 = vmatprep.mubr.msk.f32.mxu1 %vm15360_vm1, %v15361_v15  ;;  %v11261_v19 = vand.u32 4294901760, %v12574_v49  ;;  %v11267_v9 = vand.u32 4294901760, %v12576_v62 }
0x118a   : > { %14111 = vmatprep.subr.mxu1 %v15361_v15 }
0x118b   : > { %v16557_v20 = vsub.f32 %v12574_v49, %v11261_v19  ;;  %v16566_v23 = vpack.c.bf16 %v11270_v17, %v11267_v9  ;;  %v12589_v49 = vld [vmem:[%s16944_s13 + $0xc8] sm:$0xff] }
0x118c   : > { %14109 = vmatmul.mubr.f32.vlgmr.msra.gmra.mrb[30].mxu1 %v10320_v42 }
0x118d   : > { %14112 = vmatpush3.msra.mxu1 %v10331_v54  ;;  %14113 = vmatprep.mubr.msk.f32.mxu1 %vm15360_vm1, %v15361_v15 }
0x118e   : > { %14116 = vmatprep.subr.mxu1 %v15361_v15 }
0x1194   : > { %14114 = vmatmul.mubr.f32.vlgmr.msra.gmra.mrb[30].mxu1 %v10316_v0 }
0x1195   : > { %14117 = vmatpush3.msra.mxu1 %v10328_v3  ;;  %14118 = vmatprep.mubr.msk.f32.mxu1 %vm15360_vm1, %v15361_v15 }
0x1196   : > { %14121 = vmatprep.subr.mxu1 %v15361_v15 }
0x119c   : > { %14119 = vmatmul.mubr.f32.vlgmr.msra.gmra.mrb[30].mxu1 %v10317_v39 }
0x119d   : > { %14122 = vmatpush3.msra.mxu1 %v10251_v1  ;;  %14123 = vmatprep.mubr.msk.f32.mxu1 %vm15360_vm1, %v15361_v15 }
0x119e   : > { %14126 = vmatprep.subr.mxu1 %v15361_v15 }
0x11a4   : > { %14124 = vmatmul.mubr.f32.vlgmr.msra.gmra.mrb[30].mxu1 %v10318_v40 }
0x11a5   : > { %14127 = vmatpush3.msra.mxu1 %v10329_v6  ;;  %14128 = vmatprep.mubr.msk.f32.mxu1 %vm15360_vm1, %v15361_v15 }
0x11a6   : > { %14131 = vmatprep.subr.mxu1 %v15361_v15 }
0x11ac   : > { %14129 = vmatmul.mubr.f32.vlgmr.msra.gmra.mrb[30].mxu1 %v10316_v0 }
0x11ad   : > { %14132 = vmatpush3.msra.mxu1 %v10251_v1  ;;  %14133 = vmatprep.mubr.msk.f32.mxu1 %vm15360_vm1, %v15361_v15 }
0x11ae   : > { %14784 = vmatprep.subr.bf16.mxu1 %v15359_v10 }
0x11b4   : > { %14134 = vmatmul.mubr.f32.vlgmr.msra.gmra.mrb[30].mxu1 %v10316_v0 }
0x11b5   : > { %14177 = vmatprep.mubr.msk.f32.mxu1 %vm15360_vm1, %v15361_v15  ;;  %14786 = vmatpush3.bf16.msra.mxu1 %v14767_v28 }
0x11b6   : > { %14787 = vmatprep.subr.bf16.mxu1 %v15359_v10 }
0x11b9   : > { %v7941_v53 = vpop.f32.mrb[24].mxu1  ;;  %14789 = vmatpush3.bf16.msra.mxu1 %v14770_v43 }
0x11ba   : > { %v13955_v55 = vpop.f32.mrb[25].mxu1  ;;  %14796 = vmatprep.subr.bf16.mxu1 %v15359_v10 }
0x11e5   : > { %v8858_v56 = vpop.f32.mrb[26].mxu1 }
0x11e6   : > { %10697 = vrot.lane.b32.xlu0 %v8858_v56, %s16993_s18  ;;  %v14015_v57 = vpop.f32.mrb[27].mxu1  ;;  %s12603_s18 = sshll.u32 %s15489_s28, 7  ;;  %s15377_s28 = smov [#allocation2]  }
0x11e7   : > { %s16888_s2 = scalar_lea.hbm %s16948_s17, %s12603_s18  ;;  %s15299_s22 = sshll.u32 %s15377_s28, 4  ;;  %s15300_s22 = int_to_ptr.vmem [resolvable:$false] %s15299_s22 }
0x11e8   : > { %p15302_p0 = scmp.lt.s32.totalorder %s16890_s0, %s15300_s22 }
0x1258   : > { %v10698_v38 = vpop.permute.xlu0 %10697 }
0x1259   : > { %v10708_v45 = vsel %vm1117_vm2, %v7941_v53, %v10698_v38 }
0x125b   : > { %v9775_v46 = vpop.f32.mrb[28].mxu1 }
0x125c   : > { %10701 = vrot.lane.b32.xlu1 %v9775_v46, %s15374_s29  ;;  %v14075_v47 = vpop.f32.mrb[29].mxu1  ;;  %s16994_s29 = smov 24  }
0x1287   : > { %v10692_v25 = vpop.f32.mrb[30].mxu1 }
0x1288   : > { %10705 = vrot.lane.b32.xlu1 %v10692_v25, %s16994_s29  ;;  %v14135_v29 = vpop.f32.mrb[31].mxu1  ;;  %v11342_v25 = vand.u32 4294901760, %v16557_v20  ;;  %s15301_s29 = scalar_lea.vmem %s15300_s22, 256 }
0x1289   : > { %p15303_p1 = scmp.lt.s32.totalorder %s15301_s29, %s15295_s30 }
0x128a   : > { %v11343_v30 = vsub.f32 %v16557_v20, %v11342_v25 }
0x128b   : > { %p15304_p2 = por %p15303_p1, %p15302_p0 }
0x128d   : > { %p15305_p3 = pnand %p15304_p2, %p15298_p13 }
0x12ce   : > { %v10702_v44 = vpop.permute.xlu1 %10701 }
0x12cf   : > { %v10709_v51 = vsel %vm4795_vm3, %v10708_v45, %v10702_v44 }
0x12fa   : > { %v10706_v52 = vpop.permute.xlu1 %10705 }
0x12fb   : > { %v10710_v60 = vsel %vm4797_vm4, %v10709_v51, %v10706_v52 }
0x12fc   : > { %v10725_v61 = vsel %vm578_vm0, %v10710_v60, 0 }
0x12fd   : > { %v10796_v63 = vand.u32 4294901760, %v10725_v61 }
0x12ff   : > { %v10797_v33 = vsub.f32 %v10725_v61, %v10796_v63 }
0x1301   : > { %v10798_v34 = vand.u32 4294901760, %v10797_v33 }
0x1303   : > { %14178 = vmatmul.mubr.f32.vlgmr.msra.gmra.mrb[32].mxu1 %v10798_v34  ;;  %v10799_v0 = vsub.f32 %v10797_v33, %v10798_v34  ;;  %v12580_v34 = vld [vmem:[%s16944_s13 + $0x80] sm:$0xff] }
0x1304   : > { %14798 = vmatpush3.bf16.msra.mxu1 %v14767_v28  ;;  %14199 = vmatprep.mubr.msk.f32.mxu1 %vm15360_vm1, %v15361_v15 }
0x1305   : > { %14799 = vmatprep.subr.bf16.mxu1 %v15359_v10  ;;  %v10800_v1 = vand.u32 4294901760, %v10799_v0  ;;  %v12581_v0 = vld [vmem:[%s16944_s13 + $0x88] sm:$0xff] }
0x1307   : > { %14145 = vmatmul.mubr.f32.vlgmr.msra.gmra.mrb[30].mxu0 %v10800_v1  ;;  %v11772_v1 = vand.u32 4294901760, %v12580_v34 }
0x1308   : > { %14774 = vmatpush3.bf16.msra.mxu0 %v14773_v24  ;;  %14801 = vmatpush3.bf16.msra.mxu1 %v14770_v43  ;;  %v16561_v24 = vsub.f32 %v12576_v62, %v11267_v9  ;;  %v11799_v62 = vand.u32 4294901760, %v12589_v49 }
0x1309   : > { %14775 = vmatprep.subr.bf16.mxu0 %v15359_v10  ;;  %14155 = vmatprep.mubr.msk.f32.mxu0 %vm15360_vm1, %v15361_v15 }
0x130a   : > { %14838 = vmatprep.subr.bf16.mxu1 %v15359_v10  ;;  %v14818_v61 = vpack.c.bf16 %v16563_v22, %v16561_v24 }
0x130b   : > { %14200 = vmatmul.mubr.f32.vlgmr.msra.gmra.mrb[34].mxu1 %v10796_v63 }
0x130c   : > { %14777 = vmatpush3.bf16.msra.mxu0 %v14776_v27  ;;  %14300 = vmatprep.mubr.msk.f32.mxu1 %vm15360_vm1, %v15361_v15  ;;  %v11344_v27 = vand.u32 4294901760, %v11343_v30 }
0x130d   : > { %14778 = vmatprep.subr.bf16.mxu0 %v15359_v10 }
0x130f   : > { %14156 = vmatmul.mubr.f32.vlgmr.msra.gmra.mrb[32].mxu0 %v10796_v63 }
0x1310   : > { %14780 = vmatpush3.bf16.msra.mxu0 %v14779_v2  ;;  %14166 = vmatprep.mubr.msk.f32.mxu0 %vm15360_vm1, %v15361_v15 }
0x1311   : > { %14781 = vmatprep.subr.bf16.mxu0 %v15359_v10 }
0x1314   : > { %14783 = vmatpush3.bf16.msra.mxu0 %v14782_v31  ;;  %v11356_v31 = vand.u32 4294901760, %v16561_v24 }
0x1315   : > { %14790 = vmatprep.subr.bf16.mxu0 %v15359_v10 }
0x1316   : > { %v11357_v38 = vsub.f32 %v16561_v24, %v11356_v31  ;;  %v12591_v24 = vld [vmem:[%s16944_s13 + $0xd8] sm:$0xff] }
0x1317   : > { %14167 = vmatmul.mubr.f32.vlgmr.msra.gmra.mrb[34].mxu0 %v10797_v33 }
0x1318   : > { %14792 = vmatpush3.bf16.msra.mxu0 %v14791_v36  ;;  %14188 = vmatprep.mubr.msk.f32.mxu0 %vm15360_vm1, %v15361_v15  ;;  %v11363_v36 = vand.u32 4294901760, %v16563_v22  ;;  %v11358_v45 = vand.u32 4294901760, %v11357_v38 }
0x1319   : > { %14793 = vmatprep.subr.bf16.mxu0 %v15359_v10 }
0x131a   : > { %v11364_v44 = vsub.f32 %v16563_v22, %v11363_v36  ;;  %v16589_v33 = vpack.c.bf16 %v11363_v36, %v11356_v31 }
0x131c   : > { %14795 = vmatpush3.bf16.msra.mxu0 %v14794_v37  ;;  %v11365_v51 = vand.u32 4294901760, %v11364_v44 }
0x131d   : > { %14802 = vmatprep.subr.bf16.mxu0 %v15359_v10 }
0x131e   : > { %v16581_v52 = vpack.c.bf16 %v11365_v51, %v11358_v45 }
0x131f   : > { %14189 = vmatmul.mubr.f32.vlgmr.msra.gmra.mrb[36].mxu0 %v10796_v63 }
0x1320   : > { %14210 = vmatprep.mubr.msk.f32.mxu0 %vm15360_vm1, %v15361_v15 }
0x13d6   : > { %v11050_v39 = vpop.f32.mrb[32].mxu1 }
0x13d7   : > { %v14179_v3 = vpop.f32.mrb[33].mxu1 }
0x13d8   : > { %v12582_v3 = vld [vmem:[%s16944_s13 + $0x90] sm:$0xff] }
0x13da   : > { %v10802_v40 = vpop.f32.mrb[30].mxu0 }
0x13db   : > { %v14146_v6 = vpop.f32.mrb[31].mxu0  ;;  %v10803_v54 = vadd.f32 %v12569_v7, %v10802_v40  ;;  %v12583_v40 = vld [vmem:[%s16944_s13 + $0x98] sm:$0xff] }
0x13dc   : > { %v16603_v6 = vsub.f32 %v12580_v34, %v11772_v1 }
0x13de   : > { %v11208_v16 = vpop.f32.mrb[34].mxu1 }
0x13df   : > { %v14201_v42 = vpop.f32.mrb[35].mxu1 }
0x13e0   : > { %v11781_v42 = vand.u32 4294901760, %v12583_v40 }
0x13e2   : > { %v10893_v53 = vpop.f32.mrb[32].mxu0 }
0x13e3   : > { %v10894_v55 = vadd.f32 %v10893_v53, %v10803_v54  ;;  %v14157_v56 = vpop.f32.mrb[33].mxu0  ;;  %v16609_v53 = vsub.f32 %v12583_v40, %v11781_v42 }
0x13e4   : > { %v12584_v56 = vld [vmem:[%s16944_s13 + $0xa0] sm:$0xff] }
0x13ea   : > { %v10973_v57 = vpop.f32.mrb[34].mxu0 }
0x13eb   : > { %v10974_v46 = vadd.f32 %v10973_v57, %v10894_v55  ;;  %v14168_v47 = vpop.f32.mrb[35].mxu0  ;;  %v12585_v57 = vld [vmem:[%s16944_s13 + $0xa8] sm:$0xff] }
0x13ec   : > { %v11787_v47 = vand.u32 4294901760, %v12585_v57 }
0x13ed   : > { %v11051_v59 = vadd.f32 %v11050_v39, %v10974_v46  ;;  %v11775_v39 = vand.u32 4294901760, %v12581_v0  ;;  %v11784_v46 = vand.u32 4294901760, %v12584_v56 }
0x13ef   : > { %v16605_v7 = vsub.f32 %v12581_v0, %v11775_v39  ;;  %v16611_v55 = vpack.c.bf16 %v11775_v39, %v11772_v1  ;;  %v12593_v1 = vld [vmem:[%s16944_s13 + $0xe8] sm:$0xff] }
0x13f1   : > { %14840 = vmatpush3.bf16.msra.mxu1 %v16611_v55 }
0x13f2   : > { %v11133_v4 = vpop.f32.mrb[36].mxu0  ;;  %14841 = vmatprep.subr.bf16.mxu1 %v15359_v10 }
0x13f3   : > { %v11134_v13 = vadd.f32 %v11133_v4, %v11051_v59  ;;  %v14190_v14 = vpop.f32.mrb[37].mxu0  ;;  %v16621_v59 = vsub.f32 %v12584_v56, %v11784_v46  ;;  %v16623_v4 = vsub.f32 %v12585_v57, %v11787_v47  ;;  %v12595_v56 = vld [vmem:[%s16944_s13 + $0xf8] sm:$0xff] }
0x13f4   : > { %v12586_v14 = vld [vmem:[%s16944_s13 + $0xb0] sm:$0xff] }
0x13f5   : > { %v11209_v28 = vadd.f32 %v11208_v16, %v11134_v13  ;;  %v11778_v16 = vand.u32 4294901760, %v12582_v3 }
0x13f7   : > { %v11212_v35 = vadd.f32 %v11209_v28, %v16241_v58  ;;  %v12575_v58 = vld [vmem:[%s16942_s11 + $0x28] sm:$0xff]  ;;  %v16607_v54 = vsub.f32 %v12582_v3, %v11778_v16  ;;  %v16625_v13 = vpack.c.bf16 %v11781_v42, %v11778_v16  ;;  %v12587_v28 = vld [vmem:[%s16944_s13 + $0xb8] sm:$0xff]  ;;  %v11811_v3 = vand.u32 4294901760, %v12593_v1  ;;  %v12594_v42 = vld [vmem:[%s16944_s13 + $0xf0] sm:$0xff] }
0x13f8   : > { %v11264_v5 = vand.u32 4294901760, %v12575_v58 }
0x13f9   : > { %v11217_v41 = vsel %vm578_vm0, %v11212_v35, 0.0  ;;  %14843 = vmatpush3.bf16.msra.mxu1 %v16625_v13  ;;  %v11955_v16 = vsub.f32 %v12593_v1, %v11811_v3  ;;  %v11879_v1 = vand.u32 4294901760, %v16607_v54 }
0x13fa   : > { %11218 = vadd.xlane.f32.xlu1 %v11217_v41  ;;  %v16555_v18 = vpack.c.bf16 %v11264_v5, %v11261_v19  ;;  %v16559_v21 = vsub.f32 %v12575_v58, %v11264_v5  ;;  %v11793_v41 = vand.u32 4294901760, %v12587_v28  ;;  %14844 = vmatprep.subr.bf16.mxu1 %v15359_v10  ;;  %v16651_v5 = vsub.f32 %v12589_v49, %v11799_v62 }
0x13fc   : > { %14804 = vmatpush3.bf16.msra.mxu0 %v16555_v18  ;;  %v11349_v29 = vand.u32 4294901760, %v16559_v21  ;;  %v14815_v60 = vpack.c.bf16 %v16559_v21, %v16557_v20  ;;  %v14890_v20 = vpack.c.bf16 %v16609_v53, %v16607_v54 }
0x13fd   : > { %14805 = vmatprep.subr.bf16.mxu0 %v15359_v10 }
0x13fe   : > { %v11350_v26 = vsub.f32 %v16559_v21, %v11349_v29  ;;  %v16587_v63 = vpack.c.bf16 %v11349_v29, %v11342_v25  ;;  %v12590_v21 = vld [vmem:[%s16944_s13 + $0xd0] sm:$0xff] }
0x1400   : > { %14807 = vmatpush3.bf16.msra.mxu0 %v16566_v23  ;;  %v11351_v2 = vand.u32 4294901760, %v11350_v26  ;;  %v12572_v26 = vld [vmem:[%s16940_s9 + $0x1] ss:$0 sm:$0xff] }
0x1401   : > { %14808 = vmatprep.subr.bf16.mxu0 %v15359_v10 }
0x1402   : > { %v16577_v37 = vpack.c.bf16 %v11351_v2, %v11344_v27  ;;  %v12573_v2 = vld [vmem:[%s16941_s10 + $0x1] ss:$0 sm:$0xff] }
0x1487   : > { %v11219_v48 = vpop.xlane.xlu1 %11218 }
0x1488   : > { %v11220_v50 = vmul.f32 0.03125, %v11219_v48 }
0x148a   : > { %v16538_v11 = vsub.f32 %v11212_v35, %v11220_v50  ;;  %v11790_v35 = vand.u32 4294901760, %v12586_v14  ;;  %v16637_v50 = vsub.f32 %v12587_v28, %v11793_v41 }
0x148c   : > { %v11222_v32 = vmul.f32 %v16538_v11, %v16538_v11  ;;  %v16635_v48 = vsub.f32 %v12586_v14, %v11790_v35  ;;  %v16653_v8 = vpack.c.bf16 %v11793_v41, %v11790_v35 }
0x148e   : > { %v11223_v43 = vsel %vm578_vm0, %v11222_v32, 0.0  ;;  %v16639_v32 = vpack.c.bf16 %v11787_v47, %v11784_v46  ;;  %v14896_v22 = vpack.c.bf16 %v16637_v50, %v16635_v48  ;;  %v11814_v46 = vand.u32 4294901760, %v12594_v42 }
0x148f   : > { %11224 = vadd.xlane.f32.xlu0 %v11223_v43  ;;  %v12588_v43 = vld [vmem:[%s16944_s13 + $0xc0] sm:$0xff]  ;;  %v11817_v47 = vand.u32 4294901760, %v12595_v56 }
0x1490   : > { %14846 = vmatpush3.bf16.msra.mxu1 %v16639_v32  ;;  %v11796_v58 = vand.u32 4294901760, %v12588_v43  ;;  %v11962_v28 = vsub.f32 %v12594_v42, %v11814_v46  ;;  %v11880_v42 = vsub.f32 %v16607_v54, %v11879_v1 }
0x1491   : > { %14847 = vmatprep.subr.bf16.mxu1 %v15359_v10  ;;  %v11969_v35 = vsub.f32 %v12595_v56, %v11817_v47  ;;  %v16758_v49 = vpack.c.bf16 %v11817_v47, %v11814_v46  ;;  %v11900_v46 = vand.u32 4294901760, %v16623_v4 }
0x1492   : > { %v16649_v19 = vsub.f32 %v12588_v43, %v11796_v58  ;;  %v16657_v9 = vpack.c.bf16 %v11799_v62, %v11796_v58  ;;  %v11956_v62 = vand.u32 4294901760, %v11955_v16 }
0x1493   : > { %v14908_v41 = vpack.c.bf16 %v11969_v35, %v11962_v28 }
0x1494   : > { %14849 = vmatpush3.bf16.msra.mxu1 %v16653_v8 }
0x1495   : > { %14850 = vmatprep.subr.bf16.mxu1 %v15359_v10 }
0x1498   : > { %14852 = vmatpush3.bf16.msra.mxu1 %v16657_v9 }
0x1499   : > { %14853 = vmatprep.subr.bf16.mxu1 %v15359_v10 }
0x151c   : > { %v11225_v17 = vpop.xlane.xlu0 %11224 }
0x151d   : > { %v11226_v25 = vmul.f32 0.03125, %v11225_v17 }
0x151f   : > { %v11227_v29 = vadd.f32 1e-05, %v11226_v25  ;;  %v11963_v25 = vand.u32 4294901760, %v11962_v28 }
0x1521   : > { %15290 = vrsqrt.f32 %v11227_v29  ;;  %v11970_v29 = vand.u32 4294901760, %v11969_v35 }
0x152b   : > { %v15291_v30 = vpop.eup %15290 }
0x152c   : > { %v11229_v27 = vmul.f32 %v15291_v30, %v16538_v11  ;;  %v14887_v11 = vpack.c.bf16 %v16605_v7, %v16603_v6 }
0x152e   : > { %v11236_v31 = vmul.f32 %v12572_v26, %v11229_v27  ;;  %v11957_v26 = vsub.f32 %v11955_v16, %v11956_v62  ;;  %v16764_v27 = vpack.c.bf16 %v11970_v29, %v11963_v25 }
0x1530   : > { %v16668_v36 = vadd.f32 %v12573_v2, %v11236_v31  ;;  %v11958_v31 = vand.u32 4294901760, %v11957_v26 }
0x1532   : > { %v11258_v38 = vsel %vm578_vm0, %v16668_v36, 0 }
0x1533   : > { %v11329_v44 = vand.u32 4294901760, %v11258_v38 }
0x1535   : > { %v11330_v45 = vsub.f32 %v11258_v38, %v11329_v44  ;;  %v11964_v38 = vsub.f32 %v11962_v28, %v11963_v25  ;;  %v11914_v25 = vand.u32 4294901760, %v16637_v50 }
0x1537   : > { %v11331_v51 = vand.u32 4294901760, %v11330_v45  ;;  %v11915_v26 = vsub.f32 %v16637_v50, %v11914_v25 }
0x1539   : > { %v11332_v34 = vsub.f32 %v11330_v45, %v11331_v51 }
0x153b   : > { %v11333_v0 = vand.u32 4294901760, %v11332_v34 }
0x153d   : > { %14211 = vmatmul.mubr.f32.vlgmr.msra.gmra.mrb[38].mxu0 %v11333_v0 }
0x153e   : > { %14810 = vmatpush3.bf16.msra.mxu0 %v16577_v37  ;;  %14221 = vmatprep.mubr.msk.f32.mxu0 %vm15360_vm1, %v15361_v15  ;;  %v11805_v37 = vand.u32 4294901760, %v12591_v24 }
0x153f   : > { %14811 = vmatprep.subr.bf16.mxu0 %v15359_v10 }
0x1542   : > { %14813 = vmatpush3.bf16.msra.mxu0 %v16581_v52  ;;  %v14899_v52 = vpack.c.bf16 %v16651_v5, %v16649_v19 }
0x1543   : > { %14814 = vmatprep.subr.bf16.mxu0 %v15359_v10 }
0x1545   : > { %14222 = vmatmul.mubr.f32.vlgmr.msra.gmra.mrb[38].mxu0 %v11329_v44 }
0x1546   : > { %14816 = vmatpush3.bf16.msra.mxu0 %v14815_v60  ;;  %14232 = vmatprep.mubr.msk.f32.mxu0 %vm15360_vm1, %v15361_v15 }
0x1547   : > { %14817 = vmatprep.subr.bf16.mxu0 %v15359_v10 }
0x154a   : > { %14819 = vmatpush3.bf16.msra.mxu0 %v14818_v61  ;;  %v16729_v61 = vsub.f32 %v12591_v24, %v11805_v37  ;;  %v11865_v24 = vand.u32 4294901760, %v16603_v6 }
0x154b   : > { %14820 = vmatprep.subr.bf16.mxu0 %v15359_v10 }
0x154d   : > { %14233 = vmatmul.mubr.f32.vlgmr.msra.gmra.mrb[38].mxu0 %v11330_v45 }
0x154e   : > { %14822 = vmatpush3.bf16.msra.mxu0 %v16555_v18  ;;  %14243 = vmatprep.mubr.msk.f32.mxu0 %vm15360_vm1, %v15361_v15 }
0x154f   : > { %14823 = vmatprep.subr.bf16.mxu0 %v15359_v10 }
0x1552   : > { %14825 = vmatpush3.bf16.msra.mxu0 %v16566_v23 }
0x1553   : > { %14826 = vmatprep.subr.bf16.mxu0 %v15359_v10 }
0x1555   : > { %14244 = vmatmul.mubr.f32.vlgmr.msra.gmra.mrb[38].mxu0 %v11331_v51  ;;  %v11965_v51 = vand.u32 4294901760, %v11964_v38  ;;  %v11921_v38 = vand.u32 4294901760, %v16649_v19 }
0x1556   : > { %14828 = vmatpush3.bf16.msra.mxu0 %v16587_v63  ;;  %14254 = vmatprep.mubr.msk.f32.mxu0 %vm15360_vm1, %v15361_v15 }
0x1557   : > { %14829 = vmatprep.subr.bf16.mxu0 %v15359_v10 }
0x155a   : > { %14831 = vmatpush3.bf16.msra.mxu0 %v16589_v33  ;;  %v12592_v33 = vld [vmem:[%s16944_s13 + $0xe0] sm:$0xff] }
0x155b   : > { %14832 = vmatprep.subr.bf16.mxu0 %v15359_v10  ;;  %v11808_v39 = vand.u32 4294901760, %v12592_v33 }
0x155d   : > { %14255 = vmatmul.mubr.f32.vlgmr.msra.gmra.mrb[38].mxu0 %v11329_v44  ;;  %v11948_v40 = vsub.f32 %v12592_v33, %v11808_v39  ;;  %v16753_v43 = vpack.c.bf16 %v11811_v3, %v11808_v39  ;;  %v11886_v39 = vand.u32 4294901760, %v16609_v53 }
0x155e   : > { %14834 = vmatpush3.bf16.msra.mxu0 %v16555_v18  ;;  %14265 = vmatprep.mubr.msk.f32.mxu0 %vm15360_vm1, %v15361_v15  ;;  %v14893_v18 = vpack.c.bf16 %v16623_v4, %v16621_v59 }
0x155f   : > { %14835 = vmatprep.subr.bf16.mxu0 %v15359_v10  ;;  %v14905_v57 = vpack.c.bf16 %v11955_v16, %v11948_v40  ;;  %v11949_v58 = vand.u32 4294901760, %v11948_v40  ;;  %v11887_v56 = vsub.f32 %v16609_v53, %v11886_v39  ;;  %v11881_v53 = vand.u32 4294901760, %v11880_v42 }
0x1561   : > { %v16762_v17 = vpack.c.bf16 %v11956_v62, %v11949_v58  ;;  %v11950_v30 = vsub.f32 %v11948_v40, %v11949_v58  ;;  %v11888_v28 = vand.u32 4294901760, %v11887_v56  ;;  %v11907_v62 = vand.u32 4294901760, %v16635_v48 }
0x1562   : > { %14837 = vmatpush3.bf16.msra.mxu0 %v16566_v23  ;;  %v11802_v23 = vand.u32 4294901760, %v12590_v21 }
0x1563   : > { %14886 = vmatprep.subr.bf16.mxu0 %v15359_v10  ;;  %v11951_v2 = vand.u32 4294901760, %v11950_v30  ;;  %v11908_v30 = vsub.f32 %v16635_v48, %v11907_v62 }
0x1564   : > { %v16727_v60 = vsub.f32 %v12590_v21, %v11802_v23  ;;  %v16748_v14 = vpack.c.bf16 %v11805_v37, %v11802_v23  ;;  %v11866_v37 = vsub.f32 %v16603_v6, %v11865_v24 }
0x1565   : > { %14266 = vmatmul.mubr.f32.vlgmr.msra.gmra.mrb[38].mxu0 %v11329_v44  ;;  %v11971_v44 = vsub.f32 %v11969_v35, %v11970_v29  ;;  %v16766_v45 = vpack.c.bf16 %v11958_v31, %v11951_v2  ;;  %v14866_v2 = vpack.c.bf16 %v11888_v28, %v11881_v53  ;;  %v11909_v48 = vand.u32 4294901760, %v11908_v30 }
0x1566   : > { %14888 = vmatpush3.bf16.msra.mxu0 %v14887_v11  ;;  %14370 = vmatprep.mubr.msk.f32.mxu0 %vm15360_vm1, %v15361_v15  ;;  %v14902_v63 = vpack.c.bf16 %v16729_v61, %v16727_v60  ;;  %v12579_v11 = vld [vmem:[%s16943_s12 + $0x1] ss:$0 sm:$0xff]  ;;  %v11867_v40 = vand.u32 4294901760, %v11866_v37 }
0x1567   : > { %14889 = vmatprep.subr.bf16.mxu0 %v15359_v10  ;;  %14855 = vmatpush3.bf16.msra.mxu1 %v16748_v14  ;;  %v11972_v34 = vand.u32 4294901760, %v11971_v44  ;;  %v11928_v44 = vand.u32 4294901760, %v16651_v5 }
0x1568   : > { %14856 = vmatprep.subr.bf16.mxu1 %v15359_v10 }
0x1569   : > { %v16768_v0 = vpack.c.bf16 %v11972_v34, %v11965_v51  ;;  %v11916_v51 = vand.u32 4294901760, %v11915_v26  ;;  %v11922_v34 = vsub.f32 %v16649_v19, %v11921_v38 }
0x156a   : > { %14891 = vmatpush3.bf16.msra.mxu0 %v14890_v20 }
0x156b   : > { %14892 = vmatprep.subr.bf16.mxu0 %v15359_v10  ;;  %14858 = vmatpush3.bf16.msra.mxu1 %v16753_v43 }
0x156c   : > { %14859 = vmatprep.subr.bf16.mxu1 %v15359_v10 }
0x156e   : > { %14894 = vmatpush3.bf16.msra.mxu0 %v14893_v18 }
0x156f   : > { %14895 = vmatprep.subr.bf16.mxu0 %v15359_v10  ;;  %14861 = vmatpush3.bf16.msra.mxu1 %v16758_v49 }
0x1570   : > { %14862 = vmatprep.subr.bf16.mxu1 %v15359_v10 }
0x1572   : > { %14897 = vmatpush3.bf16.msra.mxu0 %v14896_v22  ;;  %v11872_v22 = vand.u32 4294901760, %v16605_v7 }
0x1573   : > { %14898 = vmatprep.subr.bf16.mxu0 %v15359_v10 }
0x1574   : > { %v14935_v33 = vpack.c.bf16 %v11872_v22, %v11865_v24  ;;  %v14872_v24 = vpack.c.bf16 %v11916_v51, %v11909_v48 }
0x1576   : > { %14900 = vmatpush3.bf16.msra.mxu0 %v14899_v52  ;;  %v11873_v52 = vsub.f32 %v16605_v7, %v11872_v22  ;;  %v14938_v7 = vpack.c.bf16 %v11886_v39, %v11879_v1  ;;  %v11923_v22 = vand.u32 4294901760, %v11922_v34 }
0x1577   : > { %14901 = vmatprep.subr.bf16.mxu0 %v15359_v10 }
0x1578   : > { %v11874_v16 = vand.u32 4294901760, %v11873_v52 }
0x157a   : > { %14903 = vmatpush3.bf16.msra.mxu0 %v14902_v63  ;;  %v14863_v54 = vpack.c.bf16 %v11874_v16, %v11867_v40 }
0x157b   : > { %14904 = vmatprep.subr.bf16.mxu0 %v15359_v10 }
0x157e   : > { %14906 = vmatpush3.bf16.msra.mxu0 %v14905_v57  ;;  %v11893_v57 = vand.u32 4294901760, %v16621_v59 }
0x157f   : > { %14907 = vmatprep.subr.bf16.mxu0 %v15359_v10 }
0x1580   : > { %v11894_v35 = vsub.f32 %v16621_v59, %v11893_v57  ;;  %v14941_v29 = vpack.c.bf16 %v11900_v46, %v11893_v57 }
0x1582   : > { %14909 = vmatpush3.bf16.msra.mxu0 %v14908_v41  ;;  %v11901_v41 = vsub.f32 %v16623_v4, %v11900_v46  ;;  %v11895_v31 = vand.u32 4294901760, %v11894_v35  ;;  %v14944_v4 = vpack.c.bf16 %v11914_v25, %v11907_v62 }
0x1583   : > { %14934 = vmatprep.subr.bf16.mxu0 %v15359_v10 }
0x1584   : > { %v11902_v59 = vand.u32 4294901760, %v11901_v41  ;;  %v12601_v41 = vld [vmem:[%s16947_s16 + $0x1] ss:$0 sm:$0xff] }
0x1586   : > { %v14869_v50 = vpack.c.bf16 %v11902_v59, %v11895_v31 }
0x1638   : > { %v11741_v20 = vpop.f32.mrb[38].mxu0 }
0x1639   : > { %v14993_v18 = vadd.f32 %v12579_v11, %v11741_v20  ;;  %v14267_v21 = vpop.f32.mrb[39].mxu0  ;;  %v11929_v11 = vsub.f32 %v16651_v5, %v11928_v44  ;;  %v14947_v20 = vpack.c.bf16 %v11928_v44, %v11921_v38 }
0x163a   : > { %v11942_v21 = vand.u32 4294901760, %v16729_v61 }
0x163b   : > { %v11745_v23 = vmax.f32 %v14993_v18, 0.0  ;;  %v11935_v18 = vand.u32 4294901760, %v16727_v60 }
0x163c   : > { %v11943_v19 = vsub.f32 %v16729_v61, %v11942_v21 }
0x163d   : > { %v16777_v63 = vand.u32 4294901760, %v11745_v23  ;;  %v11936_v37 = vsub.f32 %v16727_v60, %v11935_v18  ;;  %v14950_v5 = vpack.c.bf16 %v11942_v21, %v11935_v18  ;;  %v12597_v60 = vld [vmem:[%s16945_s14 + $0x1] ss:$0 sm:$0xff] }
0x163e   : > { %v11944_v1 = vand.u32 4294901760, %v11943_v19 }
0x163f   : > { %v16782_v3 = vsub.f32 %v11745_v23, %v16777_v63  ;;  %v11930_v23 = vand.u32 4294901760, %v11929_v11 }
0x1641   : > { %v11854_v6 = vand.u32 4294901760, %v16782_v3  ;;  %14371 = vmatmul.mubr.f32.vlgmr.msra.gmra.mrb[40].mxu0 %v16782_v3  ;;  %v14875_v52 = vpack.c.bf16 %v11930_v23, %v11923_v22 }
0x1642   : > { %14936 = vmatpush3.bf16.msra.mxu0 %v14935_v33  ;;  %14440 = vmatprep.mubr.msk.f32.mxu0 %vm15360_vm1, %v15361_v15  ;;  %v11937_v33 = vand.u32 4294901760, %v11936_v37 }
0x1643   : > { %v11855_v47 = vsub.f32 %v16782_v3, %v11854_v6  ;;  %14937 = vmatprep.subr.bf16.mxu0 %v15359_v10 }
0x1644   : > { %v14878_v39 = vpack.c.bf16 %v11944_v1, %v11937_v33 }
0x1645   : > { %v11856_v58 = vand.u32 4294901760, %v11855_v47 }
0x1646   : > { %14939 = vmatpush3.bf16.msra.mxu0 %v14938_v7 }
0x1647   : > { %14301 = vmatmul.mubr.f32.vlgmr.msra.gmra.mrb[36].mxu1 %v11856_v58  ;;  %14940 = vmatprep.subr.bf16.mxu0 %v15359_v10 }
0x1648   : > { %14864 = vmatpush3.bf16.msra.mxu1 %v14863_v54  ;;  %14335 = vmatprep.mubr.msk.f32.mxu1 %vm15360_vm1, %v15361_v15 }
0x1649   : > { %14865 = vmatprep.subr.bf16.mxu1 %v15359_v10 }
0x164a   : > { %14942 = vmatpush3.bf16.msra.mxu0 %v14941_v29 }
0x164b   : > { %14943 = vmatprep.subr.bf16.mxu0 %v15359_v10 }
0x164c   : > { %14867 = vmatpush3.bf16.msra.mxu1 %v14866_v2 }
0x164d   : > { %14868 = vmatprep.subr.bf16.mxu1 %v15359_v10 }
0x164e   : > { %14945 = vmatpush3.bf16.msra.mxu0 %v14944_v4 }
0x164f   : > { %14946 = vmatprep.subr.bf16.mxu0 %v15359_v10 }
0x1650   : > { %14870 = vmatpush3.bf16.msra.mxu1 %v14869_v50 }
0x1651   : > { %14871 = vmatprep.subr.bf16.mxu1 %v15359_v10 }
0x1652   : > { %14948 = vmatpush3.bf16.msra.mxu0 %v14947_v20 }
0x1653   : > { %14949 = vmatprep.subr.bf16.mxu0 %v15359_v10 }
0x1654   : > { %14873 = vmatpush3.bf16.msra.mxu1 %v14872_v24 }
0x1655   : > { %14874 = vmatprep.subr.bf16.mxu1 %v15359_v10 }
0x1656   : > { %14951 = vmatpush3.bf16.msra.mxu0 %v14950_v5 }
0x1657   : > { %14952 = vmatprep.subr.bf16.mxu0 %v15359_v10 }
0x1658   : > { %14876 = vmatpush3.bf16.msra.mxu1 %v14875_v52 }
0x1659   : > { %14877 = vmatprep.subr.bf16.mxu1 %v15359_v10 }
0x165a   : > { %14954 = vmatpush3.bf16.msra.mxu0 %v16762_v17 }
0x165b   : > { %14955 = vmatprep.subr.bf16.mxu0 %v15359_v10 }
0x165c   : > { %14879 = vmatpush3.bf16.msra.mxu1 %v14878_v39 }
0x165d   : > { %14880 = vmatprep.subr.bf16.mxu1 %v15359_v10 }
0x165e   : > { %14957 = vmatpush3.bf16.msra.mxu0 %v16764_v27 }
0x1660   : > { %14882 = vmatpush3.bf16.msra.mxu1 %v16766_v45 }
0x1661   : > { %14441 = vmatmul.mubr.f32.vlgmr.msra.gmra.mrb[42].mxu0 %v16777_v63  ;;  %14883 = vmatprep.subr.bf16.mxu1 %v15359_v10 }
0x1664   : > { %14885 = vmatpush3.bf16.msra.mxu1 %v16768_v0 }
0x1665   : > { %14910 = vmatprep.subr.bf16.mxu1 %v15359_v10 }
0x1667   : > { %14336 = vmatmul.mubr.f32.vlgmr.msra.gmra.mrb[38].mxu1 %v16777_v63 }
0x1668   : > { %14912 = vmatpush3.bf16.msra.mxu1 %v16611_v55  ;;  %14405 = vmatprep.mubr.msk.f32.mxu1 %vm15360_vm1, %v15361_v15 }
0x1669   : > { %14913 = vmatprep.subr.bf16.mxu1 %v15359_v10 }
0x166c   : > { %14915 = vmatpush3.bf16.msra.mxu1 %v16625_v13 }
0x166d   : > { %14916 = vmatprep.subr.bf16.mxu1 %v15359_v10 }
0x1670   : > { %14918 = vmatpush3.bf16.msra.mxu1 %v16639_v32 }
0x1671   : > { %14919 = vmatprep.subr.bf16.mxu1 %v15359_v10 }
0x1674   : > { %14921 = vmatpush3.bf16.msra.mxu1 %v16653_v8 }
0x1675   : > { %14922 = vmatprep.subr.bf16.mxu1 %v15359_v10 }
0x1678   : > { %14924 = vmatpush3.bf16.msra.mxu1 %v16657_v9 }
0x1679   : > { %14925 = vmatprep.subr.bf16.mxu1 %v15359_v10 }
0x167c   : > { %14927 = vmatpush3.bf16.msra.mxu1 %v16748_v14 }
0x167d   : > { %14928 = vmatprep.subr.bf16.mxu1 %v15359_v10 }
0x1680   : > { %14930 = vmatpush3.bf16.msra.mxu1 %v16753_v43 }
0x1681   : > { %14931 = vmatprep.subr.bf16.mxu1 %v15359_v10 }
0x1684   : > { %14933 = vmatpush3.bf16.msra.mxu1 %v16758_v49 }
0x1685   : > { %14958 = vmatprep.subr.bf16.mxu1 %v15359_v10 }
0x1687   : > { %14406 = vmatmul.mubr.f32.vlgmr.msra.gmra.mrb[40].mxu1 %v11854_v6 }
0x1688   : > { %14960 = vmatpush3.bf16.msra.mxu1 %v16611_v55  ;;  %14475 = vmatprep.mubr.msk.f32.mxu1 %vm15360_vm1, %v15361_v15 }
0x1689   : > { %14961 = vmatprep.subr.bf16.mxu1 %v15359_v10 }
0x168c   : > { %14963 = vmatpush3.bf16.msra.mxu1 %v16625_v13 }
0x168d   : > { %14964 = vmatprep.subr.bf16.mxu1 %v15359_v10 }
0x1690   : > { %14966 = vmatpush3.bf16.msra.mxu1 %v16639_v32 }
0x1691   : > { %14967 = vmatprep.subr.bf16.mxu1 %v15359_v10 }
0x1694   : > { %14969 = vmatpush3.bf16.msra.mxu1 %v16653_v8 }
0x1695   : > { %14970 = vmatprep.subr.bf16.mxu1 %v15359_v10 }
0x1698   : > { %14972 = vmatpush3.bf16.msra.mxu1 %v16657_v9 }
0x1699   : > { %14973 = vmatprep.subr.bf16.mxu1 %v15359_v10 }
0x169c   : > { %14975 = vmatpush3.bf16.msra.mxu1 %v16748_v14 }
0x169d   : > { %14976 = vmatprep.subr.bf16.mxu1 %v15359_v10 }
0x16a0   : > { %14978 = vmatpush3.bf16.msra.mxu1 %v16753_v43 }
0x16a1   : > { %14979 = vmatprep.subr.bf16.mxu1 %v15359_v10 }
0x16a4   : > { %14981 = vmatpush3.bf16.msra.mxu1 %v16758_v49 }
0x16a7   : > { %14476 = vmatmul.mubr.f32.vlgmr.msra.gmra.mrb[42].mxu1 %v16777_v63 }
0x1714   : > { %v12113_v15 = vpop.f32.mrb[40].mxu0 }
0x1715   : > { %v14372_v55 = vpop.f32.mrb[41].mxu0 }
0x171a   : > { %v11858_v13 = vpop.f32.mrb[36].mxu1 }
0x171b   : > { %v14302_v32 = vpop.f32.mrb[37].mxu1  ;;  %v11859_v61 = vadd.f32 %v12597_v60, %v11858_v13 }
0x1734   : > { %v12321_v8 = vpop.f32.mrb[42].mxu0 }
0x1735   : > { %v14442_v9 = vpop.f32.mrb[43].mxu0 }
0x173a   : > { %v12009_v14 = vpop.f32.mrb[38].mxu1 }
0x173b   : > { %v12010_v17 = vadd.f32 %v12009_v14, %v11859_v61  ;;  %v14337_v43 = vpop.f32.mrb[39].mxu1 }
0x173d   : > { %v12114_v27 = vadd.f32 %v12113_v15, %v12010_v17 }
0x175a   : > { %v12202_v10 = vpop.f32.mrb[40].mxu1 }
0x175b   : > { %v12203_v45 = vadd.f32 %v12202_v10, %v12114_v27  ;;  %v14407_v49 = vpop.f32.mrb[41].mxu1 }
0x175d   : > { %v12322_v0 = vadd.f32 %v12321_v8, %v12203_v45 }
0x177a   : > { %v12408_v63 = vpop.f32.mrb[42].mxu1 }
0x177b   : > { %v12409_v3 = vadd.f32 %v12408_v63, %v12322_v0  ;;  %v14477_v40 = vpop.f32.mrb[43].mxu1 }
0x177d   : > { %v12412_v16 = vadd.f32 %v12409_v3, %v16668_v36  ;;  %v12600_v36 = vld [vmem:[%s16946_s15 + $0x1] ss:$0 sm:$0xff] }
0x177f   : > { %v12417_v42 = vsel %vm578_vm0, %v12412_v16, 0.0 }
0x1780   : > { %12418 = vadd.xlane.f32.xlu1 %v12417_v42 }
0x180d   : > { %v12419_v56 = vpop.xlane.xlu1 %12418 }
0x180e   : > { %v12420_v6 = vmul.f32 0.03125, %v12419_v56 }
0x1810   : > { %v12421_v7 = vsub.f32 %v12412_v16, %v12420_v6 }
0x1812   : > { %v12422_v57 = vmul.f32 %v12421_v7, %v12421_v7 }
0x1814   : > { %v12423_v46 = vsel %vm578_vm0, %v12422_v57, 0.0 }
0x1815   : > { %12424 = vadd.xlane.f32.xlu1 %v12423_v46 }
0x18a2   : > { %v12425_v47 = vpop.xlane.xlu1 %12424 }
0x18a3   : > { %v12426_v54 = vmul.f32 0.03125, %v12425_v47 }
0x18a5   : > { %v12427_v53 = vadd.f32 1e-05, %v12426_v54 }
0x18a7   : > { %15292 = vrsqrt.f32 %v12427_v53 }
0x18b1   : > { %v15293_v28 = vpop.eup %15292 }
0x18b2   : > { %v12429_v35 = vmul.f32 %v15293_v28, %v12421_v7 }
0x18b4   : > { %v12436_v58 = vmul.f32 %v12600_v36, %v12429_v35 }
0x18b6   : > { %v12443_v62 = vadd.f32 %v12601_v41, %v12436_v58 }
0x18b8   : > { %v12444_v25 = vmul.f32 %v12443_v62, %v16238_v12 }
0x18ba   : > { %12445 = vst.msk [vmem:[%s563_s26] sm:$0xff] %vm578_vm0, %v12444_v25 }
0x18bb   : > { %15308 = shalt.err (!%p15305_p3)
}
0x18bc   : > { %s15309_s21 = scalar_lea.hbm %s16888_s2, 128  ;;  %s15313_s26 = scalar_lea.hbm %s16948_s17, 256 }
0x18bd   : > { %p15310_p4 = scmp.ne.s32.totalorder %s16888_s2, %s15309_s21  ;;  %p15314_p9 = scmp.lt.u32.totalorder %s16888_s2, %s16948_s17 }
0x18be   : > { %p15315_p10 = scmp.lt.u32.totalorder %s15313_s26, %s15309_s21  ;;  %p15317_p12 = scmp.lt.u32.totalorder %s15309_s21, %s16888_s2 }
0x18bf   : > { %p15311_p7 = pnand %p15310_p4, %p15506_p5 }
0x18c0   : > { %p15316_p11 = por %p15315_p10, %p15314_p9 }
0x18c1   : > { %p15312_p8 = pneg %p15311_p7 }
0x18c2   : > { %p15318_p13 = por %p15317_p12, %p15316_p11 }
0x18c4   : > { %p15319_p0 = pnand %p15318_p13, %p15312_p8 }
0x18c6   : > { %15322 = shalt.err (!%p15319_p0)
}
0x18c7   : > { %15194 = dma.vmem_to_hbm [thread:$0]  (%p15506_p5), %s16890_s0, 128, %s16888_s2, %s12447_s19  }
0x18c8 PF: > { %p15200_p1 = scmp.ge.s32.totalorder %s15357_s27, 2  ;;  %s12472_s28 = sand.u32 1, %s15345_s24  }
0x18c9   : > { %s12473_s22 = scalar_lea.sflag [#allocation3], %s12472_s28 }
0x18ca   : > { %p15197_p2 = pnand %p15200_p1, %p15510_p6 }
0x18cc   : > { %15340 = dma.done.wait (!%p15197_p2), %s12473_s22, 128  }
0x18cd   : > { %15342 = vsyncadd (!%p15197_p2), %s12473_s22, 4294967168  ;;  %s16996_s27 = sld [smem:[#allocation6_spill]]  ;;  %s16997_s29 = sld [smem:[#allocation5_spill]] }
0x18ce   : > { %s16998_s26 = sld [smem:[#allocation7_spill]]  ;;  %s16999_s24 = smov %s15349_s25 }
0x18d3   : > { %p27_p3 = scmp.ge.s32.totalorder %s16996_s27, 4   ;;  %s17000_s25 = smov %s16997_s29 }
0x18d5   :  { %29 = sbr.rel (!%p27_p3) target bundleno = 8 (0x8), region = 141 }
0x18dc   :  { %12478 = vsyncpa [#allocation3], 1 }
0x18dd   :  { %12480 = vsyncpa [#allocation3 + $0x1], 1 }

</bundles_post_ra>
